<compile_context>
chip_gen: v7x
topology: tpu7x:2x2x1
jax: 0.10.0
libtpu: 0.0.40
codegen_flags: <defaults>
</compile_context>

<pallas_src>
import jax
import jax.numpy as jnp
from jax.experimental import pallas as pl
from jax.experimental.pallas import tpu as pltpu


# ----------------------------------------------------------------------------
# Kernel
# ----------------------------------------------------------------------------
def _make_kernel(use_vpu_layer1):
    def kernel(x_ref, w1_ref, b1_ref, w2_ref, b2_ref, w3_ref, b3_ref, out_ref):
        x = x_ref[...]                                        # (BN, din) f32
        bn, din = x.shape
        hp = b1_ref.shape[1]

        # ---- layer 1: Linear + ReLU -------------------------------------
        if use_vpu_layer1:
            # din <= 8: a K=din MXU matmul wastes the systolic array; do `din`
            # broadcast-FMAs on the VPU instead (exact f32) and leave the MXU
            # entirely to layer 2.
            h = jnp.broadcast_to(b1_ref[...], (bn, hp))       # hoisted once
            for d in range(din):                              # unrolled, din static
                h = h + x[:, d:d + 1] * w1_ref[d:d + 1, :]
        else:
            # w1 was pre-cast to bf16 outside the kernel; only the streamed
            # activations are cast per step.
            h = jnp.dot(x.astype(jnp.bfloat16), w1_ref[...],
                        preferred_element_type=jnp.float32) + b1_ref[...]
        h = jnp.maximum(h, 0.0)                               # (BN, Hp) f32

        # ---- layer 2: Linear + ReLU (bf16 MXU operands, f32 accumulate) --
        h = jnp.dot(h.astype(jnp.bfloat16), w2_ref[...],
                    preferred_element_type=jnp.float32) + b2_ref[...]
        h = jnp.maximum(h, 0.0)                               # (BN, Hp) f32

        # ---- layer 3: Linear(Hp, 1) as VPU multiply + lane reduction -----
        row = jnp.sum(h * w3_ref[...], axis=-1)               # (BN,)
        out_ref[...] = row.reshape(1, -1) + b3_ref[...]       # (1, BN) lane-dense

    return kernel


# ----------------------------------------------------------------------------
# Wrapper
# ----------------------------------------------------------------------------
def _batch_dim_semantics():
    """Only CORE_PARALLEL actually shards a grid axis across v7x's 2 TCs."""
    try:
        kind = jax.devices()[0].device_kind.lower()
    except Exception:
        kind = ""
    if ("v7" in kind or "tpu7" in kind) and hasattr(pltpu, "CORE_PARALLEL"):
        return pltpu.CORE_PARALLEL
    return "parallel"


def _pallas_forward(state, prepped, block_rows, *, tuned):
    n, din = state.shape
    num_blocks = pl.cdiv(n, block_rows)
    use_vpu_l1 = din <= 8
    has_buffered = hasattr(pl, "Buffered")

    def spec(shape, index_map, buffers=None):
        if tuned and has_buffered and buffers is not None:
            return pl.BlockSpec(shape, index_map, pipeline_mode=pl.Buffered(buffers))
        return pl.BlockSpec(shape, index_map)

    def resident(arr):
        # Full-array block, constant index_map -> stays in VMEM across all grid
        # steps; single-buffered in the tuned path (a second buffer is pure
        # VMEM waste on v7x's 64 MiB since the block never changes).
        return spec(arr.shape, lambda i: (0, 0), buffers=1)

    sem = _batch_dim_semantics() if tuned else "arbitrary"

    return pl.pallas_call(
        _make_kernel(use_vpu_l1),
        out_shape=jax.ShapeDtypeStruct((num_blocks, block_rows), jnp.float32),
        grid=(num_blocks,),
        in_specs=[
            # Streamed rows; triple-buffered in the tuned path (per-block
            # compute is tiny relative to the DMA, hides DMA jitter).
            spec((block_rows, din), lambda i: (i, 0), buffers=3),
            resident(prepped["w1"]),
            resident(prepped["b1"]),
            resident(prepped["w2"]),
            resident(prepped["b2"]),
            resident(prepped["w3"]),
            resident(prepped["b3"]),
        ],
        out_specs=pl.BlockSpec((1, block_rows), lambda i: (i, 0)),
        compiler_params=pltpu.CompilerParams(
            dimension_semantics=(sem,),
            vmem_limit_bytes=32 * 1024 * 1024,   # working set << 1 MiB; safe on v7x
        ),
    )(state, prepped["w1"], prepped["b1"], prepped["w2"], prepped["b2"],
      prepped["w3"], prepped["b3"])


def value_network_forward(state, prepped, *, block_rows=512):
    """Pallas forward for ValueNetwork. `prepped` = prepare_params(params).

    Returns (N, 1) float32.
    """
    assert block_rows % 128 == 0, "block_rows must be lane-dense (multiple of 128)"
    n = state.shape[0]
    try:
        out = jax.block_until_ready(
            _pallas_forward(state, prepped, block_rows, tuned=True))
    except Exception:
        # Fallback for stacks where CORE_PARALLEL / pipeline_mode=Buffered are
        # unavailable: same kernel, plain portable specs.
        out = _pallas_forward(state, prepped, block_rows, tuned=False)
    # The final partial block produces garbage rows (no wrapper-side pad);
    # they are discarded here -- keep the [:n] slice.
    return out.reshape(-1)[:n].reshape(n, 1)


# ----------------------------------------------------------------------------
# Parameters
# ----------------------------------------------------------------------------
def init_params(key, num_inputs, hidden_dim):
    """Mirror PyTorch: xavier_uniform_(gain=1) weights, zero biases.

    Weights stored as (in, out); last-layer weight stored as a (1, hidden) row.
    """
    def xavier(k, fan_in, fan_out):
        bound = jnp.sqrt(6.0 / (fan_in + fan_out))
        return jax.random.uniform(k, (fan_in, fan_out), jnp.float32, -bound, bound)

    k1, k2, k3 = jax.random.split(key, 3)
    return dict(
        w1=xavier(k1, num_inputs, hidden_dim),
        b1=jnp.zeros((1, hidden_dim), jnp.float32),
        w2=xavier(k2, hidden_dim, hidden_dim),
        b2=jnp.zeros((1, hidden_dim), jnp.float32),
        w3=xavier(k3, hidden_dim, 1).reshape(1, hidden_dim),
        b3=jnp.zeros((1, 1), jnp.float32),
    )


def prepare_params(params, *, lane=128):
    """One-time layout/dtype prep (do NOT call per forward step).

    * Zero-pads the hidden dim to a multiple of 128 -> full vreg lanes / MXU
      columns; results are unchanged (padded hidden units stay exactly 0
      through relu and contribute 0 to every downstream dot).
    * Pre-casts the MXU weight operands to bf16 once (w2 always; w1 only when
      it is consumed by the MXU, i.e. din > 8).  Biases / w3 stay f32 (VPU).
    """
    din, h = params["w1"].shape
    hp = ((h + lane - 1) // lane) * lane
    ph = hp - h
    pad_cols = lambda a: jnp.pad(a, ((0, 0), (0, ph)))
    use_vpu_l1 = din <= 8

    w1 = pad_cols(params["w1"])
    w2 = jnp.pad(params["w2"], ((0, ph), (0, ph)))
    return dict(
        w1=w1 if use_vpu_l1 else w1.astype(jnp.bfloat16),
        b1=pad_cols(params["b1"]),
        w2=w2.astype(jnp.bfloat16),     # resident bf16 MXU operand
        b2=pad_cols(params["b2"]),
        w3=pad_cols(params["w3"]),      # f32, consumed on the VPU
        b3=params["b3"],
    )


def reference_forward(state, params):
    """Pure-JAX f32 reference mirroring the PyTorch forward exactly."""
    h = jnp.maximum(state @ params["w1"] + params["b1"], 0.0)
    h = jnp.maximum(h @ params["w2"] + params["b2"], 0.0)
    return h @ params["w3"].T + params["b3"]


# ----------------------------------------------------------------------------
if __name__ == "__main__":
    # Small shapes consistent with the module.
    N = 2
    NUM_INPUTS = 4
    HIDDEN_DIM = 32   # padded to 128 inside prepare_params (results unchanged)

    key = jax.random.PRNGKey(0)
    k_s, k_p = jax.random.split(key)
    state = jax.random.normal(k_s, (N, NUM_INPUTS), jnp.float32)
    params = init_params(k_p, NUM_INPUTS, HIDDEN_DIM)
    prepped = prepare_params(params)

    out = value_network_forward(state, prepped)
    out = jax.block_until_ready(out)

    ref = reference_forward(state, params)
    assert out.shape == (N, 1), out.shape
    # Only layer 2 uses bf16 MXU operands (f32 accumulation) at these shapes;
    # keep a slightly loosened tolerance vs the pure-f32 reference.
    assert jnp.allclose(out, ref, atol=2e-2, rtol=2e-2), (out, ref)

    print("KERNEL_OK")
</pallas_src>

<mosaic_0001>
module attributes {stable_mosaic.version = 11 : i64} {
  func.func @kernel(%arg0: i32, %arg1: memref<512x4xf32, #tpu.memory_space<vmem>>, %arg2: memref<4x128xf32, #tpu.memory_space<vmem>>, %arg3: memref<1x128xf32, #tpu.memory_space<vmem>>, %arg4: memref<128x128xbf16, #tpu.memory_space<vmem>>, %arg5: memref<1x128xf32, #tpu.memory_space<vmem>>, %arg6: memref<1x128xf32, #tpu.memory_space<vmem>>, %arg7: memref<1x1xf32, #tpu.memory_space<vmem>>, %arg8: memref<1x512xf32, #tpu.memory_space<vmem>>) attributes {dimension_semantics = [#tpu.dimension_semantics<arbitrary>], iteration_bounds = array<i64: 1>, scalar_prefetch = 0 : i64, scratch_operands = 0 : i64, tpu.core_type = #tpu.core_type<tc>, window_params = [{transform_indices = @transform_0, window_bounds = array<i64: 512, 4>}, {pipeline_mode = #tpu.pipeline_mode<synchronous>, transform_indices = @transform_1, window_bounds = array<i64: 4, 128>}, {pipeline_mode = #tpu.pipeline_mode<synchronous>, transform_indices = @transform_2, window_bounds = array<i64: 1, 128>}, {pipeline_mode = #tpu.pipeline_mode<synchronous>, transform_indices = @transform_3, window_bounds = array<i64: 128, 128>}, {pipeline_mode = #tpu.pipeline_mode<synchronous>, transform_indices = @transform_4, window_bounds = array<i64: 1, 128>}, {pipeline_mode = #tpu.pipeline_mode<synchronous>, transform_indices = @transform_5, window_bounds = array<i64: 1, 128>}, {pipeline_mode = #tpu.pipeline_mode<synchronous>, transform_indices = @transform_6, window_bounds = array<i64: 1, 1>}, {transform_indices = @transform_7, window_bounds = array<i64: 1, 512>}]} {
    %c0 = arith.constant 0 : index
    %c0_0 = arith.constant 0 : index
    %0 = vector.load %arg1[%c0, %c0_0] : memref<512x4xf32, #tpu.memory_space<vmem>>, vector<512x4xf32>
    %c0_1 = arith.constant 0 : index
    %c0_2 = arith.constant 0 : index
    %1 = vector.load %arg3[%c0_1, %c0_2] : memref<1x128xf32, #tpu.memory_space<vmem>>, vector<1x128xf32>
    %2 = vector.shape_cast %1 : vector<1x128xf32> to vector<1x128xf32>
    %3 = vector.broadcast %2 : vector<1x128xf32> to vector<512x128xf32>
    %4 = vector.extract_strided_slice %0 {offsets = [0, 0], sizes = [512, 1], strides = [1, 1]} : vector<512x4xf32> to vector<512x1xf32>
    %c0_3 = arith.constant 0 : index
    %c0_4 = arith.constant 0 : index
    %5 = vector.load %arg2[%c0_3, %c0_4] : memref<4x128xf32, #tpu.memory_space<vmem>>, vector<1x128xf32>
    %6 = vector.broadcast %4 : vector<512x1xf32> to vector<512x128xf32>
    %7 = vector.broadcast %5 : vector<1x128xf32> to vector<512x128xf32>
    %8 = arith.mulf %6, %7 : vector<512x128xf32>
    %9 = arith.addf %3, %8 : vector<512x128xf32>
    %10 = vector.extract_strided_slice %0 {offsets = [0, 1], sizes = [512, 1], strides = [1, 1]} : vector<512x4xf32> to vector<512x1xf32>
    %c1 = arith.constant 1 : index
    %c0_5 = arith.constant 0 : index
    %11 = vector.load %arg2[%c1, %c0_5] : memref<4x128xf32, #tpu.memory_space<vmem>>, vector<1x128xf32>
    %12 = vector.broadcast %10 : vector<512x1xf32> to vector<512x128xf32>
    %13 = vector.broadcast %11 : vector<1x128xf32> to vector<512x128xf32>
    %14 = arith.mulf %12, %13 : vector<512x128xf32>
    %15 = arith.addf %9, %14 : vector<512x128xf32>
    %16 = vector.extract_strided_slice %0 {offsets = [0, 2], sizes = [512, 1], strides = [1, 1]} : vector<512x4xf32> to vector<512x1xf32>
    %c2 = arith.constant 2 : index
    %c0_6 = arith.constant 0 : index
    %17 = vector.load %arg2[%c2, %c0_6] : memref<4x128xf32, #tpu.memory_space<vmem>>, vector<1x128xf32>
    %18 = vector.broadcast %16 : vector<512x1xf32> to vector<512x128xf32>
    %19 = vector.broadcast %17 : vector<1x128xf32> to vector<512x128xf32>
    %20 = arith.mulf %18, %19 : vector<512x128xf32>
    %21 = arith.addf %15, %20 : vector<512x128xf32>
    %22 = vector.extract_strided_slice %0 {offsets = [0, 3], sizes = [512, 1], strides = [1, 1]} : vector<512x4xf32> to vector<512x1xf32>
    %c3 = arith.constant 3 : index
    %c0_7 = arith.constant 0 : index
    %23 = vector.load %arg2[%c3, %c0_7] : memref<4x128xf32, #tpu.memory_space<vmem>>, vector<1x128xf32>
    %24 = vector.broadcast %22 : vector<512x1xf32> to vector<512x128xf32>
    %25 = vector.broadcast %23 : vector<1x128xf32> to vector<512x128xf32>
    %26 = arith.mulf %24, %25 : vector<512x128xf32>
    %27 = arith.addf %21, %26 : vector<512x128xf32>
    %cst = arith.constant 0.000000e+00 : f32
    %28 = vector.broadcast %cst : f32 to vector<512x128xf32>
    %29 = arith.maximumf %27, %28 : vector<512x128xf32>
    %30 = arith.truncf %29 : vector<512x128xf32> to vector<512x128xbf16>
    %c0_8 = arith.constant 0 : index
    %c0_9 = arith.constant 0 : index
    %31 = vector.load %arg4[%c0_8, %c0_9] : memref<128x128xbf16, #tpu.memory_space<vmem>>, vector<128x128xbf16>
    %cst_10 = arith.constant dense<0.000000e+00> : vector<512x128xf32>
    %32 = tpu.matmul %30, %31, %cst_10 {dimension_numbers = #tpu.dot_dimension_numbers<[1], [0], [0], [1], [0, 0, 1, 1], [], []>} : vector<512x128xbf16>, vector<128x128xbf16>, vector<512x128xf32> -> vector<512x128xf32>
    %c0_11 = arith.constant 0 : index
    %c0_12 = arith.constant 0 : index
    %33 = vector.load %arg5[%c0_11, %c0_12] : memref<1x128xf32, #tpu.memory_space<vmem>>, vector<1x128xf32>
    %34 = vector.broadcast %33 : vector<1x128xf32> to vector<512x128xf32>
    %35 = arith.addf %32, %34 : vector<512x128xf32>
    %cst_13 = arith.constant 0.000000e+00 : f32
    %36 = vector.broadcast %cst_13 : f32 to vector<512x128xf32>
    %37 = arith.maximumf %35, %36 : vector<512x128xf32>
    %c0_14 = arith.constant 0 : index
    %c0_15 = arith.constant 0 : index
    %38 = vector.load %arg6[%c0_14, %c0_15] : memref<1x128xf32, #tpu.memory_space<vmem>>, vector<1x128xf32>
    %39 = vector.broadcast %38 : vector<1x128xf32> to vector<512x128xf32>
    %40 = arith.mulf %37, %39 : vector<512x128xf32>
    %cst_16 = arith.constant dense<0.000000e+00> : vector<512xf32>
    %41 = vector.multi_reduction <add>, %40, %cst_16 [1] : vector<512x128xf32> to vector<512xf32>
    %42 = vector.shape_cast %41 : vector<512xf32> to vector<1x512xf32>
    %c0_17 = arith.constant 0 : index
    %c0_18 = arith.constant 0 : index
    %43 = vector.load %arg7[%c0_17, %c0_18] : memref<1x1xf32, #tpu.memory_space<vmem>>, vector<1x1xf32>
    %44 = vector.broadcast %43 : vector<1x1xf32> to vector<1x512xf32>
    %45 = arith.addf %42, %44 : vector<1x512xf32>
    %c0_19 = arith.constant 0 : index
    %c0_20 = arith.constant 0 : index
    %46 = vector.load %arg8[%c0_19, %c0_20] : memref<1x512xf32, #tpu.memory_space<vmem>>, vector<1x512xf32>
    tpu.vector_store %arg8[%c0_19, %c0_20], %45 {strides = array<i32>} : memref<1x512xf32, #tpu.memory_space<vmem>>, vector<1x512xf32>,
    return
  }
  func.func @transform_0(%arg0: i32) -> (i32, i32) {
    %c0_i32 = arith.constant 0 : i32
    %c0_i32_0 = arith.constant 0 : i32
    return %arg0, %c0_i32 : i32, i32
  }
  func.func @transform_1(%arg0: i32) -> (i32, i32) {
    %c0_i32 = arith.constant 0 : i32
    %c0_i32_0 = arith.constant 0 : i32
    %c0_i32_1 = arith.constant 0 : i32
    return %c0_i32, %c0_i32_0 : i32, i32
  }
  func.func @transform_2(%arg0: i32) -> (i32, i32) {
    %c0_i32 = arith.constant 0 : i32
    %c0_i32_0 = arith.constant 0 : i32
    %c0_i32_1 = arith.constant 0 : i32
    return %c0_i32, %c0_i32_0 : i32, i32
  }
  func.func @transform_3(%arg0: i32) -> (i32, i32) {
    %c0_i32 = arith.constant 0 : i32
    %c0_i32_0 = arith.constant 0 : i32
    %c0_i32_1 = arith.constant 0 : i32
    return %c0_i32, %c0_i32_0 : i32, i32
  }
  func.func @transform_4(%arg0: i32) -> (i32, i32) {
    %c0_i32 = arith.constant 0 : i32
    %c0_i32_0 = arith.constant 0 : i32
    %c0_i32_1 = arith.constant 0 : i32
    return %c0_i32, %c0_i32_0 : i32, i32
  }
  func.func @transform_5(%arg0: i32) -> (i32, i32) {
    %c0_i32 = arith.constant 0 : i32
    %c0_i32_0 = arith.constant 0 : i32
    %c0_i32_1 = arith.constant 0 : i32
    return %c0_i32, %c0_i32_0 : i32, i32
  }
  func.func @transform_6(%arg0: i32) -> (i32, i32) {
    %c0_i32 = arith.constant 0 : i32
    %c0_i32_0 = arith.constant 0 : i32
    %c0_i32_1 = arith.constant 0 : i32
    return %c0_i32, %c0_i32_0 : i32, i32
  }
  func.func @transform_7(%arg0: i32) -> (i32, i32) {
    %c0_i32 = arith.constant 0 : i32
    %c0_i32_0 = arith.constant 0 : i32
    return %arg0, %c0_i32 : i32, i32
  }
}

</mosaic_0001>

<bundles_post_ra>
// kernel: tpu_custom_call.1
= control target key start
LH: loop header
LB: loop body
LE: loop exit
PB: predicated region body
PF: predicated region fallthrough
CT: control target
= control target key end

     0   :  { %s12611_s0 = inlined_call_operand.vmem [shape: f32[2,4], index: 0, kind: input, shape index: {}]   ;;  %s12612_s1 = inlined_call_operand.vmem [shape: f32[4,128], index: 1, kind: input, shape index: {}]   ;;  %s12613_s2 = inlined_call_operand.vmem [shape: f32[1,128], index: 2, kind: input, shape index: {}]   ;;  %s12614_s3 = inlined_call_operand.hbm [shape: bf16[128,128], index: 3, kind: input, shape index: {}]   ;;  %s12615_s4 = inlined_call_operand.vmem [shape: f32[1,128], index: 4, kind: input, shape index: {}]   ;;  %s12616_s5 = inlined_call_operand.vmem [shape: f32[1,128], index: 5, kind: input, shape index: {}]   ;;  %s12617_s6 = inlined_call_operand.<no memory space> [shape: f32[1,1], index: 6, kind: input, shape index: {}]   ;;  %s12618_s7 = inlined_call_operand.hbm [shape: f32[1,512], index: 7, kind: output, shape index: {}]  }
   0x1   :  { %v12_v0 = vstv %s12617_s6 }
   0x2   :  { %13 = vst [vmem:[#allocation2] sm:$0x1] %v12_v0 }
   0x3   :  { %14 = vsyncpa [#allocation4], 0 }
   0x4   :  { %15 = vsyncpa [#allocation5], 0  ;;  %s8594_s26 = smov [#allocation3]   ;;  %s8546_s30 = scalar_lea.hbm %s12614_s3, 1024 }
   0x5   :  { %s27_s27 = sshll.u32 %s8594_s26, 4  ;;  %p8547_p0 = scmp.ne.s32.totalorder %s12614_s3, %s8546_s30  ;;  %s28_s27 = int_to_ptr.vmem [resolvable:$true] %s27_s27 }
   0x6   :  { %p8550_p1 = scmp.lt.u32.totalorder %s8546_s30, %s12614_s3 }
   0x8   :  { %p8552_p2 = pnand %p8550_p1, %p8547_p0 }
   0xa   :  { %8555 = shalt.err (!%p8552_p2)
}
   0xb   :  { %s8556_s6 = scalar_lea.vmem %s28_s27, 1024  ;;  %p8561_p4 = scmp.lt.s32.totalorder %s28_s27, %s28_s27 }
   0xc   :  { %p8557_p3 = scmp.ne.s32.totalorder %s28_s27, %s8556_s6  ;;  %p8562_p5 = scmp.lt.s32.totalorder %s8556_s6, %s8556_s6 }
   0xe   :  { %p8563_p6 = por %p8562_p5, %p8561_p4 }
  0x10   :  { %p8564_p7 = pnand %p8563_p6, %p8557_p3 }
  0x12   :  { %8567 = shalt.err (!%p8564_p7)
}
  0x13   :  { %s8595_s12 = smov 64   ;;  %s8596_s13 = smov 4  }
  0x14   :  { %33 = dma.hbm_to_vmem [thread:$0]  %s12614_s3, 1024, %s28_s27, [#allocation4], %s8595_s12, %s8595_s12, %s8596_s13  }
  0x15   :  { %8590 = dma.done.wait [#allocation4], 1024  }
  0x16   :  { %8591 = vsyncadd [#allocation4], 4294966272  ;;  %v12619_v1 = vmov 0   ;;  %v8663_v2 = vld [vmem:[%s12611_s0 + $0x10] sm:$0xff]  ;;  %v8668_v3 = vld [vmem:[%s12611_s0] sm:$0xff]  ;;  %vm7979_vm0 = vcmask 130112  }
  0x17   :  { %8522 = vset.pattern.permute.xlu1 %v12619_v1  ;;  %8521 = vset.pattern.permute.xlu0 %v12619_v1  ;;  %v8675_v4 = vld [vmem:[%s12611_s0 + $0x18] sm:$0xff]  ;;  %v8680_v5 = vld [vmem:[%s12611_s0 + $0x8] sm:$0xff]  ;;  %v8692_v7 = vld [vmem:[%s12611_s0 + $0x20] sm:$0xff]  ;;  %vm7986_vm1 = vcmask 195712   ;;  %vm7993_vm2 = vcmask 261312   ;;  %vm8000_vm3 = vcmask 326912  }
  0x18   :  { %128 = vperm.xlu1 %8522, %v8663_v2   ;;  %118 = vperm.xlu0 %8521, %v8668_v3   ;;  %v8687_v6 = vld [vmem:[%s12611_s0 + $0x28] sm:$0xff]  ;;  %v8699_v8 = vld [vmem:[%s12611_s0 + $0x38] sm:$0xff]  ;;  %v8704_v9 = vld [vmem:[%s12611_s0 + $0x30] sm:$0xff]  ;;  %vm8007_vm4 = vcmask 392512   ;;  %vm8014_vm5 = vcmask 458112   ;;  %vm8021_vm6 = vcmask 523712  }
  0x19   :  { %v8711_v10 = vld [vmem:[%s12611_s0 + $0x48] sm:$0xff]  ;;  %v8716_v11 = vld [vmem:[%s12611_s0 + $0x40] sm:$0xff]  ;;  %v8723_v12 = vld [vmem:[%s12611_s0 + $0x58] sm:$0xff]  ;;  %vm8028_vm7 = vcmask 589312   ;;  %vm8035_vm8 = vcmask 654912   ;;  %vm8042_vm9 = vcmask 720512  }
  0x1a   :  { %v8728_v13 = vld [vmem:[%s12611_s0 + $0x50] sm:$0xff]  ;;  %v8735_v14 = vld [vmem:[%s12611_s0 + $0x68] sm:$0xff]  ;;  %v8740_v15 = vld [vmem:[%s12611_s0 + $0x60] sm:$0xff]  ;;  %vm8049_vm10 = vcmask 786112   ;;  %vm8056_vm11 = vcmask 851712   ;;  %vm8063_vm12 = vcmask 917312  }
  0x1b   :  { %v8745_v16 = vld [vmem:[%s12611_s0 + $0x78] sm:$0xff]  ;;  %v8750_v17 = vld [vmem:[%s12611_s0 + $0x70] sm:$0xff]  ;;  %v8759_v18 = vld [vmem:[%s12611_s0 + $0x88] sm:$0xff]  ;;  %vm8070_vm13 = vcmask 982912   ;;  %vm8077_vm14 = vcmask 1048512  }
  0x1c   :  { %133 = vperm.xlu1 %8522, %v8675_v4   ;;  %123 = vperm.xlu0 %8521, %v8680_v5   ;;  %v8764_v19 = vld [vmem:[%s12611_s0 + $0x80] sm:$0xff]  ;;  %v8771_v20 = vld [vmem:[%s12611_s0 + $0x98] sm:$0xff]  ;;  %v8776_v21 = vld [vmem:[%s12611_s0 + $0x90] sm:$0xff] }
  0x1d   :  { %v8783_v22 = vld [vmem:[%s12611_s0 + $0xa8] sm:$0xff]  ;;  %v8788_v23 = vld [vmem:[%s12611_s0 + $0xa0] sm:$0xff]  ;;  %v8795_v24 = vld [vmem:[%s12611_s0 + $0xb8] sm:$0xff] }
  0x1e   :  { %v8800_v25 = vld [vmem:[%s12611_s0 + $0xb0] sm:$0xff]  ;;  %v8807_v26 = vld [vmem:[%s12611_s0 + $0xc8] sm:$0xff]  ;;  %v8812_v27 = vld [vmem:[%s12611_s0 + $0xc0] sm:$0xff] }
  0x1f   :  { %v8819_v28 = vld [vmem:[%s12611_s0 + $0xd8] sm:$0xff]  ;;  %v8824_v29 = vld [vmem:[%s12611_s0 + $0xd0] sm:$0xff]  ;;  %v8831_v30 = vld [vmem:[%s12611_s0 + $0xe8] sm:$0xff] }
  0x20   :  { %143 = vperm.xlu1 %8522, %v8687_v6   ;;  %138 = vperm.xlu0 %8521, %v8692_v7   ;;  %v8836_v31 = vld [vmem:[%s12611_s0 + $0xe0] sm:$0xff]  ;;  %v8843_v32 = vld [vmem:[%s12611_s0 + $0xf8] sm:$0xff]  ;;  %v8848_v33 = vld [vmem:[%s12611_s0 + $0xf0] sm:$0xff] }
  0x21   :  { %v8855_v34 = vld [vmem:[%s12611_s0 + $0x108] sm:$0xff]  ;;  %v8860_v35 = vld [vmem:[%s12611_s0 + $0x100] sm:$0xff]  ;;  %v8867_v36 = vld [vmem:[%s12611_s0 + $0x118] sm:$0xff] }
  0x22   :  { %v8872_v37 = vld [vmem:[%s12611_s0 + $0x110] sm:$0xff]  ;;  %v8879_v38 = vld [vmem:[%s12611_s0 + $0x128] sm:$0xff]  ;;  %v8884_v39 = vld [vmem:[%s12611_s0 + $0x120] sm:$0xff] }
  0x23   :  { %v8891_v40 = vld [vmem:[%s12611_s0 + $0x138] sm:$0xff]  ;;  %v8896_v41 = vld [vmem:[%s12611_s0 + $0x130] sm:$0xff]  ;;  %v8903_v42 = vld [vmem:[%s12611_s0 + $0x148] sm:$0xff] }
  0x24   :  { %153 = vperm.xlu1 %8522, %v8699_v8   ;;  %148 = vperm.xlu0 %8521, %v8704_v9   ;;  %v8908_v43 = vld [vmem:[%s12611_s0 + $0x140] sm:$0xff]  ;;  %v8915_v44 = vld [vmem:[%s12611_s0 + $0x158] sm:$0xff]  ;;  %v8920_v45 = vld [vmem:[%s12611_s0 + $0x150] sm:$0xff] }
  0x25   :  { %v8927_v46 = vld [vmem:[%s12611_s0 + $0x168] sm:$0xff]  ;;  %v8932_v47 = vld [vmem:[%s12611_s0 + $0x160] sm:$0xff]  ;;  %v8939_v48 = vld [vmem:[%s12611_s0 + $0x178] sm:$0xff] }
  0x26   :  { %v8944_v49 = vld [vmem:[%s12611_s0 + $0x170] sm:$0xff]  ;;  %v8951_v50 = vld [vmem:[%s12611_s0 + $0x188] sm:$0xff]  ;;  %v8956_v51 = vld [vmem:[%s12611_s0 + $0x180] sm:$0xff] }
  0x27   :  { %12690 = vst [vmem:[#allocation9_spill] sm:$0xff] %v8944_v49  ;;  %12691 = vst [vmem:[#allocation10_spill] sm:$0xff] %v8956_v51  ;;  %v8963_v52 = vld [vmem:[%s12611_s0 + $0x198] sm:$0xff]  ;;  %v8968_v53 = vld [vmem:[%s12611_s0 + $0x190] sm:$0xff] }
  0x28   :  { %163 = vperm.xlu1 %8522, %v8711_v10   ;;  %158 = vperm.xlu0 %8521, %v8716_v11   ;;  %12692 = vst [vmem:[#allocation11_spill] sm:$0xff] %v8963_v52  ;;  %12693 = vst [vmem:[#allocation12_spill] sm:$0xff] %v8968_v53  ;;  %v8975_v54 = vld [vmem:[%s12611_s0 + $0x1a8] sm:$0xff]  ;;  %v8980_v55 = vld [vmem:[%s12611_s0 + $0x1a0] sm:$0xff] }
  0x29   :  { %12694 = vst [vmem:[#allocation13_spill] sm:$0xff] %v8975_v54  ;;  %12695 = vst [vmem:[#allocation14_spill] sm:$0xff] %v8980_v55  ;;  %v8987_v56 = vld [vmem:[%s12611_s0 + $0x1b8] sm:$0xff]  ;;  %v8992_v57 = vld [vmem:[%s12611_s0 + $0x1b0] sm:$0xff] }
  0x2a   :  { %12696 = vst [vmem:[#allocation15_spill] sm:$0xff] %v8987_v56  ;;  %12697 = vst [vmem:[#allocation16_spill] sm:$0xff] %v8992_v57  ;;  %v8999_v58 = vld [vmem:[%s12611_s0 + $0x1c8] sm:$0xff]  ;;  %v9004_v59 = vld [vmem:[%s12611_s0 + $0x1c0] sm:$0xff] }
  0x2b   :  { %12698 = vst [vmem:[#allocation17_spill] sm:$0xff] %v8999_v58  ;;  %12699 = vst [vmem:[#allocation18_spill] sm:$0xff] %v9004_v59  ;;  %v9011_v60 = vld [vmem:[%s12611_s0 + $0x1d8] sm:$0xff]  ;;  %v9016_v61 = vld [vmem:[%s12611_s0 + $0x1d0] sm:$0xff] }
  0x2c   :  { %173 = vperm.xlu1 %8522, %v8723_v12   ;;  %168 = vperm.xlu0 %8521, %v8728_v13   ;;  %12700 = vst [vmem:[#allocation19_spill] sm:$0xff] %v9011_v60  ;;  %12701 = vst [vmem:[#allocation20_spill] sm:$0xff] %v9016_v61  ;;  %v9023_v62 = vld [vmem:[%s12611_s0 + $0x1e8] sm:$0xff]  ;;  %v9028_v63 = vld [vmem:[%s12611_s0 + $0x1e0] sm:$0xff] }
  0x2d   :  { %12702 = vst [vmem:[#allocation21_spill] sm:$0xff] %v9023_v62  ;;  %12703 = vst [vmem:[#allocation22_spill] sm:$0xff] %v9028_v63  ;;  %v9035_v0 = vld [vmem:[%s12611_s0 + $0x1f8] sm:$0xff]  ;;  %v9040_v1 = vld [vmem:[%s12611_s0 + $0x1f0] sm:$0xff] }
  0x2e   :  { %12704 = vst [vmem:[#allocation23_spill] sm:$0xff] %v9035_v0 }
  0x30   :  { %183 = vperm.xlu1 %8522, %v8735_v14   ;;  %178 = vperm.xlu0 %8521, %v8740_v15  }
  0x34   :  { %193 = vperm.xlu1 %8522, %v8745_v16   ;;  %188 = vperm.xlu0 %8521, %v8750_v17  }
  0x38   :  { %203 = vperm.xlu1 %8522, %v8759_v18   ;;  %198 = vperm.xlu0 %8521, %v8764_v19  }
  0x3c   :  { %213 = vperm.xlu1 %8522, %v8771_v20   ;;  %208 = vperm.xlu0 %8521, %v8776_v21  }
  0x40   :  { %223 = vperm.xlu1 %8522, %v8783_v22   ;;  %218 = vperm.xlu0 %8521, %v8788_v23  }
  0x44   :  { %233 = vperm.xlu1 %8522, %v8795_v24   ;;  %228 = vperm.xlu0 %8521, %v8800_v25  }
  0x48   :  { %243 = vperm.xlu1 %8522, %v8807_v26   ;;  %238 = vperm.xlu0 %8521, %v8812_v27  }
  0x4c   :  { %253 = vperm.xlu1 %8522, %v8819_v28   ;;  %248 = vperm.xlu0 %8521, %v8824_v29  }
  0x50   :  { %263 = vperm.xlu1 %8522, %v8831_v30   ;;  %258 = vperm.xlu0 %8521, %v8836_v31  }
  0x54   :  { %273 = vperm.xlu1 %8522, %v8843_v32   ;;  %268 = vperm.xlu0 %8521, %v8848_v33  }
  0x58   :  { %283 = vperm.xlu1 %8522, %v8855_v34   ;;  %278 = vperm.xlu0 %8521, %v8860_v35  }
  0x5c   :  { %293 = vperm.xlu1 %8522, %v8867_v36   ;;  %288 = vperm.xlu0 %8521, %v8872_v37  }
  0x60   :  { %303 = vperm.xlu1 %8522, %v8879_v38   ;;  %298 = vperm.xlu0 %8521, %v8884_v39  }
  0x64   :  { %313 = vperm.xlu1 %8522, %v8891_v40   ;;  %308 = vperm.xlu0 %8521, %v8896_v41  }
  0x68   :  { %323 = vperm.xlu1 %8522, %v8903_v42   ;;  %318 = vperm.xlu0 %8521, %v8908_v43  }
  0x6c   :  { %333 = vperm.xlu1 %8522, %v8915_v44   ;;  %328 = vperm.xlu0 %8521, %v8920_v45  }
  0x70   :  { %343 = vperm.xlu1 %8522, %v8927_v46   ;;  %338 = vperm.xlu0 %8521, %v8932_v47  }
  0x74   :  { %353 = vperm.xlu1 %8522, %v8939_v48   ;;  %348 = vperm.xlu0 %8521, %v8944_v49  }
  0x78   :  { %363 = vperm.xlu1 %8522, %v8951_v50   ;;  %358 = vperm.xlu0 %8521, %v8956_v51  }
  0x7c   :  { %373 = vperm.xlu1 %8522, %v8963_v52   ;;  %368 = vperm.xlu0 %8521, %v8968_v53  }
  0x80   :  { %383 = vperm.xlu1 %8522, %v8975_v54   ;;  %378 = vperm.xlu0 %8521, %v8980_v55  }
  0x84   :  { %393 = vperm.xlu1 %8522, %v8987_v56   ;;  %388 = vperm.xlu0 %8521, %v8992_v57  }
  0x88   :  { %403 = vperm.xlu1 %8522, %v8999_v58   ;;  %398 = vperm.xlu0 %8521, %v9004_v59  }
  0x8c   :  { %413 = vperm.xlu1 %8522, %v9011_v60   ;;  %408 = vperm.xlu0 %8521, %v9016_v61  }
  0x90   :  { %423 = vperm.xlu1 %8522, %v9023_v62   ;;  %418 = vperm.xlu0 %8521, %v9028_v63   ;;  %v8598_v62 = vmov 1  }
  0x94   :  { %433 = vperm.xlu1 %8522, %v9035_v0   ;;  %428 = vperm.xlu0 %8521, %v9040_v1  }
  0x97   :  { %v9044_v60 = vpop.permute.xlu1 %128  ;;  %v9046_v61 = vpop.permute.xlu0 %118 }
  0x98   :  { %12705 = vst [vmem:[#allocation24_spill] sm:$0xff] %v9044_v60  ;;  %12706 = vst [vmem:[#allocation25_spill] sm:$0xff] %v9046_v61  ;;  %8524 = vset.pattern.permute.xlu1 %v8598_v62  ;;  %8523 = vset.pattern.permute.xlu0 %v8598_v62 }
  0x99   :  { %574 = vperm.xlu1 %8524, %v8680_v5   ;;  %570 = vperm.xlu0 %8523, %v8668_v3  }
  0x9b   :  { %v9050_v63 = vpop.permute.xlu1 %133  ;;  %v9052_v58 = vpop.permute.xlu0 %123 }
  0x9c   :  { %12707 = vst [vmem:[#allocation26_spill] sm:$0xff] %v9050_v63  ;;  %12708 = vst [vmem:[#allocation27_spill] sm:$0xff] %v9052_v58 }
  0x9d   :  { %578 = vperm.xlu1 %8524, %v8663_v2   ;;  %582 = vperm.xlu0 %8523, %v8675_v4  }
  0x9f   :  { %v9056_v0 = vpop.permute.xlu1 %143  ;;  %v9058_v60 = vpop.permute.xlu0 %138 }
  0xa0   :  { %12709 = vst [vmem:[#allocation28_spill] sm:$0xff] %v9056_v0  ;;  %12710 = vst [vmem:[#allocation29_spill] sm:$0xff] %v9058_v60 }
  0xa1   :  { %586 = vperm.xlu1 %8524, %v8692_v7   ;;  %590 = vperm.xlu0 %8523, %v8687_v6  }
  0xa3   :  { %v9062_v62 = vpop.permute.xlu1 %153  ;;  %v9064_v61 = vpop.permute.xlu0 %148 }
  0xa4   :  { %12711 = vst [vmem:[#allocation30_spill] sm:$0xff] %v9062_v62  ;;  %12712 = vst [vmem:[#allocation31_spill] sm:$0xff] %v9064_v61 }
  0xa5   :  { %594 = vperm.xlu1 %8524, %v8704_v9   ;;  %598 = vperm.xlu0 %8523, %v8699_v8  }
  0xa7   :  { %v9068_v58 = vpop.permute.xlu1 %163  ;;  %v9070_v63 = vpop.permute.xlu0 %158 }
  0xa8   :  { %12713 = vst [vmem:[#allocation32_spill] sm:$0xff] %v9068_v58  ;;  %12714 = vst [vmem:[#allocation33_spill] sm:$0xff] %v9070_v63 }
  0xa9   :  { %602 = vperm.xlu1 %8524, %v8716_v11   ;;  %606 = vperm.xlu0 %8523, %v8711_v10  }
  0xab   :  { %v9074_v60 = vpop.permute.xlu1 %173  ;;  %v9076_v0 = vpop.permute.xlu0 %168 }
  0xac   :  { %12715 = vst [vmem:[#allocation34_spill] sm:$0xff] %v9074_v60  ;;  %12716 = vst [vmem:[#allocation35_spill] sm:$0xff] %v9076_v0 }
  0xad   :  { %610 = vperm.xlu1 %8524, %v8728_v13   ;;  %614 = vperm.xlu0 %8523, %v8723_v12  }
  0xaf   :  { %v9080_v61 = vpop.permute.xlu1 %183  ;;  %v9082_v62 = vpop.permute.xlu0 %178 }
  0xb0   :  { %12717 = vst [vmem:[#allocation36_spill] sm:$0xff] %v9080_v61  ;;  %12718 = vst [vmem:[#allocation37_spill] sm:$0xff] %v9082_v62 }
  0xb1   :  { %618 = vperm.xlu1 %8524, %v8740_v15   ;;  %622 = vperm.xlu0 %8523, %v8735_v14  }
  0xb3   :  { %v9086_v63 = vpop.permute.xlu1 %193  ;;  %v9088_v58 = vpop.permute.xlu0 %188 }
  0xb4   :  { %12719 = vst [vmem:[#allocation38_spill] sm:$0xff] %v9086_v63  ;;  %12720 = vst [vmem:[#allocation39_spill] sm:$0xff] %v9088_v58 }
  0xb5   :  { %626 = vperm.xlu1 %8524, %v8750_v17   ;;  %630 = vperm.xlu0 %8523, %v8745_v16  }
  0xb7   :  { %v9092_v0 = vpop.permute.xlu1 %203  ;;  %v9094_v60 = vpop.permute.xlu0 %198 }
  0xb8   :  { %12721 = vst [vmem:[#allocation40_spill] sm:$0xff] %v9092_v0  ;;  %12722 = vst [vmem:[#allocation41_spill] sm:$0xff] %v9094_v60 }
  0xb9   :  { %634 = vperm.xlu1 %8524, %v8764_v19   ;;  %638 = vperm.xlu0 %8523, %v8759_v18  }
  0xbb   :  { %v9098_v62 = vpop.permute.xlu1 %213  ;;  %v9100_v61 = vpop.permute.xlu0 %208 }
  0xbc   :  { %12723 = vst [vmem:[#allocation42_spill] sm:$0xff] %v9098_v62  ;;  %12724 = vst [vmem:[#allocation43_spill] sm:$0xff] %v9100_v61 }
  0xbd   :  { %642 = vperm.xlu1 %8524, %v8776_v21   ;;  %646 = vperm.xlu0 %8523, %v8771_v20  }
  0xbf   :  { %v9104_v58 = vpop.permute.xlu1 %223  ;;  %v9106_v63 = vpop.permute.xlu0 %218 }
  0xc0   :  { %12725 = vst [vmem:[#allocation44_spill] sm:$0xff] %v9104_v58  ;;  %12726 = vst [vmem:[#allocation45_spill] sm:$0xff] %v9106_v63 }
  0xc1   :  { %650 = vperm.xlu1 %8524, %v8788_v23   ;;  %654 = vperm.xlu0 %8523, %v8783_v22  }
  0xc3   :  { %v9110_v60 = vpop.permute.xlu1 %233  ;;  %v9112_v0 = vpop.permute.xlu0 %228 }
  0xc4   :  { %12727 = vst [vmem:[#allocation46_spill] sm:$0xff] %v9110_v60  ;;  %12728 = vst [vmem:[#allocation47_spill] sm:$0xff] %v9112_v0 }
  0xc5   :  { %658 = vperm.xlu1 %8524, %v8800_v25   ;;  %662 = vperm.xlu0 %8523, %v8795_v24  }
  0xc7   :  { %v9116_v61 = vpop.permute.xlu1 %243  ;;  %v9118_v62 = vpop.permute.xlu0 %238 }
  0xc8   :  { %12729 = vst [vmem:[#allocation48_spill] sm:$0xff] %v9116_v61  ;;  %12730 = vst [vmem:[#allocation49_spill] sm:$0xff] %v9118_v62 }
  0xc9   :  { %666 = vperm.xlu1 %8524, %v8812_v27   ;;  %670 = vperm.xlu0 %8523, %v8807_v26  }
  0xcb   :  { %v9122_v63 = vpop.permute.xlu1 %253  ;;  %v9124_v58 = vpop.permute.xlu0 %248 }
  0xcc   :  { %12731 = vst [vmem:[#allocation50_spill] sm:$0xff] %v9122_v63  ;;  %12732 = vst [vmem:[#allocation51_spill] sm:$0xff] %v9124_v58 }
  0xcd   :  { %674 = vperm.xlu1 %8524, %v8824_v29   ;;  %678 = vperm.xlu0 %8523, %v8819_v28  }
  0xcf   :  { %v9128_v0 = vpop.permute.xlu1 %263  ;;  %v9130_v60 = vpop.permute.xlu0 %258 }
  0xd0   :  { %12733 = vst [vmem:[#allocation52_spill] sm:$0xff] %v9128_v0  ;;  %12734 = vst [vmem:[#allocation53_spill] sm:$0xff] %v9130_v60 }
  0xd1   :  { %682 = vperm.xlu1 %8524, %v8836_v31   ;;  %686 = vperm.xlu0 %8523, %v8831_v30  }
  0xd3   :  { %v9134_v62 = vpop.permute.xlu1 %273  ;;  %v9136_v61 = vpop.permute.xlu0 %268 }
  0xd4   :  { %12735 = vst [vmem:[#allocation54_spill] sm:$0xff] %v9134_v62  ;;  %12736 = vst [vmem:[#allocation55_spill] sm:$0xff] %v9136_v61 }
  0xd5   :  { %690 = vperm.xlu1 %8524, %v8848_v33   ;;  %694 = vperm.xlu0 %8523, %v8843_v32  }
  0xd7   :  { %v9140_v58 = vpop.permute.xlu1 %283  ;;  %v9142_v63 = vpop.permute.xlu0 %278 }
  0xd8   :  { %12737 = vst [vmem:[#allocation56_spill] sm:$0xff] %v9140_v58  ;;  %12738 = vst [vmem:[#allocation57_spill] sm:$0xff] %v9142_v63 }
  0xd9   :  { %698 = vperm.xlu1 %8524, %v8860_v35   ;;  %702 = vperm.xlu0 %8523, %v8855_v34  }
  0xdb   :  { %v9146_v60 = vpop.permute.xlu1 %293  ;;  %v9148_v0 = vpop.permute.xlu0 %288 }
  0xdc   :  { %12739 = vst [vmem:[#allocation58_spill] sm:$0xff] %v9146_v60  ;;  %12740 = vst [vmem:[#allocation59_spill] sm:$0xff] %v9148_v0 }
  0xdd   :  { %706 = vperm.xlu1 %8524, %v8872_v37   ;;  %710 = vperm.xlu0 %8523, %v8867_v36  }
  0xdf   :  { %v9152_v61 = vpop.permute.xlu1 %303  ;;  %v9154_v62 = vpop.permute.xlu0 %298 }
  0xe0   :  { %12741 = vst [vmem:[#allocation60_spill] sm:$0xff] %v9152_v61  ;;  %12742 = vst [vmem:[#allocation61_spill] sm:$0xff] %v9154_v62 }
  0xe1   :  { %714 = vperm.xlu1 %8524, %v8884_v39   ;;  %718 = vperm.xlu0 %8523, %v8879_v38  }
  0xe3   :  { %v9158_v63 = vpop.permute.xlu1 %313  ;;  %v9160_v58 = vpop.permute.xlu0 %308 }
  0xe4   :  { %12743 = vst [vmem:[#allocation62_spill] sm:$0xff] %v9158_v63  ;;  %12744 = vst [vmem:[#allocation63_spill] sm:$0xff] %v9160_v58 }
  0xe5   :  { %722 = vperm.xlu1 %8524, %v8896_v41   ;;  %726 = vperm.xlu0 %8523, %v8891_v40  }
  0xe7   :  { %v9164_v0 = vpop.permute.xlu1 %323  ;;  %v9166_v60 = vpop.permute.xlu0 %318 }
  0xe8   :  { %12745 = vst [vmem:[#allocation64_spill] sm:$0xff] %v9164_v0  ;;  %12746 = vst [vmem:[#allocation65_spill] sm:$0xff] %v9166_v60 }
  0xe9   :  { %730 = vperm.xlu1 %8524, %v8908_v43   ;;  %734 = vperm.xlu0 %8523, %v8903_v42  }
  0xeb   :  { %v9170_v62 = vpop.permute.xlu1 %333  ;;  %v9172_v61 = vpop.permute.xlu0 %328 }
  0xec   :  { %12747 = vst [vmem:[#allocation66_spill] sm:$0xff] %v9170_v62  ;;  %12748 = vst [vmem:[#allocation67_spill] sm:$0xff] %v9172_v61 }
  0xed   :  { %738 = vperm.xlu1 %8524, %v8920_v45   ;;  %742 = vperm.xlu0 %8523, %v8915_v44  }
  0xef   :  { %v9176_v58 = vpop.permute.xlu1 %343  ;;  %v9178_v63 = vpop.permute.xlu0 %338 }
  0xf0   :  { %12749 = vst [vmem:[#allocation68_spill] sm:$0xff] %v9176_v58  ;;  %12750 = vst [vmem:[#allocation69_spill] sm:$0xff] %v9178_v63 }
  0xf1   :  { %746 = vperm.xlu1 %8524, %v8932_v47   ;;  %750 = vperm.xlu0 %8523, %v8927_v46  }
  0xf3   :  { %v9182_v60 = vpop.permute.xlu1 %353  ;;  %v9184_v0 = vpop.permute.xlu0 %348 }
  0xf4   :  { %12751 = vst [vmem:[#allocation70_spill] sm:$0xff] %v9182_v60  ;;  %12752 = vst [vmem:[#allocation71_spill] sm:$0xff] %v9184_v0 }
  0xf5   :  { %754 = vperm.xlu1 %8524, %v8944_v49   ;;  %758 = vperm.xlu0 %8523, %v8939_v48  }
  0xf7   :  { %v9188_v61 = vpop.permute.xlu1 %363  ;;  %v9190_v62 = vpop.permute.xlu0 %358 }
  0xf8   :  { %12753 = vst [vmem:[#allocation72_spill] sm:$0xff] %v9188_v61  ;;  %12754 = vst [vmem:[#allocation73_spill] sm:$0xff] %v9190_v62 }
  0xf9   :  { %762 = vperm.xlu1 %8524, %v8956_v51   ;;  %766 = vperm.xlu0 %8523, %v8951_v50  }
  0xfb   :  { %v9194_v63 = vpop.permute.xlu1 %373  ;;  %v9196_v58 = vpop.permute.xlu0 %368 }
  0xfc   :  { %12755 = vst [vmem:[#allocation74_spill] sm:$0xff] %v9194_v63  ;;  %12756 = vst [vmem:[#allocation75_spill] sm:$0xff] %v9196_v58 }
  0xfd   :  { %770 = vperm.xlu1 %8524, %v8968_v53   ;;  %774 = vperm.xlu0 %8523, %v8963_v52  }
  0xff   :  { %v9200_v0 = vpop.permute.xlu1 %383  ;;  %v9202_v60 = vpop.permute.xlu0 %378 }
 0x100   :  { %12757 = vst [vmem:[#allocation76_spill] sm:$0xff] %v9200_v0  ;;  %12758 = vst [vmem:[#allocation77_spill] sm:$0xff] %v9202_v60  ;;  %v12763_v0 = vld [vmem:[#allocation17_spill] sm:$0xff] }
 0x101   :  { %778 = vperm.xlu1 %8524, %v8980_v55   ;;  %782 = vperm.xlu0 %8523, %v8975_v54   ;;  %v12766_v54 = vld [vmem:[#allocation20_spill] sm:$0xff] }
 0x103   :  { %v9206_v62 = vpop.permute.xlu1 %393  ;;  %v9208_v61 = vpop.permute.xlu0 %388 }
 0x104   :  { %12759 = vst [vmem:[#allocation78_spill] sm:$0xff] %v9206_v62  ;;  %12760 = vst [vmem:[#allocation79_spill] sm:$0xff] %v9208_v61  ;;  %v12767_v62 = vld [vmem:[#allocation19_spill] sm:$0xff] }
 0x105   :  { %786 = vperm.xlu1 %8524, %v8992_v57   ;;  %790 = vperm.xlu0 %8523, %v8987_v56   ;;  %v12770_v56 = vld [vmem:[#allocation22_spill] sm:$0xff] }
 0x107   :  { %v9212_v58 = vpop.permute.xlu1 %403  ;;  %v9214_v63 = vpop.permute.xlu0 %398 }
 0x108   :  { %12761 = vst [vmem:[#allocation80_spill] sm:$0xff] %v9212_v58  ;;  %12762 = vst [vmem:[#allocation81_spill] sm:$0xff] %v9214_v63  ;;  %v12771_v58 = vld [vmem:[#allocation21_spill] sm:$0xff] }
 0x109   :  { %794 = vperm.xlu1 %8524, %v9004_v59   ;;  %798 = vperm.xlu0 %8523, %v12763_v0  }
 0x10b   :  { %v9218_v60 = vpop.permute.xlu1 %413  ;;  %v9220_v52 = vpop.permute.xlu0 %408 }
 0x10c   :  { %12764 = vst [vmem:[#allocation82_spill] sm:$0xff] %v9218_v60  ;;  %12765 = vst [vmem:[#allocation83_spill] sm:$0xff] %v9220_v52  ;;  %v12774_v60 = vld [vmem:[#allocation23_spill] sm:$0xff] }
 0x10d   :  { %802 = vperm.xlu1 %8524, %v12766_v54   ;;  %806 = vperm.xlu0 %8523, %v12767_v62   ;;  %v8599_v62 = vmov 2  }
 0x10f   :  { %v9224_v61 = vpop.permute.xlu1 %423  ;;  %v9226_v57 = vpop.permute.xlu0 %418 }
 0x110   :  { %12768 = vst [vmem:[#allocation84_spill] sm:$0xff] %v9224_v61  ;;  %12769 = vst [vmem:[#allocation85_spill] sm:$0xff] %v9226_v57 }
 0x111   :  { %810 = vperm.xlu1 %8524, %v12770_v56   ;;  %814 = vperm.xlu0 %8523, %v12771_v58  }
 0x113   :  { %v9230_v63 = vpop.permute.xlu1 %433  ;;  %v9232_v59 = vpop.permute.xlu0 %428 }
 0x114   :  { %12772 = vst [vmem:[#allocation22_spill] sm:$0xff] %v9230_v63  ;;  %12773 = vst [vmem:[#allocation21_spill] sm:$0xff] %v9232_v59 }
 0x115   :  { %818 = vperm.xlu1 %8524, %v9040_v1   ;;  %822 = vperm.xlu0 %8523, %v12774_v60  }
 0x118   :  { %v9236_v52 = vpop.permute.xlu1 %574  ;;  %v9238_v0 = vpop.permute.xlu0 %570 }
 0x119   :  { %12775 = vst [vmem:[#allocation23_spill] sm:$0xff] %v9236_v52  ;;  %12776 = vst [vmem:[#allocation86_spill] sm:$0xff] %v9238_v0  ;;  %8525 = vset.pattern.permute.xlu1 %v8599_v62  ;;  %8526 = vset.pattern.permute.xlu0 %v8599_v62  ;;  %v12829_v0 = vld [vmem:[#allocation11_spill] sm:$0xff] }
 0x11a   :  { %959 = vperm.xlu1 %8525, %v8668_v3   ;;  %963 = vperm.xlu0 %8526, %v8680_v5  }
 0x11c   :  { %v9242_v57 = vpop.permute.xlu1 %578  ;;  %v9244_v63 = vpop.permute.xlu0 %582 }
 0x11d   :  { %12777 = vst [vmem:[#allocation87_spill] sm:$0xff] %v9242_v57  ;;  %12778 = vst [vmem:[#allocation88_spill] sm:$0xff] %v9244_v63 }
 0x11e   :  { %967 = vperm.xlu1 %8525, %v8663_v2   ;;  %975 = vperm.xlu0 %8526, %v8692_v7  }
 0x120   :  { %v9248_v59 = vpop.permute.xlu1 %586  ;;  %v9250_v61 = vpop.permute.xlu0 %590 }
 0x121   :  { %12779 = vst [vmem:[#allocation89_spill] sm:$0xff] %v9248_v59  ;;  %12780 = vst [vmem:[#allocation90_spill] sm:$0xff] %v9250_v61 }
 0x122   :  { %971 = vperm.xlu1 %8525, %v8675_v4   ;;  %983 = vperm.xlu0 %8526, %v8704_v9  }
 0x124   :  { %v9254_v62 = vpop.permute.xlu1 %594  ;;  %v9256_v52 = vpop.permute.xlu0 %598 }
 0x125   :  { %12781 = vst [vmem:[#allocation91_spill] sm:$0xff] %v9254_v62  ;;  %12782 = vst [vmem:[#allocation92_spill] sm:$0xff] %v9256_v52 }
 0x126   :  { %979 = vperm.xlu1 %8525, %v8687_v6   ;;  %991 = vperm.xlu0 %8526, %v8716_v11  }
 0x128   :  { %v9260_v57 = vpop.permute.xlu1 %602  ;;  %v9262_v63 = vpop.permute.xlu0 %606 }
 0x129   :  { %12783 = vst [vmem:[#allocation93_spill] sm:$0xff] %v9260_v57  ;;  %12784 = vst [vmem:[#allocation94_spill] sm:$0xff] %v9262_v63 }
 0x12a   :  { %987 = vperm.xlu1 %8525, %v8699_v8   ;;  %999 = vperm.xlu0 %8526, %v8728_v13  }
 0x12c   :  { %v9266_v59 = vpop.permute.xlu1 %610  ;;  %v9268_v61 = vpop.permute.xlu0 %614 }
 0x12d   :  { %12785 = vst [vmem:[#allocation95_spill] sm:$0xff] %v9266_v59  ;;  %12786 = vst [vmem:[#allocation96_spill] sm:$0xff] %v9268_v61 }
 0x12e   :  { %995 = vperm.xlu1 %8525, %v8711_v10   ;;  %1007 = vperm.xlu0 %8526, %v8740_v15  }
 0x130   :  { %v9272_v62 = vpop.permute.xlu1 %618  ;;  %v9274_v52 = vpop.permute.xlu0 %622 }
 0x131   :  { %12787 = vst [vmem:[#allocation97_spill] sm:$0xff] %v9272_v62  ;;  %12788 = vst [vmem:[#allocation98_spill] sm:$0xff] %v9274_v52 }
 0x132   :  { %1003 = vperm.xlu1 %8525, %v8723_v12   ;;  %1015 = vperm.xlu0 %8526, %v8750_v17  }
 0x134   :  { %v9278_v57 = vpop.permute.xlu1 %626  ;;  %v9280_v63 = vpop.permute.xlu0 %630 }
 0x135   :  { %12789 = vst [vmem:[#allocation99_spill] sm:$0xff] %v9278_v57  ;;  %12790 = vst [vmem:[#allocation100_spill] sm:$0xff] %v9280_v63 }
 0x136   :  { %1011 = vperm.xlu1 %8525, %v8735_v14   ;;  %1023 = vperm.xlu0 %8526, %v8764_v19  }
 0x138   :  { %v9284_v59 = vpop.permute.xlu1 %634  ;;  %v9286_v61 = vpop.permute.xlu0 %638 }
 0x139   :  { %12791 = vst [vmem:[#allocation101_spill] sm:$0xff] %v9284_v59  ;;  %12792 = vst [vmem:[#allocation102_spill] sm:$0xff] %v9286_v61 }
 0x13a   :  { %1019 = vperm.xlu1 %8525, %v8745_v16   ;;  %1031 = vperm.xlu0 %8526, %v8776_v21  }
 0x13c   :  { %v9290_v62 = vpop.permute.xlu1 %642  ;;  %v9292_v52 = vpop.permute.xlu0 %646 }
 0x13d   :  { %12793 = vst [vmem:[#allocation103_spill] sm:$0xff] %v9290_v62  ;;  %12794 = vst [vmem:[#allocation104_spill] sm:$0xff] %v9292_v52 }
 0x13e   :  { %1027 = vperm.xlu1 %8525, %v8759_v18   ;;  %1039 = vperm.xlu0 %8526, %v8788_v23  }
 0x140   :  { %v9296_v57 = vpop.permute.xlu1 %650  ;;  %v9298_v63 = vpop.permute.xlu0 %654 }
 0x141   :  { %12795 = vst [vmem:[#allocation105_spill] sm:$0xff] %v9296_v57  ;;  %12796 = vst [vmem:[#allocation106_spill] sm:$0xff] %v9298_v63 }
 0x142   :  { %1035 = vperm.xlu1 %8525, %v8771_v20   ;;  %1047 = vperm.xlu0 %8526, %v8800_v25  }
 0x144   :  { %v9302_v59 = vpop.permute.xlu1 %658  ;;  %v9304_v61 = vpop.permute.xlu0 %662 }
 0x145   :  { %12797 = vst [vmem:[#allocation107_spill] sm:$0xff] %v9302_v59  ;;  %12798 = vst [vmem:[#allocation108_spill] sm:$0xff] %v9304_v61 }
 0x146   :  { %1043 = vperm.xlu1 %8525, %v8783_v22   ;;  %1055 = vperm.xlu0 %8526, %v8812_v27  }
 0x148   :  { %v9308_v62 = vpop.permute.xlu1 %666  ;;  %v9310_v52 = vpop.permute.xlu0 %670 }
 0x149   :  { %12799 = vst [vmem:[#allocation109_spill] sm:$0xff] %v9308_v62  ;;  %12800 = vst [vmem:[#allocation110_spill] sm:$0xff] %v9310_v52 }
 0x14a   :  { %1051 = vperm.xlu1 %8525, %v8795_v24   ;;  %1063 = vperm.xlu0 %8526, %v8824_v29  }
 0x14c   :  { %v9314_v57 = vpop.permute.xlu1 %674  ;;  %v9316_v63 = vpop.permute.xlu0 %678 }
 0x14d   :  { %12801 = vst [vmem:[#allocation111_spill] sm:$0xff] %v9314_v57  ;;  %12802 = vst [vmem:[#allocation112_spill] sm:$0xff] %v9316_v63 }
 0x14e   :  { %1059 = vperm.xlu1 %8525, %v8807_v26   ;;  %1071 = vperm.xlu0 %8526, %v8836_v31  }
 0x150   :  { %v9320_v59 = vpop.permute.xlu1 %682  ;;  %v9322_v61 = vpop.permute.xlu0 %686 }
 0x151   :  { %12803 = vst [vmem:[#allocation113_spill] sm:$0xff] %v9320_v59  ;;  %12804 = vst [vmem:[#allocation114_spill] sm:$0xff] %v9322_v61 }
 0x152   :  { %1067 = vperm.xlu1 %8525, %v8819_v28   ;;  %1079 = vperm.xlu0 %8526, %v8848_v33  }
 0x154   :  { %v9326_v62 = vpop.permute.xlu1 %690  ;;  %v9328_v52 = vpop.permute.xlu0 %694 }
 0x155   :  { %12805 = vst [vmem:[#allocation115_spill] sm:$0xff] %v9326_v62  ;;  %12806 = vst [vmem:[#allocation116_spill] sm:$0xff] %v9328_v52 }
 0x156   :  { %1075 = vperm.xlu1 %8525, %v8831_v30   ;;  %1087 = vperm.xlu0 %8526, %v8860_v35  }
 0x158   :  { %v9332_v57 = vpop.permute.xlu1 %698  ;;  %v9334_v63 = vpop.permute.xlu0 %702 }
 0x159   :  { %12807 = vst [vmem:[#allocation117_spill] sm:$0xff] %v9332_v57  ;;  %12808 = vst [vmem:[#allocation118_spill] sm:$0xff] %v9334_v63 }
 0x15a   :  { %1083 = vperm.xlu1 %8525, %v8843_v32   ;;  %1095 = vperm.xlu0 %8526, %v8872_v37  }
 0x15c   :  { %v9338_v59 = vpop.permute.xlu1 %706  ;;  %v9340_v61 = vpop.permute.xlu0 %710 }
 0x15d   :  { %12809 = vst [vmem:[#allocation119_spill] sm:$0xff] %v9338_v59  ;;  %12810 = vst [vmem:[#allocation120_spill] sm:$0xff] %v9340_v61 }
 0x15e   :  { %1091 = vperm.xlu1 %8525, %v8855_v34   ;;  %1103 = vperm.xlu0 %8526, %v8884_v39  }
 0x160   :  { %v9344_v62 = vpop.permute.xlu1 %714  ;;  %v9346_v52 = vpop.permute.xlu0 %718 }
 0x161   :  { %12811 = vst [vmem:[#allocation121_spill] sm:$0xff] %v9344_v62  ;;  %12812 = vst [vmem:[#allocation122_spill] sm:$0xff] %v9346_v52 }
 0x162   :  { %1099 = vperm.xlu1 %8525, %v8867_v36   ;;  %1111 = vperm.xlu0 %8526, %v8896_v41  }
 0x164   :  { %v9350_v57 = vpop.permute.xlu1 %722  ;;  %v9352_v63 = vpop.permute.xlu0 %726 }
 0x165   :  { %12813 = vst [vmem:[#allocation123_spill] sm:$0xff] %v9350_v57  ;;  %12814 = vst [vmem:[#allocation124_spill] sm:$0xff] %v9352_v63 }
 0x166   :  { %1107 = vperm.xlu1 %8525, %v8879_v38   ;;  %1119 = vperm.xlu0 %8526, %v8908_v43  }
 0x168   :  { %v9356_v59 = vpop.permute.xlu1 %730  ;;  %v9358_v61 = vpop.permute.xlu0 %734 }
 0x169   :  { %12815 = vst [vmem:[#allocation125_spill] sm:$0xff] %v9356_v59  ;;  %12816 = vst [vmem:[#allocation126_spill] sm:$0xff] %v9358_v61 }
 0x16a   :  { %1115 = vperm.xlu1 %8525, %v8891_v40   ;;  %1127 = vperm.xlu0 %8526, %v8920_v45  }
 0x16c   :  { %v9362_v62 = vpop.permute.xlu1 %738  ;;  %v9364_v52 = vpop.permute.xlu0 %742 }
 0x16d   :  { %12817 = vst [vmem:[#allocation127_spill] sm:$0xff] %v9362_v62  ;;  %12818 = vst [vmem:[#allocation128_spill] sm:$0xff] %v9364_v52 }
 0x16e   :  { %1123 = vperm.xlu1 %8525, %v8903_v42   ;;  %1135 = vperm.xlu0 %8526, %v8932_v47  }
 0x170   :  { %v9368_v57 = vpop.permute.xlu1 %746  ;;  %v9370_v63 = vpop.permute.xlu0 %750 }
 0x171   :  { %12819 = vst [vmem:[#allocation129_spill] sm:$0xff] %v9368_v57  ;;  %12820 = vst [vmem:[#allocation130_spill] sm:$0xff] %v9370_v63 }
 0x172   :  { %1131 = vperm.xlu1 %8525, %v8915_v44   ;;  %1143 = vperm.xlu0 %8526, %v8944_v49  }
 0x174   :  { %v9374_v59 = vpop.permute.xlu1 %754  ;;  %v9376_v61 = vpop.permute.xlu0 %758 }
 0x175   :  { %12821 = vst [vmem:[#allocation131_spill] sm:$0xff] %v9374_v59  ;;  %12822 = vst [vmem:[#allocation132_spill] sm:$0xff] %v9376_v61 }
 0x176   :  { %1139 = vperm.xlu1 %8525, %v8927_v46   ;;  %1151 = vperm.xlu0 %8526, %v8956_v51  }
 0x178   :  { %v9380_v62 = vpop.permute.xlu1 %762  ;;  %v9382_v52 = vpop.permute.xlu0 %766 }
 0x179   :  { %12823 = vst [vmem:[#allocation133_spill] sm:$0xff] %v9380_v62  ;;  %12824 = vst [vmem:[#allocation134_spill] sm:$0xff] %v9382_v52  ;;  %v12830_v62 = vld [vmem:[#allocation16_spill] sm:$0xff] }
 0x17a   :  { %1147 = vperm.xlu1 %8525, %v8939_v48   ;;  %1159 = vperm.xlu0 %8526, %v8968_v53   ;;  %v12833_v53 = vld [vmem:[#allocation13_spill] sm:$0xff] }
 0x17c   :  { %v9386_v57 = vpop.permute.xlu1 %770  ;;  %v9388_v63 = vpop.permute.xlu0 %774 }
 0x17d   :  { %12825 = vst [vmem:[#allocation135_spill] sm:$0xff] %v9386_v57  ;;  %12826 = vst [vmem:[#allocation136_spill] sm:$0xff] %v9388_v63  ;;  %v12834_v57 = vld [vmem:[#allocation18_spill] sm:$0xff] }
 0x17e   :  { %1155 = vperm.xlu1 %8525, %v8951_v50   ;;  %1167 = vperm.xlu0 %8526, %v8980_v55   ;;  %v8531_v55 = vld [vmem:[#allocation3] sm:$0xff]  }
 0x17f   :  { %8416 = vmatprep.subr.bf16.mxu0 %v8531_v55  ;;  %8496 = vmatprep.subr.bf16.mxu1 %v8531_v55 }
 0x180   :  { %v9392_v59 = vpop.permute.xlu1 %778  ;;  %v9394_v61 = vpop.permute.xlu0 %782  ;;  %8417 = vmatpush3.bf16.msra.mxu0 %v8531_v55  ;;  %8504 = vmatpush3.bf16.msra.mxu1 %v8531_v55 }
 0x181   :  { %12827 = vst [vmem:[#allocation137_spill] sm:$0xff] %v9392_v59  ;;  %12828 = vst [vmem:[#allocation138_spill] sm:$0xff] %v9394_v61  ;;  %v12837_v59 = vld [vmem:[#allocation15_spill] sm:$0xff] }
 0x182   :  { %1163 = vperm.xlu1 %8525, %v12829_v0   ;;  %1175 = vperm.xlu0 %8526, %v12830_v62   ;;  %v12840_v62 = vld [vmem:[#allocation17_spill] sm:$0xff] }
 0x184   :  { %v9398_v52 = vpop.permute.xlu1 %786  ;;  %v9400_v51 = vpop.permute.xlu0 %790 }
 0x185   :  { %12831 = vst [vmem:[#allocation11_spill] sm:$0xff] %v9398_v52  ;;  %12832 = vst [vmem:[#allocation139_spill] sm:$0xff] %v9400_v51  ;;  %v8532_v51 = vld [vmem:[#allocation3 + $0x8] sm:$0xff]  }
 0x186   :  { %1171 = vperm.xlu1 %8525, %v12833_v53   ;;  %1183 = vperm.xlu0 %8526, %v12834_v57   ;;  %v12843_v57 = vld [vmem:[#allocation19_spill] sm:$0xff] }
 0x187   :  { %8418 = vmatprep.subr.bf16.mxu0 %v8532_v51  ;;  %8497 = vmatprep.subr.bf16.mxu1 %v8532_v51 }
 0x188   :  { %v9404_v63 = vpop.permute.xlu1 %794  ;;  %v9406_v49 = vpop.permute.xlu0 %798  ;;  %8419 = vmatpush3.bf16.msra.mxu0 %v8532_v51  ;;  %8505 = vmatpush3.bf16.msra.mxu1 %v8532_v51 }
 0x189   :  { %12835 = vst [vmem:[#allocation13_spill] sm:$0xff] %v9404_v63  ;;  %12836 = vst [vmem:[#allocation140_spill] sm:$0xff] %v9406_v49 }
 0x18a   :  { %1179 = vperm.xlu1 %8525, %v12837_v59   ;;  %1191 = vperm.xlu0 %8526, %v12766_v54   ;;  %v8533_v54 = vld [vmem:[#allocation3 + $0x10] sm:$0xff]  }
 0x18b   :  { %8420 = vmatprep.subr.bf16.mxu0 %v8533_v54  ;;  %8498 = vmatprep.subr.bf16.mxu1 %v8533_v54 }
 0x18c   :  { %v9410_v61 = vpop.permute.xlu1 %802  ;;  %v9412_v52 = vpop.permute.xlu0 %806  ;;  %8421 = vmatpush3.bf16.msra.mxu0 %v8533_v54  ;;  %8506 = vmatpush3.bf16.msra.mxu1 %v8533_v54 }
 0x18d   :  { %12838 = vst [vmem:[#allocation15_spill] sm:$0xff] %v9410_v61  ;;  %12839 = vst [vmem:[#allocation141_spill] sm:$0xff] %v9412_v52 }
 0x18e   :  { %1187 = vperm.xlu1 %8525, %v12840_v62   ;;  %1199 = vperm.xlu0 %8526, %v12770_v56   ;;  %v8534_v56 = vld [vmem:[#allocation3 + $0x18] sm:$0xff]  }
 0x18f   :  { %8422 = vmatprep.subr.bf16.mxu0 %v8534_v56  ;;  %8499 = vmatprep.subr.bf16.mxu1 %v8534_v56 }
 0x190   :  { %v9416_v63 = vpop.permute.xlu1 %810  ;;  %v9418_v49 = vpop.permute.xlu0 %814  ;;  %8423 = vmatpush3.bf16.msra.mxu0 %v8534_v56  ;;  %8507 = vmatpush3.bf16.msra.mxu1 %v8534_v56 }
 0x191   :  { %12841 = vst [vmem:[#allocation17_spill] sm:$0xff] %v9416_v63  ;;  %12842 = vst [vmem:[#allocation142_spill] sm:$0xff] %v9418_v49  ;;  %v8600_v63 = vmov 3   ;;  %v8535_v49 = vld [vmem:[#allocation3 + $0x20] sm:$0xff]  }
 0x192   :  { %1195 = vperm.xlu1 %8525, %v12843_v57   ;;  %1207 = vperm.xlu0 %8526, %v9040_v1  }
 0x193   :  { %8424 = vmatprep.subr.bf16.mxu0 %v8535_v49  ;;  %8500 = vmatprep.subr.bf16.mxu1 %v8535_v49 }
 0x194   :  { %v9422_v55 = vpop.permute.xlu1 %818  ;;  %v9424_v61 = vpop.permute.xlu0 %822  ;;  %8425 = vmatpush3.bf16.msra.mxu0 %v8535_v49  ;;  %8508 = vmatpush3.bf16.msra.mxu1 %v8535_v49 }
 0x195   :  { %12844 = vst [vmem:[#allocation19_spill] sm:$0xff] %v9422_v55  ;;  %12845 = vst [vmem:[#allocation143_spill] sm:$0xff] %v9424_v61 }
 0x196   :  { %1203 = vperm.xlu1 %8525, %v12771_v58   ;;  %8527 = vset.pattern.permute.xlu0 %v8600_v63 }
 0x197   :  { %1348 = vperm.xlu0 %8527, %v8668_v3   ;;  %v8536_v3 = vld [vmem:[#allocation3 + $0x28] sm:$0xff]  }
 0x198   :  { %8426 = vmatprep.subr.bf16.mxu0 %v8536_v3  ;;  %8501 = vmatprep.subr.bf16.mxu1 %v8536_v3 }
 0x199   :  { %v9428_v51 = vpop.permute.xlu1 %959  ;;  %v9430_v1 = vpop.permute.xlu0 %963  ;;  %8427 = vmatpush3.bf16.msra.mxu0 %v8536_v3  ;;  %8509 = vmatpush3.bf16.msra.mxu1 %v8536_v3 }
 0x19a   :  { %1211 = vperm.xlu1 %8525, %v12774_v60  }
 0x19b   :  { %1360 = vperm.xlu0 %8527, %v8675_v4   ;;  %v8537_v4 = vld [vmem:[#allocation3 + $0x30] sm:$0xff]  }
 0x19c   :  { %8428 = vmatprep.subr.bf16.mxu0 %v8537_v4  ;;  %8502 = vmatprep.subr.bf16.mxu1 %v8537_v4 }
 0x19d   :  { %v9434_v54 = vpop.permute.xlu1 %967  ;;  %v9436_v55 = vpop.permute.xlu0 %975  ;;  %8429 = vmatpush3.bf16.msra.mxu0 %v8537_v4  ;;  %8510 = vmatpush3.bf16.msra.mxu1 %v8537_v4 }
 0x19e   :  { %8528 = vset.pattern.permute.xlu1 %v8600_v63 }
 0x19f   :  { %1352 = vperm.xlu1 %8528, %v8680_v5   ;;  %1368 = vperm.xlu0 %8527, %v8687_v6   ;;  %v8538_v6 = vld [vmem:[#allocation3 + $0x38] sm:$0xff]  }
 0x1a0   :  { %8430 = vmatprep.subr.bf16.mxu0 %v8538_v6  ;;  %8503 = vmatprep.subr.bf16.mxu1 %v8538_v6 }
 0x1a1   :  { %v9440_v56 = vpop.permute.xlu1 %971  ;;  %v9442_v61 = vpop.permute.xlu0 %983  ;;  %8431 = vmatpush3.bf16.msra.mxu0 %v8538_v6  ;;  %8511 = vmatpush3.bf16.msra.mxu1 %v8538_v6 }
 0x1a3   :  { %1356 = vperm.xlu1 %8528, %v8663_v2   ;;  %1376 = vperm.xlu0 %8527, %v8699_v8  }
 0x1a5   :  { %v9446_v49 = vpop.permute.xlu1 %979  ;;  %v9448_v5 = vpop.permute.xlu0 %991 }
 0x1a7   :  { %1364 = vperm.xlu1 %8528, %v8692_v7   ;;  %1384 = vperm.xlu0 %8527, %v8711_v10  }
 0x1a9   :  { %v9452_v63 = vpop.permute.xlu1 %987  ;;  %v9454_v2 = vpop.permute.xlu0 %999 }
 0x1ab   :  { %1372 = vperm.xlu1 %8528, %v8704_v9   ;;  %1392 = vperm.xlu0 %8527, %v8723_v12  }
 0x1ad   :  { %v9458_v8 = vpop.permute.xlu1 %995  ;;  %v9460_v3 = vpop.permute.xlu0 %1007 }
 0x1af   :  { %1380 = vperm.xlu1 %8528, %v8716_v11   ;;  %1400 = vperm.xlu0 %8527, %v8735_v14  }
 0x1b1   :  { %v9464_v7 = vpop.permute.xlu1 %1003  ;;  %v9466_v10 = vpop.permute.xlu0 %1015 }
 0x1b3   :  { %1388 = vperm.xlu1 %8528, %v8728_v13   ;;  %1408 = vperm.xlu0 %8527, %v8745_v16  }
 0x1b5   :  { %v9470_v4 = vpop.permute.xlu1 %1011  ;;  %v9472_v9 = vpop.permute.xlu0 %1023 }
 0x1b7   :  { %1396 = vperm.xlu1 %8528, %v8740_v15   ;;  %1416 = vperm.xlu0 %8527, %v8759_v18  }
 0x1b9   :  { %v9476_v12 = vpop.permute.xlu1 %1019  ;;  %v9478_v11 = vpop.permute.xlu0 %1031 }
 0x1bb   :  { %1404 = vperm.xlu1 %8528, %v8750_v17   ;;  %1424 = vperm.xlu0 %8527, %v8771_v20  }
 0x1bd   :  { %v9482_v14 = vpop.permute.xlu1 %1027  ;;  %v9484_v13 = vpop.permute.xlu0 %1039 }
 0x1be   :  { %12846 = vst [vmem:[#allocation144_spill] sm:$0xff] %v9484_v13 }
 0x1bf   :  { %1412 = vperm.xlu1 %8528, %v8764_v19   ;;  %1432 = vperm.xlu0 %8527, %v8783_v22  }
 0x1c1   :  { %v9488_v16 = vpop.permute.xlu1 %1035  ;;  %v9490_v15 = vpop.permute.xlu0 %1047 }
 0x1c2   :  { %12847 = vst [vmem:[#allocation145_spill] sm:$0xff] %v9490_v15 }
 0x1c3   :  { %1420 = vperm.xlu1 %8528, %v8776_v21   ;;  %1440 = vperm.xlu0 %8527, %v8795_v24  }
 0x1c5   :  { %v9494_v18 = vpop.permute.xlu1 %1043  ;;  %v9496_v17 = vpop.permute.xlu0 %1055 }
 0x1c6   :  { %12848 = vst [vmem:[#allocation146_spill] sm:$0xff] %v9494_v18  ;;  %12849 = vst [vmem:[#allocation147_spill] sm:$0xff] %v9496_v17  ;;  %v12969_v18 = vld [vmem:[#allocation70_spill] sm:$0xff] }
 0x1c7   :  { %1428 = vperm.xlu1 %8528, %v8788_v23   ;;  %1448 = vperm.xlu0 %8527, %v8807_v26  }
 0x1c9   :  { %v9500_v20 = vpop.permute.xlu1 %1051  ;;  %v9502_v19 = vpop.permute.xlu0 %1063 }
 0x1ca   :  { %12850 = vst [vmem:[#allocation148_spill] sm:$0xff] %v9500_v20  ;;  %12851 = vst [vmem:[#allocation149_spill] sm:$0xff] %v9502_v19 }
 0x1cb   :  { %1436 = vperm.xlu1 %8528, %v8800_v25   ;;  %1456 = vperm.xlu0 %8527, %v8819_v28  }
 0x1cd   :  { %v9506_v22 = vpop.permute.xlu1 %1059  ;;  %v9508_v21 = vpop.permute.xlu0 %1071 }
 0x1ce   :  { %12852 = vst [vmem:[#allocation150_spill] sm:$0xff] %v9506_v22  ;;  %12853 = vst [vmem:[#allocation151_spill] sm:$0xff] %v9508_v21  ;;  %v12923_v22 = vld [vmem:[#allocation52_spill] sm:$0xff] }
 0x1cf   :  { %1444 = vperm.xlu1 %8528, %v8812_v27   ;;  %1464 = vperm.xlu0 %8527, %v8831_v30  }
 0x1d1   :  { %v9512_v24 = vpop.permute.xlu1 %1067  ;;  %v9514_v23 = vpop.permute.xlu0 %1079 }
 0x1d2   :  { %12854 = vst [vmem:[#allocation152_spill] sm:$0xff] %v9512_v24  ;;  %12855 = vst [vmem:[#allocation153_spill] sm:$0xff] %v9514_v23  ;;  %v12908_v23 = vld [vmem:[#allocation44_spill] sm:$0xff] }
 0x1d3   :  { %1452 = vperm.xlu1 %8528, %v8824_v29   ;;  %1472 = vperm.xlu0 %8527, %v8843_v32  }
 0x1d5   :  { %v9518_v26 = vpop.permute.xlu1 %1075  ;;  %v9520_v25 = vpop.permute.xlu0 %1087 }
 0x1d6   :  { %12856 = vst [vmem:[#allocation154_spill] sm:$0xff] %v9518_v26  ;;  %12857 = vst [vmem:[#allocation155_spill] sm:$0xff] %v9520_v25 }
 0x1d7   :  { %1460 = vperm.xlu1 %8528, %v8836_v31   ;;  %1480 = vperm.xlu0 %8527, %v8855_v34  }
 0x1d9   :  { %v9524_v28 = vpop.permute.xlu1 %1083  ;;  %v9526_v27 = vpop.permute.xlu0 %1095 }
 0x1da   :  { %12858 = vst [vmem:[#allocation156_spill] sm:$0xff] %v9524_v28  ;;  %12859 = vst [vmem:[#allocation157_spill] sm:$0xff] %v9526_v27  ;;  %v12902_v27 = vld [vmem:[#allocation40_spill] sm:$0xff]  ;;  %v12909_v28 = vld [vmem:[#allocation45_spill] sm:$0xff] }
 0x1db   :  { %1468 = vperm.xlu1 %8528, %v8848_v33   ;;  %1488 = vperm.xlu0 %8527, %v8867_v36  }
 0x1dd   :  { %v9530_v30 = vpop.permute.xlu1 %1091  ;;  %v9532_v29 = vpop.permute.xlu0 %1103 }
 0x1de   :  { %12860 = vst [vmem:[#allocation158_spill] sm:$0xff] %v9530_v30  ;;  %12861 = vst [vmem:[#allocation159_spill] sm:$0xff] %v9532_v29  ;;  %v12898_v29 = vld [vmem:[#allocation37_spill] sm:$0xff] }
 0x1df   :  { %1476 = vperm.xlu1 %8528, %v8860_v35   ;;  %1496 = vperm.xlu0 %8527, %v8879_v38  }
 0x1e1   :  { %v9536_v32 = vpop.permute.xlu1 %1099  ;;  %v9538_v31 = vpop.permute.xlu0 %1111 }
 0x1e2   :  { %12862 = vst [vmem:[#allocation160_spill] sm:$0xff] %v9536_v32  ;;  %12863 = vst [vmem:[#allocation161_spill] sm:$0xff] %v9538_v31 }
 0x1e3   :  { %1484 = vperm.xlu1 %8528, %v8872_v37   ;;  %1504 = vperm.xlu0 %8527, %v8891_v40  }
 0x1e5   :  { %v9542_v34 = vpop.permute.xlu1 %1107  ;;  %v9544_v33 = vpop.permute.xlu0 %1119 }
 0x1e6   :  { %12864 = vst [vmem:[#allocation162_spill] sm:$0xff] %v9542_v34  ;;  %12865 = vst [vmem:[#allocation163_spill] sm:$0xff] %v9544_v33 }
 0x1e7   :  { %1492 = vperm.xlu1 %8528, %v8884_v39   ;;  %1512 = vperm.xlu0 %8527, %v8903_v42  }
 0x1e9   :  { %v9548_v36 = vpop.permute.xlu1 %1115  ;;  %v9550_v35 = vpop.permute.xlu0 %1127 }
 0x1ea   :  { %12866 = vst [vmem:[#allocation164_spill] sm:$0xff] %v9548_v36  ;;  %12867 = vst [vmem:[#allocation165_spill] sm:$0xff] %v9550_v35 }
 0x1eb   :  { %1500 = vperm.xlu1 %8528, %v8896_v41   ;;  %1520 = vperm.xlu0 %8527, %v8915_v44  }
 0x1ed   :  { %v9554_v38 = vpop.permute.xlu1 %1123  ;;  %v9556_v37 = vpop.permute.xlu0 %1135 }
 0x1ee   :  { %12868 = vst [vmem:[#allocation166_spill] sm:$0xff] %v9554_v38  ;;  %12869 = vst [vmem:[#allocation167_spill] sm:$0xff] %v9556_v37  ;;  %v12887_v37 = vld [vmem:[#allocation29_spill] sm:$0xff]  ;;  %v12893_v38 = vld [vmem:[#allocation34_spill] sm:$0xff] }
 0x1ef   :  { %1508 = vperm.xlu1 %8528, %v8908_v43   ;;  %1528 = vperm.xlu0 %8527, %v8927_v46   ;;  %v12876_v46 = vld [vmem:[#allocation9_spill] sm:$0xff] }
 0x1f1   :  { %v9560_v40 = vpop.permute.xlu1 %1131  ;;  %v9562_v39 = vpop.permute.xlu0 %1143 }
 0x1f2   :  { %12870 = vst [vmem:[#allocation168_spill] sm:$0xff] %v9560_v40  ;;  %12871 = vst [vmem:[#allocation169_spill] sm:$0xff] %v9562_v39  ;;  %v12883_v39 = vld [vmem:[#allocation27_spill] sm:$0xff] }
 0x1f3   :  { %1516 = vperm.xlu1 %8528, %v8920_v45   ;;  %1536 = vperm.xlu0 %8527, %v8939_v48   ;;  %v9581_v45 = vld [vmem:[%s12612_s1] ss:$0 sm:$0xff]  ;;  %v12889_v40 = vld [vmem:[#allocation31_spill] sm:$0xff] }
 0x1f4   :  { %v446_v33 = vmul.f32 %v9581_v45, %v12889_v40  ;;  %v12892_v40 = vld [vmem:[#allocation33_spill] sm:$0xff]  ;;  %v457_v32 = vmul.f32 %v9581_v45, %v12902_v27  ;;  %v12907_v27 = vld [vmem:[#allocation43_spill] sm:$0xff]  ;;  %v460_v21 = vmul.f32 %v9581_v45, %v12909_v28 }
 0x1f5   :  { %v9566_v42 = vpop.permute.xlu1 %1139  ;;  %v9568_v41 = vpop.permute.xlu0 %1151 }
 0x1f6   :  { %12872 = vst [vmem:[#allocation170_spill] sm:$0xff] %v9566_v42  ;;  %12873 = vst [vmem:[#allocation171_spill] sm:$0xff] %v9568_v41  ;;  %v12882_v41 = vld [vmem:[#allocation26_spill] sm:$0xff] }
 0x1f7   :  { %1524 = vperm.xlu1 %8528, %v8932_v47   ;;  %1544 = vperm.xlu0 %8527, %v8951_v50   ;;  %v12879_v47 = vld [vmem:[#allocation10_spill] sm:$0xff]  ;;  %v12880_v50 = vld [vmem:[#allocation24_spill] sm:$0xff] }
 0x1f8   :  { %v442_v52 = vmul.f32 %v9581_v45, %v12880_v50  ;;  %v12888_v42 = vld [vmem:[#allocation30_spill] sm:$0xff] }
 0x1f9   :  { %v9572_v44 = vpop.permute.xlu1 %1147  ;;  %v9574_v43 = vpop.permute.xlu0 %1159  ;;  %v447_v35 = vmul.f32 %v9581_v45, %v12888_v42 }
 0x1fa   :  { %12874 = vst [vmem:[#allocation172_spill] sm:$0xff] %v9572_v44  ;;  %12875 = vst [vmem:[#allocation173_spill] sm:$0xff] %v9574_v43  ;;  %v12881_v43 = vld [vmem:[#allocation25_spill] sm:$0xff]  ;;  %v12886_v44 = vld [vmem:[#allocation28_spill] sm:$0xff] }
 0x1fb   :  { %1532 = vperm.xlu1 %8528, %v12876_v46   ;;  %1552 = vperm.xlu0 %8527, %v12829_v0   ;;  %v440_v46 = vmul.f32 %v9581_v45, %v12881_v43  ;;  %v9596_v0 = vld [vmem:[%s12613_s2] ss:$0 sm:$0xff]  ;;  %v445_v50 = vmul.f32 %v9581_v45, %v12886_v44  ;;  %v444_v43 = vmul.f32 %v9581_v45, %v12887_v37 }
 0x1fc   :  { %v12891_v44 = vld [vmem:[#allocation32_spill] sm:$0xff]  ;;  %v9707_v28 = vadd.f32 %v9596_v0, %v457_v32 }
 0x1fd   :  { %v9583_v48 = vpop.permute.xlu1 %1155  ;;  %v9585_v6 = vpop.permute.xlu0 %1167 }
 0x1fe   :  { %12877 = vst [vmem:[#allocation9_spill] sm:$0xff] %v9583_v48  ;;  %12878 = vst [vmem:[#allocation174_spill] sm:$0xff] %v9585_v6  ;;  %v443_v48 = vmul.f32 %v9581_v45, %v12882_v41  ;;  %v441_v6 = vmul.f32 %v9581_v45, %v12883_v39  ;;  %v12890_v41 = vld [vmem:[#allocation12_spill] sm:$0xff]  ;;  %v9617_v39 = vadd.f32 %v9596_v0, %v442_v52 }
 0x1ff   :  { %1540 = vperm.xlu1 %8528, %v12879_v47   ;;  %1560 = vperm.xlu0 %8527, %v12833_v53  }
 0x200   :  { %v9625_v37 = vadd.f32 %v9596_v0, %v443_v48  ;;  %v9628_v42 = vadd.f32 %v9596_v0, %v441_v6  ;;  %v9645_v48 = vadd.f32 %v9596_v0, %v447_v35  ;;  %v12896_v6 = vld [vmem:[#allocation35_spill] sm:$0xff]  ;;  %v12900_v35 = vld [vmem:[#allocation38_spill] sm:$0xff] }
 0x201   :  { %v9602_v47 = vpop.permute.xlu1 %1163  ;;  %v9604_v53 = vpop.permute.xlu0 %1175  ;;  %v450_v36 = vmul.f32 %v9581_v45, %v12896_v6  ;;  %v455_v34 = vmul.f32 %v9581_v45, %v12900_v35  ;;  %v12901_v6 = vld [vmem:[#allocation39_spill] sm:$0xff] }
 0x202   :  { %12884 = vst [vmem:[#allocation10_spill] sm:$0xff] %v9602_v47  ;;  %12885 = vst [vmem:[#allocation24_spill] sm:$0xff] %v9604_v53  ;;  %v9620_v53 = vadd.f32 %v9596_v0, %v440_v46  ;;  %v449_v47 = vmul.f32 %v9581_v45, %v12891_v44  ;;  %v9639_v46 = vadd.f32 %v9596_v0, %v445_v50  ;;  %v12899_v50 = vld [vmem:[#allocation14_spill] sm:$0xff] }
 0x203   :  { %1548 = vperm.xlu1 %8528, %v12890_v41   ;;  %1568 = vperm.xlu0 %8527, %v12837_v59   ;;  %v448_v41 = vmul.f32 %v9581_v45, %v12892_v40  ;;  %v451_v59 = vmul.f32 %v9581_v45, %v12893_v38  ;;  %v9642_v44 = vadd.f32 %v9596_v0, %v444_v43  ;;  %v12897_v38 = vld [vmem:[#allocation36_spill] sm:$0xff] }
 0x204   :  { %v9650_v40 = vadd.f32 %v9596_v0, %v446_v33  ;;  %v9659_v43 = vadd.f32 %v9596_v0, %v449_v47  ;;  %v454_v33 = vmul.f32 %v9581_v45, %v12901_v6  ;;  %v12904_v47 = vld [vmem:[#allocation42_spill] sm:$0xff]  ;;  %v9682_v6 = vadd.f32 %v9596_v0, %v450_v36  ;;  %v12911_v36 = vld [vmem:[#allocation16_spill] sm:$0xff] }
 0x205   :  { %v9634_v52 = vpop.permute.xlu1 %1171  ;;  %v9636_v31 = vpop.permute.xlu0 %1183  ;;  %v459_v25 = vmul.f32 %v9581_v45, %v12904_v47 }
 0x206   :  { %12894 = vst [vmem:[#allocation25_spill] sm:$0xff] %v9634_v52  ;;  %12895 = vst [vmem:[#allocation26_spill] sm:$0xff] %v9636_v31  ;;  %v453_v52 = vmul.f32 %v9581_v45, %v12897_v38  ;;  %v452_v31 = vmul.f32 %v9581_v45, %v12898_v29  ;;  %v9668_v38 = vadd.f32 %v9596_v0, %v448_v41 }
 0x207   :  { %1556 = vperm.xlu1 %8528, %v12899_v50   ;;  %1576 = vperm.xlu0 %8527, %v12840_v62   ;;  %v9671_v29 = vadd.f32 %v9596_v0, %v451_v59  ;;  %v12903_v50 = vld [vmem:[#allocation41_spill] sm:$0xff]  ;;  %v458_v41 = vmul.f32 %v9581_v45, %v12907_v27  ;;  %v461_v59 = vmul.f32 %v9581_v45, %v12908_v23 }
 0x208   :  { %v456_v62 = vmul.f32 %v9581_v45, %v12903_v50  ;;  %v9691_v50 = vadd.f32 %v9596_v0, %v453_v52  ;;  %v9694_v47 = vadd.f32 %v9596_v0, %v452_v31  ;;  %v9701_v27 = vadd.f32 %v9596_v0, %v455_v34  ;;  %v12912_v52 = vld [vmem:[#allocation47_spill] sm:$0xff]  ;;  %v12914_v34 = vld [vmem:[#allocation49_spill] sm:$0xff] }
 0x209   :  { %v9677_v30 = vpop.permute.xlu1 %1179  ;;  %v9679_v35 = vpop.permute.xlu0 %1191  ;;  %v9704_v23 = vadd.f32 %v9596_v0, %v454_v33  ;;  %v462_v31 = vmul.f32 %v9581_v45, %v12912_v52  ;;  %v464_v19 = vmul.f32 %v9581_v45, %v12914_v34  ;;  %v9726_v32 = vadd.f32 %v9596_v0, %v458_v41  ;;  %v12922_v34 = vld [vmem:[#allocation51_spill] sm:$0xff]  ;;  %v12924_v41 = vld [vmem:[#allocation18_spill] sm:$0xff] }
 0x20a   :  { %12905 = vst [vmem:[#allocation27_spill] sm:$0xff] %v9677_v30  ;;  %12906 = vst [vmem:[#allocation28_spill] sm:$0xff] %v9679_v35  ;;  %v12910_v30 = vld [vmem:[#allocation46_spill] sm:$0xff]  ;;  %v9712_v26 = vadd.f32 %v9596_v0, %v456_v62  ;;  %v9729_v52 = vadd.f32 %v9596_v0, %v461_v59  ;;  %v9732_v62 = vadd.f32 %v9596_v0, %v460_v21  ;;  %v12926_v21 = vld [vmem:[#allocation53_spill] sm:$0xff] }
 0x20b   :  { %v463_v35 = vmul.f32 %v9581_v45, %v12910_v30  ;;  %1564 = vperm.xlu1 %8528, %v12911_v36   ;;  %1584 = vperm.xlu0 %8527, %v12843_v57   ;;  %v9715_v30 = vadd.f32 %v9596_v0, %v459_v25  ;;  %v12913_v36 = vld [vmem:[#allocation48_spill] sm:$0xff]  ;;  %12917 = vst [vmem:[#allocation31_spill] sm:$0xff] %v9726_v32  ;;  %v12920_v25 = vld [vmem:[#allocation50_spill] sm:$0xff]  ;;  %v12970_v32 = vld [vmem:[#allocation71_spill] sm:$0xff] }
 0x20c   :  { %v465_v57 = vmul.f32 %v9581_v45, %v12913_v36  ;;  %12918 = vst [vmem:[#allocation12_spill] sm:$0xff] %v9729_v52  ;;  %12919 = vst [vmem:[#allocation32_spill] sm:$0xff] %v9732_v62  ;;  %v467_v17 = vmul.f32 %v9581_v45, %v12920_v25  ;;  %v9746_v59 = vadd.f32 %v9596_v0, %v462_v31  ;;  %v12927_v25 = vld [vmem:[#allocation54_spill] sm:$0xff]  ;;  %v12932_v31 = vld [vmem:[#allocation57_spill] sm:$0xff] }
 0x20d   :  { %v9721_v33 = vpop.permute.xlu1 %1187  ;;  %v9723_v24 = vpop.permute.xlu0 %1199  ;;  %v9737_v36 = vadd.f32 %v9596_v0, %v463_v35  ;;  %v468_v15 = vmul.f32 %v9581_v45, %v12926_v21  ;;  %v471_v35 = vmul.f32 %v9581_v45, %v12927_v25  ;;  %v487_v52 = vmul.f32 %v9581_v45, %v12969_v18  ;;  %v8540_v18 = vld [vmem:[%s12611_s0 + $0x1f0] sm:$0xff] }
 0x20e   :  { %12915 = vst [vmem:[#allocation29_spill] sm:$0xff] %v9721_v33  ;;  %12916 = vst [vmem:[#allocation30_spill] sm:$0xff] %v9723_v24  ;;  %v466_v33 = vmul.f32 %v9581_v45, %v12922_v34  ;;  %v469_v24 = vmul.f32 %v9581_v45, %v12923_v22  ;;  %v9755_v34 = vadd.f32 %v9596_v0, %v465_v57 }
 0x20f   :  { %12921 = vst [vmem:[#allocation33_spill] sm:$0xff] %v9737_v36  ;;  %1572 = vperm.xlu1 %8528, %v12924_v41   ;;  %1592 = vperm.xlu0 %8527, %v12771_v58   ;;  %12925 = vst [vmem:[#allocation34_spill] sm:$0xff] %v9746_v59  ;;  %v12928_v36 = vld [vmem:[#allocation55_spill] sm:$0xff]  ;;  %v9758_v22 = vadd.f32 %v9596_v0, %v464_v19  ;;  %v12931_v41 = vld [vmem:[#allocation56_spill] sm:$0xff]  ;;  %v472_v59 = vmul.f32 %v9581_v45, %v12932_v31 }
 0x210   :  { %v470_v20 = vmul.f32 %v9581_v45, %v12928_v36  ;;  %12929 = vst [vmem:[#allocation35_spill] sm:$0xff] %v9755_v34  ;;  %v473_v58 = vmul.f32 %v9581_v45, %v12931_v41  ;;  %v9769_v25 = vadd.f32 %v9596_v0, %v467_v17  ;;  %v12936_v36 = vld [vmem:[#allocation58_spill] sm:$0xff]  ;;  %v12937_v34 = vld [vmem:[#allocation59_spill] sm:$0xff]  ;;  %v9778_v41 = vadd.f32 %v9596_v0, %v466_v33  ;;  %v12942_v17 = vld [vmem:[#allocation20_spill] sm:$0xff] }
 0x211   :  { %12930 = vst [vmem:[#allocation36_spill] sm:$0xff] %v9758_v22  ;;  %v9764_v62 = vpop.permute.xlu1 %1195  ;;  %v9766_v21 = vpop.permute.xlu0 %1207  ;;  %v475_v57 = vmul.f32 %v9581_v45, %v12936_v36  ;;  %v474_v19 = vmul.f32 %v9581_v45, %v12937_v34  ;;  %v12938_v22 = vld [vmem:[#allocation60_spill] sm:$0xff]  ;;  %v9781_v31 = vadd.f32 %v9596_v0, %v469_v24  ;;  %v9788_v36 = vadd.f32 %v9596_v0, %v468_v15  ;;  %v12946_v33 = vld [vmem:[#allocation62_spill] sm:$0xff]  ;;  %v12949_v15 = vld [vmem:[#allocation63_spill] sm:$0xff] }
 0x212   :  { %12933 = vst [vmem:[#allocation37_spill] sm:$0xff] %v9764_v62  ;;  %12934 = vst [vmem:[#allocation14_spill] sm:$0xff] %v9766_v21  ;;  %v477_v13 = vmul.f32 %v9581_v45, %v12938_v22  ;;  %v12941_v62 = vld [vmem:[#allocation61_spill] sm:$0xff]  ;;  %v9791_v34 = vadd.f32 %v9596_v0, %v471_v35  ;;  %v9794_v22 = vadd.f32 %v9596_v0, %v470_v20 }
 0x213   :  { %12935 = vst [vmem:[#allocation38_spill] sm:$0xff] %v9769_v25  ;;  %12939 = vst [vmem:[#allocation39_spill] sm:$0xff] %v9778_v41  ;;  %v476_v21 = vmul.f32 %v9581_v45, %v12941_v62  ;;  %1580 = vperm.xlu1 %8528, %v12942_v17   ;;  %1600 = vperm.xlu0 %8527, %v12774_v60   ;;  %v479_v24 = vmul.f32 %v9581_v45, %v12946_v33  ;;  %v9801_v62 = vld [vmem:[%s12612_s1 + $0x1] ss:$0 sm:$0xff] }
 0x214   :  { %12940 = vst [vmem:[#allocation40_spill] sm:$0xff] %v9781_v31  ;;  %12943 = vst [vmem:[#allocation41_spill] sm:$0xff] %v9788_v36  ;;  %v9804_v17 = vadd.f32 %v9596_v0, %v473_v58  ;;  %v9807_v60 = vadd.f32 %v9596_v0, %v472_v59  ;;  %v478_v35 = vmul.f32 %v9581_v45, %v12949_v15  ;;  %v9829_v15 = vld [vmem:[%s12612_s1 + $0x2] ss:$0 sm:$0xff] }
 0x215   :  { %12944 = vst [vmem:[#allocation42_spill] sm:$0xff] %v9791_v34  ;;  %12945 = vst [vmem:[#allocation43_spill] sm:$0xff] %v9794_v22  ;;  %v12950_v34 = vld [vmem:[#allocation64_spill] sm:$0xff]  ;;  %v9813_v22 = vpop.permute.xlu1 %1203  ;;  %v9816_v33 = vadd.f32 %v9596_v0, %v475_v57  ;;  %v9819_v36 = vadd.f32 %v9596_v0, %v474_v19  ;;  %v9822_v58 = vadd.f32 %v9596_v0, %v477_v13  ;;  %v12957_v57 = vld [vmem:[#allocation66_spill] sm:$0xff] }
 0x216   :  { %12947 = vst [vmem:[#allocation44_spill] sm:$0xff] %v9804_v17  ;;  %12948 = vst [vmem:[#allocation45_spill] sm:$0xff] %v9807_v60  ;;  %v481_v20 = vmul.f32 %v9581_v45, %v12950_v34  ;;  %v12955_v17 = vld [vmem:[#allocation65_spill] sm:$0xff]  ;;  %v1349_v34 = vpop.permute.xlu0 %1348  ;;  %v12958_v19 = vld [vmem:[#allocation86_spill] sm:$0xff] }
 0x217   :  { %12951 = vst [vmem:[#allocation46_spill] sm:$0xff] %v9813_v22  ;;  %12952 = vst [vmem:[#allocation16_spill] sm:$0xff] %v9816_v33  ;;  %v480_v59 = vmul.f32 %v9581_v45, %v12955_v17  ;;  %v9832_v22 = vadd.f32 %v9596_v0, %v476_v21  ;;  %v483_v33 = vmul.f32 %v9581_v45, %v12957_v57  ;;  %v8539_v13 = vld [vmem:[%s12611_s0 + $0x1e0] sm:$0xff]  ;;  %v12959_v17 = vmov 0   ;;  %v12961_v60 = vld [vmem:[#allocation67_spill] sm:$0xff] }
 0x218   :  { %12953 = vst [vmem:[#allocation47_spill] sm:$0xff] %v9819_v36  ;;  %12954 = vst [vmem:[#allocation48_spill] sm:$0xff] %v9822_v58  ;;  %v829_v36 = vmul.f32 %v9801_v62, %v12958_v19  ;;  %1588 = vperm.xlu1 %8528, %v8539_v13   ;;  %8529 = vset.pattern.permute.xlu0 %v12959_v17  ;;  %v9843_v58 = vadd.f32 %v9596_v0, %v479_v24  ;;  %v12963_v57 = vld [vmem:[#allocation69_spill] sm:$0xff]  ;;  %v9854_v19 = vld [vmem:[%s12612_s1 + $0x3] ss:$0 sm:$0xff] }
 0x219   :  { %12956 = vst [vmem:[#allocation49_spill] sm:$0xff] %v9832_v22  ;;  %v482_v21 = vmul.f32 %v9581_v45, %v12961_v60  ;;  %v12962_v22 = vld [vmem:[#allocation68_spill] sm:$0xff]  ;;  %v484_v41 = vmul.f32 %v9581_v45, %v12963_v57  ;;  %v9857_v13 = vadd.f32 %v9596_v0, %v478_v35  ;;  %v9860_v24 = vadd.f32 %v9596_v0, %v481_v20  ;;  %v9866_v25 = vpop.permute.xlu1 %1211 }
 0x21a   :  { %12960 = vst [vmem:[#allocation50_spill] sm:$0xff] %v9843_v58  ;;  %v485_v31 = vmul.f32 %v9581_v45, %v12962_v22  ;;  %v12966_v58 = vld [vmem:[#allocation23_spill] sm:$0xff]  ;;  %v1218_v22 = vmul.f32 %v9829_v15, %v9428_v51  ;;  %12967 = vst [vmem:[#allocation18_spill] sm:$0xff] %v9866_v25  ;;  %v9869_v57 = vadd.f32 %v9596_v0, %v480_v59 }
 0x21b   :  { %12964 = vst [vmem:[#allocation51_spill] sm:$0xff] %v9857_v13  ;;  %12965 = vst [vmem:[#allocation52_spill] sm:$0xff] %v9860_v24  ;;  %v830_v60 = vmul.f32 %v9801_v62, %v12966_v58  ;;  %v486_v35 = vmul.f32 %v9581_v45, %v12970_v32  ;;  %v12971_v13 = vld [vmem:[#allocation88_spill] sm:$0xff]  ;;  %v1361_v24 = vpop.permute.xlu0 %1360  ;;  %v9878_v58 = vadd.f32 %v9596_v0, %v483_v33 }
 0x21c   :  { %12968 = vst [vmem:[#allocation53_spill] sm:$0xff] %v9869_v57  ;;  %v832_v20 = vmul.f32 %v9801_v62, %v12971_v13  ;;  %v893_v51 = vadd.f32 %v829_v36, %v9620_v53  ;;  %v1219_v25 = vmul.f32 %v9829_v15, %v9430_v1  ;;  %v1607_v59 = vmul.f32 %v9854_v19, %v1349_v34  ;;  %v12975_v53 = vld [vmem:[#allocation87_spill] sm:$0xff]  ;;  %v12976_v34 = vld [vmem:[#allocation90_spill] sm:$0xff] }
 0x21d   :  { %12972 = vst [vmem:[#allocation54_spill] sm:$0xff] %v9878_v58  ;;  %1596 = vperm.xlu1 %8528, %v8540_v18   ;;  %v9888_v32 = vadd.f32 %v9596_v0, %v482_v21  ;;  %v9891_v13 = vadd.f32 %v9596_v0, %v485_v31  ;;  %v9894_v33 = vadd.f32 %v9596_v0, %v484_v41 }
 0x21e   :  { %v831_v36 = vmul.f32 %v9801_v62, %v12975_v53  ;;  %v894_v1 = vadd.f32 %v830_v60, %v9628_v42  ;;  %v834_v58 = vmul.f32 %v9801_v62, %v12976_v34  ;;  %v1282_v57 = vadd.f32 %v1218_v22, %v893_v51 }
 0x21f   :  { %12973 = vst [vmem:[#allocation55_spill] sm:$0xff] %v9891_v13  ;;  %12974 = vst [vmem:[#allocation56_spill] sm:$0xff] %v9894_v33  ;;  %v1221_v18 = vmul.f32 %v9829_v15, %v9440_v56  ;;  %v9904_v21 = vadd.f32 %v9596_v0, %v487_v52  ;;  %v9907_v31 = vadd.f32 %v9596_v0, %v486_v35  ;;  %v1353_v33 = vpop.permute.xlu1 %1352  ;;  %v1369_v42 = vpop.permute.xlu0 %1368  ;;  %v12979_v56 = vld [vmem:[#allocation72_spill] sm:$0xff] }
 0x220   :  { %v896_v41 = vadd.f32 %v832_v20, %v9625_v37  ;;  %v1220_v53 = vmul.f32 %v9829_v15, %v9434_v54  ;;  %v1283_v60 = vadd.f32 %v1219_v25, %v894_v1  ;;  %v1610_v34 = vmul.f32 %v9854_v19, %v1361_v24  ;;  %v12981_v20 = vld [vmem:[#allocation73_spill] sm:$0xff] }
 0x221   :  { %12977 = vst [vmem:[#allocation57_spill] sm:$0xff] %v9904_v21  ;;  %12978 = vst [vmem:[#allocation58_spill] sm:$0xff] %v9907_v31  ;;  %v1608_v22 = vmul.f32 %v9854_v19, %v1353_v33  ;;  %v1671_v51 = vadd.f32 %v1607_v59, %v1282_v57  ;;  %8530 = vset.pattern.permute.xlu1 %v12959_v17  ;;  %v489_v52 = vmul.f32 %v9581_v45, %v12979_v56  ;;  %v12980_v31 = vld [vmem:[#allocation89_spill] sm:$0xff]  ;;  %v12982_v59 = vld [vmem:[#allocation92_spill] sm:$0xff] }
 0x222   :  { %v895_v35 = vadd.f32 %v831_v36, %v9617_v39  ;;  %v833_v37 = vmul.f32 %v9801_v62, %v12980_v31  ;;  %v1223_v54 = vmul.f32 %v9829_v15, %v9446_v49  ;;  %v488_v25 = vmul.f32 %v9581_v45, %v12981_v20 }
 0x223   :  { %v898_v24 = vadd.f32 %v834_v58, %v9639_v46  ;;  %v1285_v33 = vadd.f32 %v1221_v18, %v896_v41  ;;  %v1672_v57 = vadd.f32 %v1608_v22, %v1283_v60  ;;  %v836_v17 = vmul.f32 %v9801_v62, %v12982_v59  ;;  %v1357_v31 = vpop.permute.xlu1 %1356  ;;  %v1377_v56 = vpop.permute.xlu0 %1376  ;;  %v12983_v58 = vld [vmem:[#allocation91_spill] sm:$0xff]  ;;  %v12984_v41 = vld [vmem:[#allocation94_spill] sm:$0xff] }
 0x224   :  { %v1284_v1 = vadd.f32 %v1220_v53, %v895_v35  ;;  %v1222_v39 = vmul.f32 %v9829_v15, %v9436_v55  ;;  %v1612_v36 = vmul.f32 %v9854_v19, %v1369_v42  ;;  %v1609_v49 = vmul.f32 %v9854_v19, %v1357_v31 }
 0x225   :  { %v1674_v21 = vadd.f32 %v1610_v34, %v1285_v33  ;;  %v1735_v13 = vmax.f32 %v1671_v51, 0.0  ;;  %v1736_v20 = vmax.f32 %v1672_v57, 0.0  ;;  %v897_v46 = vadd.f32 %v833_v37, %v9642_v44 }
 0x226   :  { %v835_v18 = vmul.f32 %v9801_v62, %v12983_v58  ;;  %v838_v53 = vmul.f32 %v9801_v62, %v12984_v41  ;;  %v1287_v60 = vadd.f32 %v1223_v54, %v898_v24  ;;  %v9937_v55 = vadd.f32 %v9596_v0, %v489_v52 }
 0x227   :  { %v1225_v42 = vmul.f32 %v9829_v15, %v9452_v63  ;;  %v1673_v34 = vadd.f32 %v1609_v49, %v1284_v1  ;;  %v1799_v22 = vpack.c.bf16 %v1736_v20, %v1735_v13  ;;  %v900_v51 = vadd.f32 %v836_v17, %v9645_v48  ;;  %v1365_v33 = vpop.permute.xlu1 %1364  ;;  %v1385_v57 = vpop.permute.xlu0 %1384  ;;  %v12985_v48 = vld [vmem:[#allocation93_spill] sm:$0xff] }
 0x228   :  { %v1286_v35 = vadd.f32 %v1222_v39, %v897_v46  ;;  %v1224_v44 = vmul.f32 %v9829_v15, %v9442_v61  ;;  %v1676_v37 = vadd.f32 %v1612_v36, %v1287_v60  ;;  %v1738_v59 = vmax.f32 %v1674_v21, 0.0  ;;  %v12986_v36 = vld [vmem:[#allocation96_spill] sm:$0xff] }
 0x229   :  { %v1737_v31 = vmax.f32 %v1673_v34, 0.0  ;;  %v1614_v54 = vmul.f32 %v9854_v19, %v1377_v56  ;;  %v1611_v52 = vmul.f32 %v9854_v19, %v1365_v33  ;;  %8432 = vmatprep.mubr.bf16.mxu0 %v1799_v22  ;;  %v9947_v63 = vadd.f32 %v9596_v0, %v488_v25  ;;  %v12989_v22 = vld [vmem:[#allocation98_spill] sm:$0xff] }
 0x22a   :  { %v899_v13 = vadd.f32 %v835_v18, %v9650_v40  ;;  %v837_v24 = vmul.f32 %v9801_v62, %v12985_v48  ;;  %v902_v61 = vadd.f32 %v838_v53, %v9659_v43  ;;  %v1289_v17 = vadd.f32 %v1225_v42, %v900_v51  ;;  %v12988_v42 = vld [vmem:[#allocation95_spill] sm:$0xff] }
 0x22b   :  { %v1227_v21 = vmul.f32 %v9829_v15, %v9458_v8  ;;  %v1675_v1 = vadd.f32 %v1611_v52, %v1286_v35  ;;  %v1800_v39 = vpack.c.bf16 %v1738_v59, %v1737_v31  ;;  %v840_v56 = vmul.f32 %v9801_v62, %v12986_v36  ;;  %v1373_v40 = vpop.permute.xlu1 %1372  ;;  %v1393_v46 = vpop.permute.xlu0 %1392  ;;  %v12987_v8 = vld [vmem:[#allocation74_spill] sm:$0xff] }
 0x22c   :  { %v1288_v49 = vadd.f32 %v1224_v44, %v899_v13  ;;  %v1226_v25 = vmul.f32 %v9829_v15, %v9448_v5  ;;  %v1740_v20 = vmax.f32 %v1676_v37, 0.0  ;;  %v1678_v58 = vadd.f32 %v1614_v54, %v1289_v17 }
 0x22d   :  { %v1739_v18 = vmax.f32 %v1675_v1, 0.0  ;;  %v1616_v43 = vmul.f32 %v9854_v19, %v1385_v57  ;;  %v1613_v41 = vmul.f32 %v9854_v19, %v1373_v40  ;;  %8433 = vmatmul.mubr.bf16.vlgmr.msra.gmra.mrb[0].mxu0 %v1800_v39  ;;  %v491_v53 = vmul.f32 %v9581_v45, %v12987_v8 }
 0x22e   :  { %v901_v60 = vadd.f32 %v837_v24, %v9668_v38  ;;  %v839_v34 = vmul.f32 %v9801_v62, %v12988_v42  ;;  %v1229_v5 = vmul.f32 %v9829_v15, %v9464_v7  ;;  %v842_v51 = vmul.f32 %v9801_v62, %v12989_v22  ;;  %v12990_v24 = vld [vmem:[#allocation75_spill] sm:$0xff] }
 0x22f   :  { %v1291_v35 = vadd.f32 %v1227_v21, %v902_v61  ;;  %v1677_v44 = vadd.f32 %v1613_v41, %v1288_v49  ;;  %v1801_v37 = vpack.c.bf16 %v1740_v20, %v1739_v18  ;;  %v904_v33 = vadd.f32 %v840_v56, %v9671_v29  ;;  %v1381_v31 = vpop.permute.xlu1 %1380  ;;  %v1401_v54 = vpop.permute.xlu0 %1400  ;;  %v12991_v29 = vld [vmem:[#allocation97_spill] sm:$0xff]  ;;  %v12992_v49 = vld [vmem:[#allocation100_spill] sm:$0xff] }
 0x230   :  { %v1290_v57 = vadd.f32 %v1226_v25, %v901_v60  ;;  %v1228_v59 = vmul.f32 %v9829_v15, %v9454_v2  ;;  %v1618_v38 = vmul.f32 %v9854_v19, %v1393_v46  ;;  %v1742_v52 = vmax.f32 %v1678_v58, 0.0  ;;  %v12993_v60 = vld [vmem:[#allocation99_spill] sm:$0xff] }
 0x231   :  { %v1680_v13 = vadd.f32 %v1616_v43, %v1291_v35  ;;  %v1741_v48 = vmax.f32 %v1677_v44, 0.0  ;;  %v1615_v7 = vmul.f32 %v9854_v19, %v1381_v31  ;;  %8436 = vmatprep.mubr.bf16.mxu0 %v1801_v37  ;;  %v490_v61 = vmul.f32 %v9581_v45, %v12990_v24 }
 0x232   :  { %v903_v17 = vadd.f32 %v839_v34, %v9682_v6  ;;  %v841_v21 = vmul.f32 %v9801_v62, %v12991_v29  ;;  %v1293_v1 = vadd.f32 %v1229_v5, %v904_v33  ;;  %v906_v2 = vadd.f32 %v842_v51, %v9691_v50  ;;  %v12994_v34 = vld [vmem:[#allocation102_spill] sm:$0xff]  ;;  %v12996_v29 = vld [vmem:[#allocation104_spill] sm:$0xff] }
 0x233   :  { %v1231_v39 = vmul.f32 %v9829_v15, %v9470_v4  ;;  %v1679_v36 = vadd.f32 %v1615_v7, %v1290_v57  ;;  %v1802_v56 = vpack.c.bf16 %v1742_v52, %v1741_v48  ;;  %v844_v25 = vmul.f32 %v9801_v62, %v12992_v49  ;;  %v1389_v6 = vpop.permute.xlu1 %1388  ;;  %v1409_v58 = vpop.permute.xlu0 %1408 }
 0x234   :  { %v1292_v20 = vadd.f32 %v1228_v59, %v903_v17  ;;  %v1230_v40 = vmul.f32 %v9829_v15, %v9460_v3  ;;  %v1682_v46 = vadd.f32 %v1618_v38, %v1293_v1  ;;  %v1744_v18 = vmax.f32 %v1680_v13, 0.0 }
 0x235   :  { %v1743_v43 = vmax.f32 %v1679_v36, 0.0  ;;  %v1620_v41 = vmul.f32 %v9854_v19, %v1401_v54  ;;  %v1617_v50 = vmul.f32 %v9854_v19, %v1389_v6  ;;  %8437 = vmatmul.mubr.bf16.gmra.mrb[4].mxu0 %v1802_v56  ;;  %v9990_v4 = vadd.f32 %v9596_v0, %v491_v53 }
 0x236   :  { %v905_v8 = vadd.f32 %v841_v21, %v9694_v47  ;;  %v843_v42 = vmul.f32 %v9801_v62, %v12993_v60  ;;  %v846_v3 = vmul.f32 %v9801_v62, %v12994_v34  ;;  %v1295_v5 = vadd.f32 %v1231_v39, %v906_v2 }
 0x237   :  { %v1233_v22 = vmul.f32 %v9829_v15, %v9476_v12  ;;  %v1681_v51 = vadd.f32 %v1617_v50, %v1292_v20  ;;  %v1803_v35 = vpack.c.bf16 %v1744_v18, %v1743_v43  ;;  %v908_v44 = vadd.f32 %v844_v25, %v9701_v27  ;;  %v1397_v47 = vpop.permute.xlu1 %1396  ;;  %v1417_v57 = vpop.permute.xlu0 %1416  ;;  %v12995_v27 = vld [vmem:[#allocation101_spill] sm:$0xff]  ;;  %v12997_v25 = vld [vmem:[#allocation103_spill] sm:$0xff] }
 0x238   :  { %v1294_v37 = vadd.f32 %v1230_v40, %v905_v8  ;;  %v1232_v53 = vmul.f32 %v9829_v15, %v9466_v10  ;;  %v1746_v33 = vmax.f32 %v1682_v46, 0.0  ;;  %v1684_v59 = vadd.f32 %v1620_v41, %v1295_v5  ;;  %v12998_v40 = vld [vmem:[#allocation106_spill] sm:$0xff] }
 0x239   :  { %v1745_v38 = vmax.f32 %v1681_v51, 0.0  ;;  %v1622_v31 = vmul.f32 %v9854_v19, %v1409_v58  ;;  %v1619_v54 = vmul.f32 %v9854_v19, %v1397_v47  ;;  %8440 = vmatprep.mubr.bf16.mxu0 %v1803_v35  ;;  %v10005_v12 = vadd.f32 %v9596_v0, %v490_v61  ;;  %v13000_v35 = vld [vmem:[#allocation77_spill] sm:$0xff] }
 0x23a   :  { %v907_v52 = vadd.f32 %v843_v42, %v9704_v23  ;;  %v845_v13 = vmul.f32 %v9801_v62, %v12995_v27  ;;  %v1235_v10 = vmul.f32 %v9829_v15, %v9482_v14  ;;  %v910_v48 = vadd.f32 %v846_v3, %v9707_v28 }
 0x23b   :  { %v1297_v7 = vadd.f32 %v1233_v22, %v908_v44  ;;  %v1683_v24 = vadd.f32 %v1619_v54, %v1294_v37  ;;  %v1804_v17 = vpack.c.bf16 %v1746_v33, %v1745_v38  ;;  %v848_v21 = vmul.f32 %v9801_v62, %v12996_v29  ;;  %v1405_v2 = vpop.permute.xlu1 %1404  ;;  %v1425_v39 = vpop.permute.xlu0 %1424  ;;  %v13001_v44 = vld [vmem:[#allocation31_spill] sm:$0xff]  ;;  %v13003_v33 = vld [vmem:[#allocation12_spill] sm:$0xff] }
 0x23c   :  { %v1296_v1 = vadd.f32 %v1232_v53, %v907_v52  ;;  %v1234_v61 = vmul.f32 %v9829_v15, %v9472_v9  ;;  %v1624_v23 = vmul.f32 %v9854_v19, %v1417_v57  ;;  %v1748_v36 = vmax.f32 %v1684_v59, 0.0  ;;  %v12999_v9 = vld [vmem:[#allocation76_spill] sm:$0xff]  ;;  %v13004_v57 = vld [vmem:[#allocation146_spill] sm:$0xff] }
 0x23d   :  { %v1686_v56 = vadd.f32 %v1622_v31, %v1297_v7  ;;  %v1747_v49 = vmax.f32 %v1683_v24, 0.0  ;;  %v1621_v14 = vmul.f32 %v9854_v19, %v1405_v2  ;;  %8441 = vmatmul.mubr.bf16.gmra.mrb[8].mxu0 %v1804_v17  ;;  %v909_v28 = vadd.f32 %v845_v13, %v9712_v26  ;;  %v13005_v54 = vld [vmem:[#allocation108_spill] sm:$0xff] }
 0x23e   :  { %v847_v20 = vmul.f32 %v9801_v62, %v12997_v25  ;;  %v850_v46 = vmul.f32 %v9801_v62, %v12998_v40  ;;  %v1299_v6 = vadd.f32 %v1235_v10, %v910_v48  ;;  %v493_v58 = vmul.f32 %v9581_v45, %v12999_v9  ;;  %v13006_v13 = vld [vmem:[#allocation144_spill] sm:$0xff] }
 0x23f   :  { %v1237_v18 = vmul.f32 %v9829_v15, %v9488_v16  ;;  %v1685_v43 = vadd.f32 %v1621_v14, %v1296_v1  ;;  %v1805_v41 = vpack.c.bf16 %v1748_v36, %v1747_v49  ;;  %v912_v50 = vadd.f32 %v848_v21, %v9715_v30  ;;  %v1413_v42 = vpop.permute.xlu1 %1412  ;;  %v1433_v34 = vpop.permute.xlu0 %1432  ;;  %v13002_v30 = vld [vmem:[#allocation105_spill] sm:$0xff]  ;;  %v13010_v14 = vld [vmem:[#allocation110_spill] sm:$0xff] }
 0x240   :  { %v1298_v8 = vadd.f32 %v1234_v61, %v909_v28  ;;  %v1236_v26 = vmul.f32 %v9829_v15, %v9478_v11  ;;  %v1688_v60 = vadd.f32 %v1624_v23, %v1299_v6  ;;  %v1750_v3 = vmax.f32 %v1686_v56, 0.0  ;;  %v13007_v23 = vld [vmem:[#allocation32_spill] sm:$0xff] }
 0x241   :  { %v1749_v5 = vmax.f32 %v1685_v43, 0.0  ;;  %v1626_v22 = vmul.f32 %v9854_v19, %v1425_v39  ;;  %v1623_v51 = vmul.f32 %v9854_v19, %v1413_v42  ;;  %8444 = vmatprep.mubr.bf16.mxu0 %v1805_v41  ;;  %v492_v16 = vmul.f32 %v9581_v45, %v13000_v35  ;;  %v13008_v39 = vld [vmem:[#allocation107_spill] sm:$0xff]  ;;  %v13009_v56 = vld [vmem:[#allocation148_spill] sm:$0xff] }
 0x242   :  { %v911_v37 = vadd.f32 %v847_v20, %v13001_v44  ;;  %v849_v53 = vmul.f32 %v9801_v62, %v13002_v30  ;;  %v914_v11 = vadd.f32 %v850_v46, %v13003_v33  ;;  %v1301_v47 = vadd.f32 %v1237_v18, %v912_v50  ;;  %v13011_v46 = vld [vmem:[#allocation33_spill] sm:$0xff]  ;;  %v13015_v44 = vld [vmem:[#allocation35_spill] sm:$0xff]  ;;  %v13016_v30 = vld [vmem:[#allocation150_spill] sm:$0xff] }
 0x243   :  { %v1239_v59 = vmul.f32 %v9829_v15, %v13004_v57  ;;  %v1687_v38 = vadd.f32 %v1623_v51, %v1298_v8  ;;  %v1806_v31 = vpack.c.bf16 %v1750_v3, %v1749_v5  ;;  %v852_v52 = vmul.f32 %v9801_v62, %v13005_v54  ;;  %v1421_v7 = vpop.permute.xlu1 %1420  ;;  %v1441_v24 = vpop.permute.xlu0 %1440  ;;  %v13012_v18 = vld [vmem:[#allocation145_spill] sm:$0xff]  ;;  %v13013_v3 = vld [vmem:[#allocation34_spill] sm:$0xff] }
 0x244   :  { %v1300_v27 = vadd.f32 %v1236_v26, %v911_v37  ;;  %v1238_v10 = vmul.f32 %v9829_v15, %v13006_v13  ;;  %v1752_v48 = vmax.f32 %v1688_v60, 0.0  ;;  %v1690_v17 = vadd.f32 %v1626_v22, %v1301_v47  ;;  %v13014_v22 = vld [vmem:[#allocation109_spill] sm:$0xff]  ;;  %v13017_v47 = vld [vmem:[#allocation112_spill] sm:$0xff] }
 0x245   :  { %v1751_v29 = vmax.f32 %v1687_v38, 0.0  ;;  %v1628_v21 = vmul.f32 %v9854_v19, %v1433_v34  ;;  %v1625_v1 = vmul.f32 %v9854_v19, %v1421_v7  ;;  %8445 = vmatmul.mubr.bf16.gmra.mrb[12].mxu0 %v1806_v31  ;;  %v10048_v61 = vadd.f32 %v9596_v0, %v493_v58  ;;  %v13018_v38 = vld [vmem:[#allocation147_spill] sm:$0xff]  ;;  %v13019_v7 = vld [vmem:[#allocation78_spill] sm:$0xff] }
 0x246   :  { %v913_v2 = vadd.f32 %v849_v53, %v13007_v23  ;;  %v851_v36 = vmul.f32 %v9801_v62, %v13008_v39  ;;  %v1241_v49 = vmul.f32 %v9829_v15, %v13009_v56  ;;  %v854_v28 = vmul.f32 %v9801_v62, %v13010_v14  ;;  %v13022_v23 = vld [vmem:[#allocation114_spill] sm:$0xff] }
 0x247   :  { %v1303_v25 = vadd.f32 %v1239_v59, %v914_v11  ;;  %v1689_v20 = vadd.f32 %v1625_v1, %v1300_v27  ;;  %v1807_v40 = vpack.c.bf16 %v1752_v48, %v1751_v29  ;;  %v916_v6 = vadd.f32 %v852_v52, %v13011_v46  ;;  %v1429_v41 = vpop.permute.xlu1 %1428  ;;  %v1449_v50 = vpop.permute.xlu0 %1448 }
 0x248   :  { %v1302_v9 = vadd.f32 %v1238_v10, %v913_v2  ;;  %v1240_v58 = vmul.f32 %v9829_v15, %v13012_v18  ;;  %v1630_v43 = vmul.f32 %v9854_v19, %v1441_v24  ;;  %v1754_v8 = vmax.f32 %v1690_v17, 0.0  ;;  %v13020_v17 = vld [vmem:[#allocation36_spill] sm:$0xff] }
 0x249   :  { %v1692_v26 = vadd.f32 %v1628_v21, %v1303_v25  ;;  %v1753_v60 = vmax.f32 %v1689_v20, 0.0  ;;  %v1627_v42 = vmul.f32 %v9854_v19, %v1429_v41  ;;  %8448 = vmatprep.mubr.bf16.mxu0 %v1807_v40  ;;  %v10063_v34 = vadd.f32 %v9596_v0, %v492_v16  ;;  %v13021_v21 = vld [vmem:[#allocation111_spill] sm:$0xff]  ;;  %v13025_v40 = vld [vmem:[#allocation149_spill] sm:$0xff] }
 0x24a   :  { %v915_v5 = vadd.f32 %v851_v36, %v13013_v3  ;;  %v853_v51 = vmul.f32 %v9801_v62, %v13014_v22  ;;  %v1305_v35 = vadd.f32 %v1241_v49, %v916_v6  ;;  %v918_v37 = vadd.f32 %v854_v28, %v13015_v44  ;;  %v13023_v36 = vld [vmem:[#allocation152_spill] sm:$0xff]  ;;  %v13024_v28 = vld [vmem:[#allocation38_spill] sm:$0xff]  ;;  %v13028_v3 = vld [vmem:[#allocation113_spill] sm:$0xff] }
 0x24b   :  { %v1243_v53 = vmul.f32 %v9829_v15, %v13016_v30  ;;  %v1691_v33 = vadd.f32 %v1627_v42, %v1302_v9  ;;  %v1808_v11 = vpack.c.bf16 %v1754_v8, %v1753_v60  ;;  %v856_v57 = vmul.f32 %v9801_v62, %v13017_v47  ;;  %v1437_v54 = vpop.permute.xlu1 %1436  ;;  %v1457_v52 = vpop.permute.xlu0 %1456  ;;  %v13026_v8 = vld [vmem:[#allocation79_spill] sm:$0xff]  ;;  %v13029_v22 = vld [vmem:[#allocation154_spill] sm:$0xff] }
 0x24c   :  { %v1304_v59 = vadd.f32 %v1240_v58, %v915_v5  ;;  %v1242_v16 = vmul.f32 %v9829_v15, %v13018_v38  ;;  %v1694_v31 = vadd.f32 %v1630_v43, %v1305_v35  ;;  %v1756_v27 = vmax.f32 %v1692_v26, 0.0  ;;  %v13027_v60 = vld [vmem:[#allocation39_spill] sm:$0xff]  ;;  %v13030_v35 = vld [vmem:[#allocation40_spill] sm:$0xff] }
 0x24d   :  { %v1755_v13 = vmax.f32 %v1691_v33, 0.0  ;;  %v1632_v10 = vmul.f32 %v9854_v19, %v1449_v50  ;;  %v1629_v48 = vmul.f32 %v9854_v19, %v1437_v54  ;;  %8449 = vmatmul.mubr.bf16.gmra.mrb[16].mxu0 %v1808_v11  ;;  %v495_v24 = vmul.f32 %v9581_v45, %v13019_v7  ;;  %v13031_v33 = vld [vmem:[#allocation116_spill] sm:$0xff]  ;;  %v13034_v7 = vld [vmem:[#allocation115_spill] sm:$0xff] }
 0x24e   :  { %v917_v29 = vadd.f32 %v853_v51, %v13020_v17  ;;  %v855_v1 = vmul.f32 %v9801_v62, %v13021_v21  ;;  %v858_v2 = vmul.f32 %v9801_v62, %v13022_v23  ;;  %v1307_v39 = vadd.f32 %v1243_v53, %v918_v37 }
 0x24f   :  { %v1245_v56 = vmul.f32 %v9829_v15, %v13023_v36  ;;  %v1693_v49 = vadd.f32 %v1629_v48, %v1304_v59  ;;  %v1809_v14 = vpack.c.bf16 %v1756_v27, %v1755_v13  ;;  %v920_v25 = vadd.f32 %v856_v57, %v13024_v28  ;;  %v1445_v9 = vpop.permute.xlu1 %1444  ;;  %v1465_v18 = vpop.permute.xlu0 %1464  ;;  %v13032_v57 = vld [vmem:[#allocation151_spill] sm:$0xff] }
 0x250   :  { %v1306_v20 = vadd.f32 %v1242_v16, %v917_v29  ;;  %v1244_v46 = vmul.f32 %v9829_v15, %v13025_v40  ;;  %v1758_v6 = vmax.f32 %v1694_v31, 0.0  ;;  %v1696_v58 = vadd.f32 %v1632_v10, %v1307_v39  ;;  %v13033_v10 = vld [vmem:[#allocation41_spill] sm:$0xff]  ;;  %v13035_v29 = vld [vmem:[#allocation118_spill] sm:$0xff] }
 0x251   :  { %v1757_v43 = vmax.f32 %v1693_v49, 0.0  ;;  %v1634_v41 = vmul.f32 %v9854_v19, %v1457_v52  ;;  %v1631_v50 = vmul.f32 %v9854_v19, %v1445_v9  ;;  %8452 = vmatprep.mubr.bf16.mxu0 %v1809_v14  ;;  %v494_v26 = vmul.f32 %v9581_v45, %v13026_v8  ;;  %v13037_v49 = vld [vmem:[#allocation42_spill] sm:$0xff]  ;;  %v13040_v8 = vld [vmem:[#allocation117_spill] sm:$0xff] }
 0x252   :  { %v919_v42 = vadd.f32 %v855_v1, %v13027_v60  ;;  %v857_v5 = vmul.f32 %v9801_v62, %v13028_v3  ;;  %v1247_v51 = vmul.f32 %v9829_v15, %v13029_v22  ;;  %v922_v44 = vadd.f32 %v858_v2, %v13030_v35  ;;  %v13036_v2 = vld [vmem:[#allocation156_spill] sm:$0xff]  ;;  %v13042_v22 = vld [vmem:[#allocation158_spill] sm:$0xff] }
 0x253   :  { %v1309_v37 = vadd.f32 %v1245_v56, %v920_v25  ;;  %v1695_v30 = vadd.f32 %v1631_v50, %v1306_v20  ;;  %v1810_v53 = vpack.c.bf16 %v1758_v6, %v1757_v43  ;;  %v860_v11 = vmul.f32 %v9801_v62, %v13031_v33  ;;  %v1453_v16 = vpop.permute.xlu1 %1452  ;;  %v1473_v31 = vpop.permute.xlu0 %1472  ;;  %v13038_v25 = vld [vmem:[#allocation153_spill] sm:$0xff]  ;;  %v13044_v33 = vld [vmem:[#allocation155_spill] sm:$0xff] }
 0x254   :  { %v1308_v47 = vadd.f32 %v1244_v46, %v919_v42  ;;  %v1246_v59 = vmul.f32 %v9829_v15, %v13032_v57  ;;  %v1636_v38 = vmul.f32 %v9854_v19, %v1465_v18  ;;  %v1760_v54 = vmax.f32 %v1696_v58, 0.0  ;;  %v13041_v42 = vld [vmem:[#allocation44_spill] sm:$0xff] }
 0x255   :  { %v1698_v52 = vadd.f32 %v1634_v41, %v1309_v37  ;;  %v1759_v27 = vmax.f32 %v1695_v30, 0.0  ;;  %v1633_v13 = vmul.f32 %v9854_v19, %v1453_v16  ;;  %8453 = vmatmul.mubr.bf16.gmra.mrb[20].mxu0 %v1810_v53  ;;  %v921_v48 = vadd.f32 %v857_v5, %v13033_v10  ;;  %v13039_v41 = vld [vmem:[#allocation43_spill] sm:$0xff]  ;;  %v13043_v37 = vld [vmem:[#allocation120_spill] sm:$0xff] }
 0x256   :  { %v859_v17 = vmul.f32 %v9801_v62, %v13034_v7  ;;  %v862_v21 = vmul.f32 %v9801_v62, %v13035_v29  ;;  %v1311_v1 = vadd.f32 %v1247_v51, %v922_v44  ;;  %v10111_v23 = vadd.f32 %v9596_v0, %v495_v24  ;;  %v13047_v10 = vld [vmem:[#allocation119_spill] sm:$0xff]  ;;  %v13048_v7 = vld [vmem:[#allocation160_spill] sm:$0xff]  ;;  %v13049_v29 = vld [vmem:[#allocation122_spill] sm:$0xff] }
 0x257   :  { %v1249_v39 = vmul.f32 %v9829_v15, %v13036_v2  ;;  %v1697_v36 = vadd.f32 %v1633_v13, %v1308_v47  ;;  %v1811_v56 = vpack.c.bf16 %v1760_v54, %v1759_v27  ;;  %v924_v14 = vadd.f32 %v860_v11, %v13037_v49  ;;  %v1461_v46 = vpop.permute.xlu1 %1460  ;;  %v1481_v6 = vpop.permute.xlu0 %1480  ;;  %v13045_v54 = vld [vmem:[#allocation80_spill] sm:$0xff]  ;;  %v13046_v27 = vld [vmem:[#allocation45_spill] sm:$0xff] }
 0x258   :  { %v1310_v28 = vadd.f32 %v1246_v59, %v921_v48  ;;  %v1248_v20 = vmul.f32 %v9829_v15, %v13038_v25  ;;  %v1700_v40 = vadd.f32 %v1636_v38, %v1311_v1  ;;  %v1762_v9 = vmax.f32 %v1698_v52, 0.0 }
 0x259   :  { %v1761_v18 = vmax.f32 %v1697_v36, 0.0  ;;  %v1638_v58 = vmul.f32 %v9854_v19, %v1473_v31  ;;  %v1635_v24 = vmul.f32 %v9854_v19, %v1461_v46  ;;  %8456 = vmatprep.mubr.bf16.mxu0 %v1811_v56  ;;  %v10121_v43 = vadd.f32 %v9596_v0, %v494_v26  ;;  %v13050_v36 = vld [vmem:[#allocation16_spill] sm:$0xff] }
 0x25a   :  { %v923_v50 = vadd.f32 %v859_v17, %v13039_v41  ;;  %v861_v60 = vmul.f32 %v9801_v62, %v13040_v8  ;;  %v926_v3 = vadd.f32 %v862_v21, %v13041_v42  ;;  %v1313_v5 = vadd.f32 %v1249_v39, %v924_v14  ;;  %v13051_v14 = vld [vmem:[#allocation157_spill] sm:$0xff]  ;;  %v13053_v41 = vld [vmem:[#allocation47_spill] sm:$0xff] }
 0x25b   :  { %v1251_v51 = vmul.f32 %v9829_v15, %v13042_v22  ;;  %v1699_v35 = vadd.f32 %v1635_v24, %v1310_v28  ;;  %v1812_v44 = vpack.c.bf16 %v1762_v9, %v1761_v18  ;;  %v864_v30 = vmul.f32 %v9801_v62, %v13043_v37  ;;  %v1469_v47 = vpop.permute.xlu1 %1468  ;;  %v1489_v57 = vpop.permute.xlu0 %1488  ;;  %v13054_v8 = vld [vmem:[#allocation121_spill] sm:$0xff]  ;;  %v13056_v22 = vld [vmem:[#allocation162_spill] sm:$0xff]  ;;  %v13057_v37 = vld [vmem:[#allocation124_spill] sm:$0xff] }
 0x25c   :  { %v1312_v53 = vadd.f32 %v1248_v20, %v923_v50  ;;  %v1250_v26 = vmul.f32 %v9829_v15, %v13044_v33  ;;  %v1764_v11 = vmax.f32 %v1700_v40, 0.0  ;;  %v1702_v59 = vadd.f32 %v1638_v58, %v1313_v5  ;;  %v13052_v58 = vld [vmem:[#allocation81_spill] sm:$0xff]  ;;  %v13058_v33 = vld [vmem:[#allocation159_spill] sm:$0xff] }
 0x25d   :  { %v1763_v38 = vmax.f32 %v1699_v35, 0.0  ;;  %v1640_v16 = vmul.f32 %v9854_v19, %v1481_v6  ;;  %v1637_v31 = vmul.f32 %v9854_v19, %v1469_v47  ;;  %8457 = vmatmul.mubr.bf16.gmra.mrb[24].mxu0 %v1812_v44  ;;  %v497_v52 = vmul.f32 %v9581_v45, %v13045_v54  ;;  %v13059_v54 = vld [vmem:[#allocation49_spill] sm:$0xff] }
 0x25e   :  { %v925_v13 = vadd.f32 %v861_v60, %v13046_v27  ;;  %v863_v48 = vmul.f32 %v9801_v62, %v13047_v10  ;;  %v1253_v17 = vmul.f32 %v9829_v15, %v13048_v7  ;;  %v866_v21 = vmul.f32 %v9801_v62, %v13049_v29  ;;  %v13062_v29 = vld [vmem:[#allocation164_spill] sm:$0xff] }
 0x25f   :  { %v1315_v1 = vadd.f32 %v1251_v51, %v926_v3  ;;  %v1701_v2 = vadd.f32 %v1637_v31, %v1312_v53  ;;  %v1813_v39 = vpack.c.bf16 %v1764_v11, %v1763_v38  ;;  %v928_v56 = vadd.f32 %v864_v30, %v13050_v36  ;;  %v1477_v20 = vpop.permute.xlu1 %1476  ;;  %v1497_v40 = vpop.permute.xlu0 %1496  ;;  %v13055_v3 = vld [vmem:[#allocation48_spill] sm:$0xff] }
 0x260   :  { %v1314_v49 = vadd.f32 %v1250_v26, %v925_v13  ;;  %v1252_v28 = vmul.f32 %v9829_v15, %v13051_v14  ;;  %v1642_v25 = vmul.f32 %v9854_v19, %v1489_v57  ;;  %v1766_v46 = vmax.f32 %v1702_v59, 0.0  ;;  %v13060_v13 = vld [vmem:[#allocation123_spill] sm:$0xff] }
 0x261   :  { %v1765_v6 = vmax.f32 %v1701_v2, 0.0  ;;  %v1639_v9 = vmul.f32 %v9854_v19, %v1477_v20  ;;  %8460 = vmatprep.mubr.bf16.mxu0 %v1813_v39  ;;  %v1704_v18 = vadd.f32 %v1640_v16, %v1315_v1  ;;  %v496_v24 = vmul.f32 %v9581_v45, %v13052_v58  ;;  %v13063_v39 = vld [vmem:[#allocation50_spill] sm:$0xff] }
 0x262   :  { %v927_v50 = vadd.f32 %v863_v48, %v13053_v41  ;;  %v865_v60 = vmul.f32 %v9801_v62, %v13054_v8  ;;  %v1317_v42 = vadd.f32 %v1253_v17, %v928_v56  ;;  %v930_v5 = vadd.f32 %v866_v21, %v13055_v3  ;;  %v13061_v48 = vld [vmem:[#allocation126_spill] sm:$0xff]  ;;  %v13066_v41 = vld [vmem:[#allocation125_spill] sm:$0xff] }
 0x263   :  { %v1255_v51 = vmul.f32 %v9829_v15, %v13056_v22  ;;  %v1814_v35 = vpack.c.bf16 %v1766_v46, %v1765_v6  ;;  %v1703_v44 = vadd.f32 %v1639_v9, %v1314_v49  ;;  %v868_v30 = vmul.f32 %v9801_v62, %v13057_v37  ;;  %v1485_v11 = vpop.permute.xlu1 %1484  ;;  %v1505_v47 = vpop.permute.xlu0 %1504  ;;  %v13064_v49 = vld [vmem:[#allocation161_spill] sm:$0xff]  ;;  %v13067_v8 = vld [vmem:[#allocation166_spill] sm:$0xff] }
 0x264   :  { %v1316_v53 = vadd.f32 %v1252_v28, %v927_v50  ;;  %v1254_v45 = vmul.f32 %v9829_v15, %v13058_v33  ;;  %v1706_v26 = vadd.f32 %v1642_v25, %v1317_v42  ;;  %v1644_v57 = vmul.f32 %v9854_v19, %v1497_v40  ;;  %v13068_v42 = vld [vmem:[#allocation52_spill] sm:$0xff] }
 0x265   :  { %v1641_v59 = vmul.f32 %v9854_v19, %v1485_v11  ;;  %8461 = vmatmul.mubr.bf16.gmra.mrb[28].mxu0 %v1814_v35  ;;  %v1767_v38 = vmax.f32 %v1703_v44, 0.0  ;;  %v1768_v16 = vmax.f32 %v1704_v18, 0.0  ;;  %v10164_v31 = vadd.f32 %v9596_v0, %v497_v52  ;;  %v13065_v18 = vld [vmem:[#allocation51_spill] sm:$0xff]  ;;  %v13069_v35 = vld [vmem:[#allocation128_spill] sm:$0xff] }
 0x266   :  { %v929_v27 = vadd.f32 %v865_v60, %v13059_v54  ;;  %v867_v10 = vmul.f32 %v9801_v62, %v13060_v13  ;;  %v870_v7 = vmul.f32 %v9801_v62, %v13061_v48  ;;  %v1319_v17 = vadd.f32 %v1255_v51, %v930_v5  ;;  %v13073_v54 = vld [vmem:[#allocation130_spill] sm:$0xff] }
 0x267   :  { %v1257_v21 = vmul.f32 %v9829_v15, %v13062_v29  ;;  %v1705_v1 = vadd.f32 %v1641_v59, %v1316_v53  ;;  %v1815_v2 = vpack.c.bf16 %v1768_v16, %v1767_v38  ;;  %v932_v36 = vadd.f32 %v868_v30, %v13063_v39  ;;  %v1493_v28 = vpop.permute.xlu1 %1492  ;;  %v1513_v25 = vpop.permute.xlu0 %1512  ;;  %v13070_v30 = vld [vmem:[#allocation163_spill] sm:$0xff]  ;;  %v13074_v48 = vld [vmem:[#allocation82_spill] sm:$0xff] }
 0x268   :  { %v1318_v56 = vadd.f32 %v1254_v45, %v929_v27  ;;  %v1256_v52 = vmul.f32 %v9829_v15, %v13064_v49  ;;  %v1770_v14 = vmax.f32 %v1706_v26, 0.0  ;;  %v1708_v20 = vadd.f32 %v1644_v57, %v1319_v17  ;;  %v13071_v57 = vld [vmem:[#allocation53_spill] sm:$0xff]  ;;  %v13072_v38 = vld [vmem:[#allocation127_spill] sm:$0xff]  ;;  %v13075_v17 = vld [vmem:[#allocation168_spill] sm:$0xff] }
 0x269   :  { %v1769_v40 = vmax.f32 %v1705_v1, 0.0  ;;  %v1646_v46 = vmul.f32 %v9854_v19, %v1505_v47  ;;  %v1643_v6 = vmul.f32 %v9854_v19, %v1493_v28  ;;  %8464 = vmatprep.mubr.bf16.mxu1 %v1815_v2  ;;  %v10179_v9 = vadd.f32 %v9596_v0, %v496_v24  ;;  %v13076_v2 = vld [vmem:[#allocation54_spill] sm:$0xff] }
 0x26a   :  { %v931_v58 = vadd.f32 %v867_v10, %v13065_v18  ;;  %v869_v50 = vmul.f32 %v9801_v62, %v13066_v41  ;;  %v1259_v60 = vmul.f32 %v9829_v15, %v13067_v8  ;;  %v934_v3 = vadd.f32 %v870_v7, %v13068_v42  ;;  %v10201_v10 = vld [vmem:[%s12612_s1] ss:$0 sm:$0xff]  ;;  %v13079_v41 = vld [vmem:[#allocation129_spill] sm:$0xff]  ;;  %v13080_v8 = vld [vmem:[#allocation55_spill] sm:$0xff] }
 0x26b   :  { %v1321_v5 = vadd.f32 %v1257_v21, %v932_v36  ;;  %v1707_v22 = vadd.f32 %v1643_v6, %v1318_v56  ;;  %v1816_v51 = vpack.c.bf16 %v1770_v14, %v1769_v40  ;;  %v872_v44 = vmul.f32 %v9801_v62, %v13069_v35  ;;  %v1501_v53 = vpop.permute.xlu1 %1500  ;;  %v1521_v33 = vpop.permute.xlu0 %1520  ;;  %v13077_v56 = vld [vmem:[#allocation165_spill] sm:$0xff]  ;;  %v13078_v6 = vld [vmem:[#allocation83_spill] sm:$0xff]  ;;  %v13082_v35 = vld [vmem:[#allocation132_spill] sm:$0xff] }
 0x26c   :  { %v1320_v37 = vadd.f32 %v1256_v52, %v931_v58  ;;  %v1258_v0 = vmul.f32 %v9829_v15, %v13070_v30  ;;  %v1648_v24 = vmul.f32 %v9854_v19, %v1513_v25  ;;  %v1772_v45 = vmax.f32 %v1708_v20, 0.0  ;;  %v13083_v30 = vld [vmem:[#allocation167_spill] sm:$0xff] }
 0x26d   :  { %v1710_v26 = vadd.f32 %v1646_v46, %v1321_v5  ;;  %v1771_v11 = vmax.f32 %v1707_v22, 0.0  ;;  %v1645_v47 = vmul.f32 %v9854_v19, %v1501_v53  ;;  %8465 = vmatmul.mubr.bf16.vlgmr.msra.gmra.mrb[0].mxu1 %v1816_v51  ;;  %v933_v59 = vadd.f32 %v869_v50, %v13071_v57 }
 0x26e   :  { %v871_v16 = vmul.f32 %v9801_v62, %v13072_v38  ;;  %v874_v27 = vmul.f32 %v9801_v62, %v13073_v54  ;;  %v1323_v13 = vadd.f32 %v1259_v60, %v934_v3  ;;  %v499_v7 = vmul.f32 %v10201_v10, %v13074_v48  ;;  %v13081_v3 = vld [vmem:[#allocation170_spill] sm:$0xff] }
 0x26f   :  { %v1261_v29 = vmul.f32 %v9829_v15, %v13075_v17  ;;  %v1709_v21 = vadd.f32 %v1645_v47, %v1320_v37  ;;  %v1817_v1 = vpack.c.bf16 %v1772_v45, %v1771_v11  ;;  %v936_v39 = vadd.f32 %v872_v44, %v13076_v2  ;;  %v1509_v14 = vpop.permute.xlu1 %1508  ;;  %v1529_v28 = vpop.permute.xlu0 %1528  ;;  %v10229_v47 = vld [vmem:[%s12613_s2] ss:$0 sm:$0xff]  ;;  %v13087_v48 = vld [vmem:[#allocation134_spill] sm:$0xff]  ;;  %v13088_v2 = vld [vmem:[#allocation57_spill] sm:$0xff] }
 0x270   :  { %v1322_v36 = vadd.f32 %v1258_v0, %v933_v59  ;;  %v1260_v49 = vmul.f32 %v9829_v15, %v13077_v56  ;;  %v1712_v52 = vadd.f32 %v1648_v24, %v1323_v13  ;;  %v1774_v25 = vmax.f32 %v1710_v26, 0.0  ;;  %v13084_v59 = vld [vmem:[#allocation56_spill] sm:$0xff]  ;;  %v13089_v56 = vld [vmem:[#allocation169_spill] sm:$0xff] }
 0x271   :  { %v1773_v20 = vmax.f32 %v1709_v21, 0.0  ;;  %v1650_v40 = vmul.f32 %v9854_v19, %v1521_v33  ;;  %v1647_v46 = vmul.f32 %v9854_v19, %v1509_v14  ;;  %8468 = vmatprep.mubr.bf16.mxu1 %v1817_v1  ;;  %v498_v18 = vmul.f32 %v10201_v10, %v13078_v6  ;;  %v13090_v6 = vld [vmem:[#allocation58_spill] sm:$0xff] }
 0x272   :  { %v935_v58 = vadd.f32 %v871_v16, %v9888_v32  ;;  %v873_v50 = vmul.f32 %v9801_v62, %v13079_v41  ;;  %v938_v60 = vadd.f32 %v874_v27, %v13080_v8  ;;  %v1325_v42 = vadd.f32 %v1261_v29, %v936_v39  ;;  %v13085_v16 = vld [vmem:[#allocation131_spill] sm:$0xff]  ;;  %v13086_v27 = vld [vmem:[#allocation172_spill] sm:$0xff]  ;;  %v13091_v41 = vld [vmem:[#allocation133_spill] sm:$0xff] }
 0x273   :  { %v1263_v5 = vmul.f32 %v9829_v15, %v13081_v3  ;;  %v1711_v22 = vadd.f32 %v1647_v46, %v1322_v36  ;;  %v1818_v51 = vpack.c.bf16 %v1774_v25, %v1773_v20  ;;  %v876_v44 = vmul.f32 %v9801_v62, %v13082_v35  ;;  %v1517_v32 = vpop.permute.xlu1 %1516  ;;  %v1537_v53 = vpop.permute.xlu0 %1536 }
 0x274   :  { %v1324_v37 = vadd.f32 %v1260_v49, %v935_v58  ;;  %v1262_v0 = vmul.f32 %v9829_v15, %v13083_v30  ;;  %v1776_v24 = vmax.f32 %v1712_v52, 0.0  ;;  %v1714_v33 = vadd.f32 %v1650_v40, %v1325_v42  ;;  %v13092_v42 = vld [vmem:[#allocation9_spill] sm:$0xff] }
 0x275   :  { %v1775_v45 = vmax.f32 %v1711_v22, 0.0  ;;  %v1652_v26 = vmul.f32 %v9854_v19, %v1529_v28  ;;  %v1649_v11 = vmul.f32 %v9854_v19, %v1517_v32  ;;  %8469 = vmatmul.mubr.bf16.gmra.mrb[4].mxu1 %v1818_v51  ;;  %v10232_v57 = vadd.f32 %v10229_v47, %v499_v7  ;;  %v13093_v51 = vld [vmem:[#allocation136_spill] sm:$0xff] }
 0x276   :  { %v937_v38 = vadd.f32 %v873_v50, %v13084_v59  ;;  %v875_v54 = vmul.f32 %v9801_v62, %v13085_v16  ;;  %v1265_v13 = vmul.f32 %v9829_v15, %v13086_v27  ;;  %v878_v17 = vmul.f32 %v9801_v62, %v13087_v48  ;;  %v13096_v59 = vld [vmem:[#allocation135_spill] sm:$0xff]  ;;  %v13097_v16 = vld [vmem:[#allocation138_spill] sm:$0xff] }
 0x277   :  { %v1327_v29 = vadd.f32 %v1263_v5, %v938_v60  ;;  %v1713_v21 = vadd.f32 %v1649_v11, %v1324_v37  ;;  %v1819_v1 = vpack.c.bf16 %v1776_v24, %v1775_v45  ;;  %v940_v39 = vadd.f32 %v876_v44, %v13088_v2  ;;  %v1525_v52 = vpop.permute.xlu1 %1524  ;;  %v1545_v14 = vpop.permute.xlu0 %1544  ;;  %v13094_v37 = vld [vmem:[#allocation171_spill] sm:$0xff]  ;;  %v13095_v45 = vld [vmem:[#allocation84_spill] sm:$0xff]  ;;  %v13099_v2 = vld [vmem:[#allocation173_spill] sm:$0xff] }
 0x278   :  { %v1326_v36 = vadd.f32 %v1262_v0, %v937_v38  ;;  %v1264_v7 = vmul.f32 %v9829_v15, %v13089_v56  ;;  %v1654_v49 = vmul.f32 %v9854_v19, %v1537_v53  ;;  %v1778_v28 = vmax.f32 %v1714_v33, 0.0 }
 0x279   :  { %v1716_v25 = vadd.f32 %v1652_v26, %v1327_v29  ;;  %v1777_v20 = vmax.f32 %v1713_v21, 0.0  ;;  %v1651_v40 = vmul.f32 %v9854_v19, %v1525_v52  ;;  %8472 = vmatprep.mubr.bf16.mxu1 %v1819_v1  ;;  %v10247_v46 = vadd.f32 %v10229_v47, %v498_v18 }
 0x27a   :  { %v939_v58 = vadd.f32 %v875_v54, %v13090_v6  ;;  %v877_v50 = vmul.f32 %v9801_v62, %v13091_v41  ;;  %v1329_v8 = vadd.f32 %v1265_v13, %v940_v39  ;;  %v942_v60 = vadd.f32 %v878_v17, %v9937_v55  ;;  %v13098_v13 = vld [vmem:[#allocation10_spill] sm:$0xff]  ;;  %v13102_v6 = vld [vmem:[#allocation25_spill] sm:$0xff] }
 0x27b   :  { %v1267_v3 = vmul.f32 %v9829_v15, %v13092_v42  ;;  %v1715_v5 = vadd.f32 %v1651_v40, %v1326_v36  ;;  %v1820_v22 = vpack.c.bf16 %v1778_v28, %v1777_v20  ;;  %v880_v35 = vmul.f32 %v9801_v62, %v13093_v51  ;;  %v1533_v0 = vpop.permute.xlu1 %1532  ;;  %v1553_v24 = vpop.permute.xlu0 %1552  ;;  %v13101_v20 = vld [vmem:[#allocation137_spill] sm:$0xff]  ;;  %v13103_v42 = vld [vmem:[#allocation139_spill] sm:$0xff] }
 0x27c   :  { %v1328_v44 = vadd.f32 %v1264_v7, %v939_v58  ;;  %v1266_v18 = vmul.f32 %v9829_v15, %v13094_v37  ;;  %v1718_v30 = vadd.f32 %v1654_v49, %v1329_v8  ;;  %v1780_v32 = vmax.f32 %v1716_v25, 0.0 }
 0x27d   :  { %v1779_v53 = vmax.f32 %v1715_v5, 0.0  ;;  %v1656_v33 = vmul.f32 %v9854_v19, %v1545_v14  ;;  %v1653_v55 = vmul.f32 %v9854_v19, %v1533_v0  ;;  %8473 = vmatmul.mubr.bf16.gmra.mrb[8].mxu1 %v1820_v22  ;;  %v501_v26 = vmul.f32 %v10201_v10, %v13095_v45  ;;  %v13100_v14 = vld [vmem:[#allocation85_spill] sm:$0xff]  ;;  %v13104_v5 = vld [vmem:[#allocation174_spill] sm:$0xff]  ;;  %v10303_v45 = vld [vmem:[%s12612_s1 + $0x2] ss:$0 sm:$0xff] }
 0x27e   :  { %v941_v11 = vadd.f32 %v877_v50, %v9947_v63  ;;  %v879_v38 = vmul.f32 %v9801_v62, %v13096_v59  ;;  %v882_v54 = vmul.f32 %v9801_v62, %v13097_v16  ;;  %v1331_v27 = vadd.f32 %v1267_v3, %v942_v60 }
 0x27f   :  { %v1269_v48 = vmul.f32 %v9829_v15, %v13098_v13  ;;  %v1717_v17 = vadd.f32 %v1653_v55, %v1328_v44  ;;  %v1821_v29 = vpack.c.bf16 %v1780_v32, %v1779_v53  ;;  %v944_v21 = vadd.f32 %v880_v35, %v9990_v4  ;;  %v1541_v63 = vpop.permute.xlu1 %1540  ;;  %v1561_v56 = vpop.permute.xlu0 %1560  ;;  %v10281_v4 = vld [vmem:[%s12612_s1 + $0x1] ss:$0 sm:$0xff] }
 0x280   :  { %v1330_v1 = vadd.f32 %v1266_v18, %v941_v11  ;;  %v1268_v39 = vmul.f32 %v9829_v15, %v13099_v2  ;;  %v1782_v36 = vmax.f32 %v1718_v30, 0.0  ;;  %v1720_v7 = vadd.f32 %v1656_v33, %v1331_v27  ;;  %v13106_v53 = vld [vmem:[#allocation140_spill] sm:$0xff]  ;;  %v13107_v11 = vld [vmem:[#allocation27_spill] sm:$0xff] }
 0x281   :  { %v1781_v49 = vmax.f32 %v1717_v17, 0.0  ;;  %v1658_v52 = vmul.f32 %v9854_v19, %v1553_v24  ;;  %v1655_v62 = vmul.f32 %v9854_v19, %v1541_v63  ;;  %8476 = vmatprep.mubr.bf16.mxu1 %v1821_v29  ;;  %v500_v28 = vmul.f32 %v10201_v10, %v13100_v14  ;;  %v13105_v24 = vld [vmem:[#allocation11_spill] sm:$0xff] }
 0x282   :  { %v943_v25 = vadd.f32 %v879_v38, %v10005_v12  ;;  %v881_v40 = vmul.f32 %v10281_v4, %v13101_v20  ;;  %v1271_v58 = vmul.f32 %v9829_v15, %v13102_v6  ;;  %v946_v41 = vadd.f32 %v882_v54, %v10048_v61  ;;  %v13108_v54 = vld [vmem:[#allocation24_spill] sm:$0xff]  ;;  %v13112_v6 = vld [vmem:[#allocation26_spill] sm:$0xff] }
 0x283   :  { %v1333_v50 = vadd.f32 %v1269_v48, %v944_v21  ;;  %v1719_v8 = vadd.f32 %v1655_v62, %v1330_v1  ;;  %v1822_v60 = vpack.c.bf16 %v1782_v36, %v1781_v49  ;;  %v884_v3 = vmul.f32 %v10281_v4, %v13103_v42  ;;  %v1549_v35 = vpop.permute.xlu1 %1548  ;;  %v1569_v44 = vpop.permute.xlu0 %1568  ;;  %v10313_v21 = vld [vmem:[%s12612_s1 + $0x3] ss:$0 sm:$0xff]  ;;  %v13109_v36 = vld [vmem:[#allocation13_spill] sm:$0xff]  ;;  %v13113_v42 = vld [vmem:[#allocation22_spill] sm:$0xff] }
 0x284   :  { %v1332_v12 = vadd.f32 %v1268_v39, %v943_v25  ;;  %v1270_v22 = vmul.f32 %v9829_v15, %v13104_v5  ;;  %v1660_v51 = vmul.f32 %v9854_v19, %v1561_v56  ;;  %v1784_v37 = vmax.f32 %v1720_v7, 0.0  ;;  %v13110_v49 = vld [vmem:[#allocation29_spill] sm:$0xff]  ;;  %v13114_v5 = vld [vmem:[#allocation15_spill] sm:$0xff] }
 0x285   :  { %v1722_v18 = vadd.f32 %v1658_v52, %v1333_v50  ;;  %v1783_v30 = vmax.f32 %v1719_v8, 0.0  ;;  %v1657_v0 = vmul.f32 %v9854_v19, %v1549_v35  ;;  %8477 = vmatmul.mubr.bf16.gmra.mrb[12].mxu1 %v1822_v60  ;;  %v945_v61 = vadd.f32 %v881_v40, %v10063_v34  ;;  %v13111_v25 = vld [vmem:[#allocation141_spill] sm:$0xff] }
 0x286   :  { %v883_v32 = vmul.f32 %v10281_v4, %v13105_v24  ;;  %v886_v33 = vmul.f32 %v10281_v4, %v13106_v53  ;;  %v1335_v55 = vadd.f32 %v1271_v58, %v946_v41  ;;  %v565_v15 = vadd.f32 %v10229_v47, %v501_v26 }
 0x287   :  { %v1273_v19 = vmul.f32 %v10303_v45, %v13107_v11  ;;  %v1721_v59 = vadd.f32 %v1657_v0, %v1332_v12  ;;  %v1823_v38 = vpack.c.bf16 %v1784_v37, %v1783_v30  ;;  %v948_v34 = vadd.f32 %v884_v3, %v10111_v23  ;;  %v1557_v48 = vpop.permute.xlu1 %1556  ;;  %v1577_v17 = vpop.permute.xlu0 %1576 }
 0x288   :  { %v1334_v16 = vadd.f32 %v1270_v22, %v945_v61  ;;  %v1272_v27 = vmul.f32 %v10303_v45, %v13108_v54  ;;  %v1724_v13 = vadd.f32 %v1660_v51, %v1335_v55  ;;  %v1786_v26 = vmax.f32 %v1722_v18, 0.0  ;;  %v13115_v51 = vld [vmem:[#allocation37_spill] sm:$0xff] }
 0x289   :  { %v1785_v29 = vmax.f32 %v1721_v59, 0.0  ;;  %v1662_v1 = vmul.f32 %v10313_v21, %v1569_v44  ;;  %v1659_v2 = vmul.f32 %v10313_v21, %v1557_v48  ;;  %8480 = vmatprep.mubr.bf16.mxu1 %v1823_v38  ;;  %v564_v23 = vadd.f32 %v10229_v47, %v500_v28  ;;  %v13116_v44 = vld [vmem:[#allocation142_spill] sm:$0xff] }
 0x28a   :  { %v947_v39 = vadd.f32 %v883_v32, %v10121_v43  ;;  %v885_v63 = vmul.f32 %v10281_v4, %v13109_v36  ;;  %v950_v56 = vadd.f32 %v886_v33, %v10164_v31  ;;  %v1337_v7 = vadd.f32 %v1273_v19, %v948_v34  ;;  %v13117_v32 = vld [vmem:[#allocation28_spill] sm:$0xff]  ;;  %v13118_v34 = vld [vmem:[#allocation21_spill] sm:$0xff] }
 0x28b   :  { %v1275_v52 = vmul.f32 %v10303_v45, %v13110_v49  ;;  %v1723_v62 = vadd.f32 %v1659_v2, %v1334_v16  ;;  %v1824_v14 = vpack.c.bf16 %v1786_v26, %v1785_v29  ;;  %v888_v20 = vmul.f32 %v10281_v4, %v13111_v25  ;;  %v1565_v43 = vpop.permute.xlu1 %1564  ;;  %v1585_v41 = vpop.permute.xlu0 %1584  ;;  %v13121_v2 = vld [vmem:[#allocation143_spill] sm:$0xff] }
 0x28c   :  { %v1336_v40 = vadd.f32 %v1272_v27, %v947_v39  ;;  %v1274_v28 = vmul.f32 %v10303_v45, %v13112_v6  ;;  %v1788_v58 = vmax.f32 %v1724_v13, 0.0  ;;  %v1726_v50 = vadd.f32 %v1662_v1, %v1337_v7 }
 0x28d   :  { %v1787_v8 = vmax.f32 %v1723_v62, 0.0  ;;  %v1664_v31 = vmul.f32 %v10313_v21, %v1577_v17  ;;  %v1661_v60 = vmul.f32 %v10313_v21, %v1565_v43  ;;  %8481 = vmatmul.mubr.bf16.gmra.mrb[16].mxu1 %v1824_v14  ;;  %v503_v3 = vmul.f32 %v10201_v10, %v13113_v42  ;;  %v13120_v17 = vld [vmem:[#allocation46_spill] sm:$0xff] }
 0x28e   :  { %v949_v12 = vadd.f32 %v885_v63, %v10179_v9  ;;  %v887_v22 = vmul.f32 %v10281_v4, %v13114_v5  ;;  %v1277_v35 = vmul.f32 %v10303_v45, %v13115_v51  ;;  %v890_v37 = vmul.f32 %v10281_v4, %v13116_v44  ;;  %v13122_v63 = vld [vmem:[#allocation30_spill] sm:$0xff] }
 0x28f   :  { %v1339_v18 = vadd.f32 %v1275_v52, %v950_v56  ;;  %v1725_v30 = vadd.f32 %v1661_v60, %v1336_v40  ;;  %v1825_v0 = vpack.c.bf16 %v1788_v58, %v1787_v8  ;;  %v952_v61 = vadd.f32 %v888_v20, %v10232_v57  ;;  %v1573_v33 = vpop.permute.xlu1 %1572  ;;  %v1593_v55 = vpop.permute.xlu0 %1592  ;;  %v13119_v57 = vld [vmem:[#allocation17_spill] sm:$0xff]  ;;  %v13123_v20 = vld [vmem:[#allocation19_spill] sm:$0xff]  ;;  %v13124_v58 = vld [vmem:[#allocation18_spill] sm:$0xff] }
 0x290   :  { %v1338_v24 = vadd.f32 %v1274_v28, %v949_v12  ;;  %v1276_v53 = vmul.f32 %v10303_v45, %v13117_v32  ;;  %v1666_v9 = vmul.f32 %v10313_v21, %v1585_v41  ;;  %v1790_v11 = vmax.f32 %v1726_v50, 0.0  ;;  %v13125_v60 = vld [vmem:[#allocation14_spill] sm:$0xff] }
 0x291   :  { %v1728_v19 = vadd.f32 %v1664_v31, %v1339_v18  ;;  %v1789_v59 = vmax.f32 %v1725_v30, 0.0  ;;  %v1663_v38 = vmul.f32 %v10313_v21, %v1573_v33  ;;  %8484 = vmatprep.mubr.bf16.mxu1 %v1825_v0  ;;  %v502_v16 = vmul.f32 %v10201_v10, %v13118_v34  ;;  %v10378_v34 = vld [vmem:[%s12616_s5] ss:$0 sm:$0xff] }
 0x292   :  { %v951_v54 = vadd.f32 %v887_v22, %v10247_v46  ;;  %v889_v27 = vmul.f32 %v10281_v4, %v13119_v57  ;;  %v1341_v13 = vadd.f32 %v1277_v35, %v952_v61  ;;  %v954_v48 = vadd.f32 %v890_v37, %v565_v15 }
 0x293   :  { %v1279_v26 = vmul.f32 %v10303_v45, %v13120_v17  ;;  %v1727_v29 = vadd.f32 %v1663_v38, %v1338_v24  ;;  %v1826_v1 = vpack.c.bf16 %v1790_v11, %v1789_v59  ;;  %v892_v39 = vmul.f32 %v10281_v4, %v13121_v2  ;;  %v1581_v7 = vpop.permute.xlu1 %1580  ;;  %v1601_v6 = vpop.permute.xlu0 %1600 }
 0x294   :  { %v1340_v36 = vadd.f32 %v1276_v53, %v951_v54  ;;  %v1278_v56 = vmul.f32 %v10303_v45, %v13122_v63  ;;  %v1730_v10 = vadd.f32 %v1666_v9, %v1341_v13  ;;  %v1792_v46 = vmax.f32 %v1728_v19, 0.0 }
 0x295   :  { %v1791_v49 = vmax.f32 %v1727_v29, 0.0  ;;  %v1668_v52 = vmul.f32 %v10313_v21, %v1593_v55  ;;  %v1665_v15 = vmul.f32 %v10313_v21, %v1581_v7  ;;  %8485 = vmatmul.mubr.bf16.gmra.mrb[20].mxu1 %v1826_v1  ;;  %v567_v62 = vadd.f32 %v10229_v47, %v503_v3  ;;  %v10371_v55 = vld [vmem:[%s12615_s4] ss:$0 sm:$0xff]  ;;  %s8602_s4 = smov [#allocation6]  }
 0x296   :  { %v566_v14 = vadd.f32 %v10229_v47, %v502_v16  ;;  %v953_v25 = vadd.f32 %v889_v27, %v564_v23  ;;  %v891_v40 = vmul.f32 %v10281_v4, %v13123_v20  ;;  %v1343_v28 = vadd.f32 %v1279_v26, %v954_v48  ;;  %s8352_s5 = sshll.u32 %s8602_s4, 4  ;;  %s8353_s5 = int_to_ptr.vmem [resolvable:$true] %s8352_s5 }
 0x297   :  { %v1281_v43 = vmul.f32 %v10303_v45, %v13124_v58  ;;  %v1729_v41 = vadd.f32 %v1665_v15, %v1340_v36  ;;  %v1827_v50 = vpack.c.bf16 %v1792_v46, %v1791_v49  ;;  %v956_v8 = vadd.f32 %v892_v39, %v567_v62  ;;  %v1589_v3 = vpop.permute.xlu1 %1588  ;;  %s8568_s19 = scalar_lea.vmem %s8353_s5, 64  ;;  %p8573_p9 = scmp.lt.s32.totalorder %s8353_s5, %s8353_s5 }
 0x298   :  { %v1342_v31 = vadd.f32 %v1278_v56, %v953_v25  ;;  %v1280_v42 = vmul.f32 %v10303_v45, %v13125_v60  ;;  %v1794_v12 = vmax.f32 %v1730_v10, 0.0  ;;  %v1732_v5 = vadd.f32 %v1668_v52, %v1343_v28  ;;  %p8569_p8 = scmp.ne.s32.totalorder %s8353_s5, %s8568_s19  ;;  %p8574_p10 = scmp.lt.s32.totalorder %s8568_s19, %s8568_s19 }
 0x299   :  { %v1793_v47 = vmax.f32 %v1729_v41, 0.0  ;;  %v1670_v23 = vmul.f32 %v10313_v21, %v1601_v6  ;;  %v1667_v4 = vmul.f32 %v10313_v21, %v1589_v3  ;;  %8488 = vmatprep.mubr.bf16.mxu1 %v1827_v50  ;;  %v955_v22 = vadd.f32 %v891_v40, %v566_v14 }
 0x29a   :  { %v1345_v51 = vadd.f32 %v1281_v43, %v956_v8  ;;  %v1796_v30 = vmax.f32 %v1732_v5, 0.0  ;;  %p8575_p11 = por %p8574_p10, %p8573_p9 }
 0x29b   :  { %v1731_v35 = vadd.f32 %v1667_v4, %v1342_v31  ;;  %v1828_v44 = vpack.c.bf16 %v1794_v12, %v1793_v47  ;;  %v1344_v37 = vadd.f32 %v1280_v42, %v955_v22 }
 0x29c   :  { %v1597_v18 = vpop.permute.xlu1 %1596  ;;  %v1734_v0 = vadd.f32 %v1670_v23, %v1345_v51  ;;  %p8576_p12 = pnand %p8575_p11, %p8569_p8 }
 0x29d   :  { %v1795_v61 = vmax.f32 %v1731_v35, 0.0  ;;  %v1669_v45 = vmul.f32 %v10313_v21, %v1597_v18  ;;  %8489 = vmatmul.mubr.bf16.gmra.mrb[24].mxu1 %v1828_v44 }
 0x29e   :  { %v1798_v53 = vmax.f32 %v1734_v0, 0.0 }
 0x29f   :  { %v1733_v24 = vadd.f32 %v1669_v45, %v1344_v37  ;;  %v1829_v32 = vpack.c.bf16 %v1796_v30, %v1795_v61 }
 0x2a1   :  { %v1797_v9 = vmax.f32 %v1733_v24, 0.0  ;;  %8492 = vmatprep.mubr.bf16.mxu1 %v1829_v32 }
 0x2a3   :  { %v1830_v33 = vpack.c.bf16 %v1798_v53, %v1797_v9 }
 0x2a5   :  { %8493 = vmatmul.mubr.bf16.gmra.mrb[28].mxu1 %v1830_v33 }
 0x300   :  { %v8434_v11 = vpop.f32.mrb[0].mxu0 }
 0x301   :  { %v1936_v19 = vpop.f32.mrb[1].mxu0  ;;  %v1945_v21 = vadd.f32 %v8434_v11, %v10371_v55 }
 0x302   :  { %v1937_v59 = vadd.f32 %v10371_v55, %v1936_v19  ;;  %v8435_v38 = vpop.f32.mrb[2].mxu0 }
 0x303   :  { %v1948_v16 = vadd.f32 %v8435_v38, %v10371_v55  ;;  %v1939_v54 = vpop.f32.mrb[3].mxu0  ;;  %v2193_v26 = vmax.f32 %v1945_v21, 0.0 }
 0x304   :  { %v2191_v57 = vmax.f32 %v1937_v59, 0.0  ;;  %v1940_v27 = vadd.f32 %v10371_v55, %v1939_v54 }
 0x305   :  { %v2194_v48 = vmax.f32 %v1948_v16, 0.0  ;;  %v2264_v56 = vmul.f32 %v10378_v34, %v2193_v26 }
 0x306   :  { %v2262_v13 = vmul.f32 %v10378_v34, %v2191_v57  ;;  %v2192_v17 = vmax.f32 %v1940_v27, 0.0 }
 0x307   :  { %v2265_v39 = vmul.f32 %v10378_v34, %v2194_v48 }
 0x308   :  { %v2263_v29 = vmul.f32 %v10378_v34, %v2192_v17  ;;  %2326 = vadd.xlane.f32.xlu1 %v2262_v13  ;;  %v8438_v1 = vpop.f32.mrb[4].mxu0 }
 0x309   :  { %v1952_v2 = vpop.f32.mrb[5].mxu0  ;;  %v1961_v7 = vadd.f32 %v8438_v1, %v10371_v55 }
 0x30a   :  { %v1953_v36 = vadd.f32 %v10371_v55, %v1952_v2  ;;  %2328 = vadd.xlane.f32.xlu0 %v2263_v29  ;;  %v8439_v63 = vpop.f32.mrb[6].mxu0 }
 0x30b   :  { %v1955_v10 = vpop.f32.mrb[7].mxu0  ;;  %v1964_v49 = vadd.f32 %v8439_v63, %v10371_v55  ;;  %v2197_v62 = vmax.f32 %v1961_v7, 0.0 }
 0x30c   :  { %v2195_v46 = vmax.f32 %v1953_v36, 0.0  ;;  %v1956_v52 = vadd.f32 %v10371_v55, %v1955_v10  ;;  %2332 = vadd.xlane.f32.xlu1 %v2265_v39 }
 0x30d   :  { %v2198_v25 = vmax.f32 %v1964_v49, 0.0  ;;  %v2268_v8 = vmul.f32 %v10378_v34, %v2197_v62 }
 0x30e   :  { %v2196_v15 = vmax.f32 %v1956_v52, 0.0  ;;  %2330 = vadd.xlane.f32.xlu0 %v2264_v56  ;;  %v2266_v14 = vmul.f32 %v10378_v34, %v2195_v46 }
 0x30f   :  { %v2269_v31 = vmul.f32 %v10378_v34, %v2198_v25 }
 0x310   :  { %v2267_v20 = vmul.f32 %v10378_v34, %v2196_v15  ;;  %v8442_v40 = vpop.f32.mrb[8].mxu0 }
 0x311   :  { %v1968_v6 = vpop.f32.mrb[9].mxu0  ;;  %v1977_v43 = vadd.f32 %v8442_v40, %v10371_v55 }
 0x312   :  { %v1969_v28 = vadd.f32 %v10371_v55, %v1968_v6  ;;  %2336 = vadd.xlane.f32.xlu1 %v2267_v20  ;;  %2334 = vadd.xlane.f32.xlu0 %v2266_v14  ;;  %v8443_v58 = vpop.f32.mrb[10].mxu0 }
 0x313   :  { %v1980_v41 = vadd.f32 %v8443_v58, %v10371_v55  ;;  %v1971_v50 = vpop.f32.mrb[11].mxu0  ;;  %v2201_v3 = vmax.f32 %v1977_v43, 0.0 }
 0x314   :  { %v2199_v60 = vmax.f32 %v1969_v28, 0.0  ;;  %v1972_v42 = vadd.f32 %v10371_v55, %v1971_v50 }
 0x315   :  { %v2202_v5 = vmax.f32 %v1980_v41, 0.0  ;;  %v2272_v44 = vmul.f32 %v10378_v34, %v2201_v3 }
 0x316   :  { %v2200_v12 = vmax.f32 %v1972_v42, 0.0  ;;  %2340 = vadd.xlane.f32.xlu1 %v2269_v31  ;;  %2338 = vadd.xlane.f32.xlu0 %v2268_v8  ;;  %v2270_v47 = vmul.f32 %v10378_v34, %v2199_v60 }
 0x317   :  { %v2273_v37 = vmul.f32 %v10378_v34, %v2202_v5 }
 0x318   :  { %v2271_v23 = vmul.f32 %v10378_v34, %v2200_v12  ;;  %v8446_v4 = vpop.f32.mrb[12].mxu0 }
 0x319   :  { %v1984_v22 = vpop.f32.mrb[13].mxu0  ;;  %v1993_v30 = vadd.f32 %v8446_v4, %v10371_v55 }
 0x31a   :  { %v1985_v51 = vadd.f32 %v10371_v55, %v1984_v22  ;;  %2344 = vadd.xlane.f32.xlu1 %v2271_v23  ;;  %2342 = vadd.xlane.f32.xlu0 %v2270_v47  ;;  %v8447_v35 = vpop.f32.mrb[14].mxu0 }
 0x31b   :  { %v1987_v18 = vpop.f32.mrb[15].mxu0  ;;  %v1996_v61 = vadd.f32 %v8447_v35, %v10371_v55  ;;  %v2205_v32 = vmax.f32 %v1993_v30, 0.0 }
 0x31c   :  { %v2203_v0 = vmax.f32 %v1985_v51, 0.0  ;;  %v1988_v45 = vadd.f32 %v10371_v55, %v1987_v18 }
 0x31d   :  { %v2206_v9 = vmax.f32 %v1996_v61, 0.0  ;;  %v2276_v57 = vmul.f32 %v10378_v34, %v2205_v32 }
 0x31e   :  { %v2204_v24 = vmax.f32 %v1988_v45, 0.0  ;;  %2348 = vadd.xlane.f32.xlu1 %v2273_v37  ;;  %2346 = vadd.xlane.f32.xlu0 %v2272_v44  ;;  %v2274_v53 = vmul.f32 %v10378_v34, %v2203_v0 }
 0x31f   :  { %v2277_v27 = vmul.f32 %v10378_v34, %v2206_v9 }
 0x320   :  { %v2275_v33 = vmul.f32 %v10378_v34, %v2204_v24  ;;  %v8450_v11 = vpop.f32.mrb[16].mxu0 }
 0x321   :  { %v2000_v19 = vpop.f32.mrb[17].mxu0  ;;  %v2009_v21 = vadd.f32 %v8450_v11, %v10371_v55 }
 0x322   :  { %v2001_v59 = vadd.f32 %v10371_v55, %v2000_v19  ;;  %2352 = vadd.xlane.f32.xlu1 %v2275_v33  ;;  %2350 = vadd.xlane.f32.xlu0 %v2274_v53  ;;  %v8451_v38 = vpop.f32.mrb[18].mxu0 }
 0x323   :  { %v2012_v16 = vadd.f32 %v8451_v38, %v10371_v55  ;;  %v2003_v54 = vpop.f32.mrb[19].mxu0  ;;  %v2209_v26 = vmax.f32 %v2009_v21, 0.0 }
 0x324   :  { %v2207_v13 = vmax.f32 %v2001_v59, 0.0  ;;  %v2004_v48 = vadd.f32 %v10371_v55, %v2003_v54 }
 0x325   :  { %v2210_v29 = vmax.f32 %v2012_v16, 0.0  ;;  %v2280_v10 = vmul.f32 %v10378_v34, %v2209_v26 }
 0x326   :  { %v2208_v17 = vmax.f32 %v2004_v48, 0.0  ;;  %2356 = vadd.xlane.f32.xlu1 %v2277_v27  ;;  %2354 = vadd.xlane.f32.xlu0 %v2276_v57  ;;  %v2278_v1 = vmul.f32 %v10378_v34, %v2207_v13 }
 0x327   :  { %v2281_v7 = vmul.f32 %v10378_v34, %v2210_v29 }
 0x328   :  { %v2279_v2 = vmul.f32 %v10378_v34, %v2208_v17  ;;  %v8454_v39 = vpop.f32.mrb[20].mxu0 }
 0x329   :  { %v2016_v36 = vpop.f32.mrb[21].mxu0  ;;  %v2025_v49 = vadd.f32 %v8454_v39, %v10371_v55 }
 0x32a   :  { %v2017_v63 = vadd.f32 %v10371_v55, %v2016_v36  ;;  %2360 = vadd.xlane.f32.xlu1 %v2279_v2  ;;  %2358 = vadd.xlane.f32.xlu0 %v2278_v1  ;;  %v8455_v56 = vpop.f32.mrb[22].mxu0 }
 0x32b   :  { %v2019_v46 = vpop.f32.mrb[23].mxu0  ;;  %v2028_v15 = vadd.f32 %v8455_v56, %v10371_v55  ;;  %v2213_v25 = vmax.f32 %v2025_v49, 0.0 }
 0x32c   :  { %v2211_v52 = vmax.f32 %v2017_v63, 0.0  ;;  %v2020_v62 = vadd.f32 %v10371_v55, %v2019_v46 }
 0x32d   :  { %v2214_v40 = vmax.f32 %v2028_v15, 0.0  ;;  %v2284_v60 = vmul.f32 %v10378_v34, %v2213_v25 }
 0x32e   :  { %v2212_v14 = vmax.f32 %v2020_v62, 0.0  ;;  %2364 = vadd.xlane.f32.xlu1 %v2281_v7  ;;  %2362 = vadd.xlane.f32.xlu0 %v2280_v10  ;;  %v2282_v20 = vmul.f32 %v10378_v34, %v2211_v52 }
 0x32f   :  { %v2285_v42 = vmul.f32 %v10378_v34, %v2214_v40 }
 0x330   :  { %v2283_v6 = vmul.f32 %v10378_v34, %v2212_v14  ;;  %v8458_v28 = vpop.f32.mrb[24].mxu0 }
 0x331   :  { %v2032_v58 = vpop.f32.mrb[25].mxu0  ;;  %v2041_v50 = vadd.f32 %v8458_v28, %v10371_v55 }
 0x332   :  { %v2033_v43 = vadd.f32 %v10371_v55, %v2032_v58  ;;  %2368 = vadd.xlane.f32.xlu1 %v2283_v6  ;;  %2366 = vadd.xlane.f32.xlu0 %v2282_v20  ;;  %v8459_v41 = vpop.f32.mrb[26].mxu0 }
 0x333   :  { %v2044_v8 = vadd.f32 %v8459_v41, %v10371_v55  ;;  %v2035_v31 = vpop.f32.mrb[27].mxu0  ;;  %v2217_v47 = vmax.f32 %v2041_v50, 0.0 }
 0x334   :  { %v2215_v12 = vmax.f32 %v2033_v43, 0.0  ;;  %v2036_v3 = vadd.f32 %v10371_v55, %v2035_v31 }
 0x335   :  { %v2218_v23 = vmax.f32 %v2044_v8, 0.0  ;;  %v2288_v18 = vmul.f32 %v10378_v34, %v2217_v47 }
 0x336   :  { %v2216_v5 = vmax.f32 %v2036_v3, 0.0  ;;  %2372 = vadd.xlane.f32.xlu1 %v2285_v42  ;;  %2370 = vadd.xlane.f32.xlu0 %v2284_v60  ;;  %v2286_v4 = vmul.f32 %v10378_v34, %v2215_v12 }
 0x337   :  { %v2289_v30 = vmul.f32 %v10378_v34, %v2218_v23 }
 0x338   :  { %v2287_v22 = vmul.f32 %v10378_v34, %v2216_v5  ;;  %v8462_v51 = vpop.f32.mrb[28].mxu0 }
 0x339   :  { %v2048_v35 = vpop.f32.mrb[29].mxu0  ;;  %v2057_v61 = vadd.f32 %v8462_v51, %v10371_v55 }
 0x33a   :  { %v2049_v44 = vadd.f32 %v10371_v55, %v2048_v35  ;;  %2376 = vadd.xlane.f32.xlu1 %v2287_v22  ;;  %2374 = vadd.xlane.f32.xlu0 %v2286_v4  ;;  %v8463_v37 = vpop.f32.mrb[30].mxu0 }
 0x33b   :  { %v2051_v0 = vpop.f32.mrb[31].mxu0  ;;  %v2060_v24 = vadd.f32 %v8463_v37, %v10371_v55  ;;  %v2221_v9 = vmax.f32 %v2057_v61, 0.0 }
 0x33c   :  { %v2219_v45 = vmax.f32 %v2049_v44, 0.0  ;;  %v2052_v32 = vadd.f32 %v10371_v55, %v2051_v0 }
 0x33d   :  { %v2222_v11 = vmax.f32 %v2060_v24, 0.0  ;;  %v2292_v13 = vmul.f32 %v10378_v34, %v2221_v9 }
 0x33e   :  { %v2220_v53 = vmax.f32 %v2052_v32, 0.0  ;;  %2380 = vadd.xlane.f32.xlu1 %v2289_v30  ;;  %2378 = vadd.xlane.f32.xlu0 %v2288_v18  ;;  %v2290_v33 = vmul.f32 %v10378_v34, %v2219_v45 }
 0x33f   :  { %v2293_v48 = vmul.f32 %v10378_v34, %v2222_v11 }
 0x340   :  { %v2291_v19 = vmul.f32 %v10378_v34, %v2220_v53  ;;  %v8466_v59 = vpop.f32.mrb[0].mxu1 }
 0x341   :  { %v2064_v38 = vpop.f32.mrb[1].mxu1  ;;  %v2073_v54 = vadd.f32 %v8466_v59, %v10371_v55 }
 0x342   :  { %v2065_v21 = vadd.f32 %v10371_v55, %v2064_v38  ;;  %2384 = vadd.xlane.f32.xlu1 %v2291_v19  ;;  %2382 = vadd.xlane.f32.xlu0 %v2290_v33  ;;  %v8467_v16 = vpop.f32.mrb[2].mxu1 }
 0x343   :  { %v2076_v57 = vadd.f32 %v8467_v16, %v10371_v55  ;;  %v2067_v27 = vpop.f32.mrb[3].mxu1  ;;  %v2225_v1 = vmax.f32 %v2073_v54, 0.0 }
 0x344   :  { %v2223_v17 = vmax.f32 %v2065_v21, 0.0  ;;  %v2068_v26 = vadd.f32 %v10371_v55, %v2067_v27 }
 0x345   :  { %v2226_v2 = vmax.f32 %v2076_v57, 0.0  ;;  %v2296_v46 = vmul.f32 %v10378_v34, %v2225_v1 }
 0x346   :  { %v2224_v29 = vmax.f32 %v2068_v26, 0.0  ;;  %2388 = vadd.xlane.f32.xlu1 %v2293_v48  ;;  %2386 = vadd.xlane.f32.xlu0 %v2292_v13  ;;  %v2294_v39 = vmul.f32 %v10378_v34, %v2223_v17 }
 0x347   :  { %v2297_v49 = vmul.f32 %v10378_v34, %v2226_v2 }
 0x348   :  { %v2295_v36 = vmul.f32 %v10378_v34, %v2224_v29  ;;  %v8470_v63 = vpop.f32.mrb[4].mxu1 }
 0x349   :  { %v2080_v56 = vpop.f32.mrb[5].mxu1  ;;  %v2089_v15 = vadd.f32 %v8470_v63, %v10371_v55 }
 0x34a   :  { %v2081_v10 = vadd.f32 %v10371_v55, %v2080_v56  ;;  %2392 = vadd.xlane.f32.xlu1 %v2295_v36  ;;  %2390 = vadd.xlane.f32.xlu0 %v2294_v39  ;;  %v8471_v7 = vpop.f32.mrb[6].mxu1 }
 0x34b   :  { %v2083_v52 = vpop.f32.mrb[7].mxu1  ;;  %v2092_v14 = vadd.f32 %v8471_v7, %v10371_v55  ;;  %v2229_v40 = vmax.f32 %v2089_v15, 0.0 }
 0x34c   :  { %v2227_v62 = vmax.f32 %v2081_v10, 0.0  ;;  %v2084_v25 = vadd.f32 %v10371_v55, %v2083_v52 }
 0x34d   :  { %v2230_v28 = vmax.f32 %v2092_v14, 0.0  ;;  %v2300_v12 = vmul.f32 %v10378_v34, %v2229_v40 }
 0x34e   :  { %v2228_v20 = vmax.f32 %v2084_v25, 0.0  ;;  %2396 = vadd.xlane.f32.xlu1 %v2297_v49  ;;  %2394 = vadd.xlane.f32.xlu0 %v2296_v46  ;;  %v2298_v6 = vmul.f32 %v10378_v34, %v2227_v62 }
 0x34f   :  { %v2301_v3 = vmul.f32 %v10378_v34, %v2230_v28 }
 0x350   :  { %v2299_v58 = vmul.f32 %v10378_v34, %v2228_v20  ;;  %v8474_v43 = vpop.f32.mrb[8].mxu1 }
 0x351   :  { %v2096_v41 = vpop.f32.mrb[9].mxu1  ;;  %v2105_v31 = vadd.f32 %v8474_v43, %v10371_v55 }
 0x352   :  { %v2097_v50 = vadd.f32 %v10371_v55, %v2096_v41  ;;  %2400 = vadd.xlane.f32.xlu1 %v2299_v58  ;;  %2398 = vadd.xlane.f32.xlu0 %v2298_v6  ;;  %v8475_v8 = vpop.f32.mrb[10].mxu1 }
 0x353   :  { %v2108_v60 = vadd.f32 %v8475_v8, %v10371_v55  ;;  %v2099_v42 = vpop.f32.mrb[11].mxu1  ;;  %v2233_v4 = vmax.f32 %v2105_v31, 0.0 }
 0x354   :  { %v2231_v5 = vmax.f32 %v2097_v50, 0.0  ;;  %v2100_v47 = vadd.f32 %v10371_v55, %v2099_v42 }
 0x355   :  { %v2234_v22 = vmax.f32 %v2108_v60, 0.0  ;;  %v2304_v0 = vmul.f32 %v10378_v34, %v2233_v4 }
 0x356   :  { %v2232_v23 = vmax.f32 %v2100_v47, 0.0  ;;  %2404 = vadd.xlane.f32.xlu1 %v2301_v3  ;;  %2402 = vadd.xlane.f32.xlu0 %v2300_v12  ;;  %v2302_v51 = vmul.f32 %v10378_v34, %v2231_v5 }
 0x357   :  { %v2305_v61 = vmul.f32 %v10378_v34, %v2234_v22 }
 0x358   :  { %v2303_v35 = vmul.f32 %v10378_v34, %v2232_v23  ;;  %v8478_v44 = vpop.f32.mrb[12].mxu1 }
 0x359   :  { %v2112_v37 = vpop.f32.mrb[13].mxu1  ;;  %v2121_v24 = vadd.f32 %v8478_v44, %v10371_v55 }
 0x35a   :  { %v2113_v18 = vadd.f32 %v10371_v55, %v2112_v37  ;;  %2408 = vadd.xlane.f32.xlu1 %v2303_v35  ;;  %2406 = vadd.xlane.f32.xlu0 %v2302_v51  ;;  %v8479_v30 = vpop.f32.mrb[14].mxu1 }
 0x35b   :  { %v2115_v45 = vpop.f32.mrb[15].mxu1  ;;  %v2124_v53 = vadd.f32 %v8479_v30, %v10371_v55  ;;  %v2237_v11 = vmax.f32 %v2121_v24, 0.0 }
 0x35c   :  { %v2235_v32 = vmax.f32 %v2113_v18, 0.0  ;;  %v2116_v9 = vadd.f32 %v10371_v55, %v2115_v45 }
 0x35d   :  { %v2238_v59 = vmax.f32 %v2124_v53, 0.0  ;;  %v2308_v17 = vmul.f32 %v10378_v34, %v2237_v11 }
 0x35e   :  { %v2236_v33 = vmax.f32 %v2116_v9, 0.0  ;;  %2412 = vadd.xlane.f32.xlu1 %v2305_v61  ;;  %2410 = vadd.xlane.f32.xlu0 %v2304_v0  ;;  %v2306_v19 = vmul.f32 %v10378_v34, %v2235_v32 }
 0x35f   :  { %v2309_v26 = vmul.f32 %v10378_v34, %v2238_v59 }
 0x360   :  { %v2307_v38 = vmul.f32 %v10378_v34, %v2236_v33  ;;  %v8482_v21 = vpop.f32.mrb[16].mxu1 }
 0x361   :  { %v2128_v16 = vpop.f32.mrb[17].mxu1  ;;  %v2137_v27 = vadd.f32 %v8482_v21, %v10371_v55 }
 0x362   :  { %v2129_v54 = vadd.f32 %v10371_v55, %v2128_v16  ;;  %2416 = vadd.xlane.f32.xlu1 %v2307_v38  ;;  %2414 = vadd.xlane.f32.xlu0 %v2306_v19  ;;  %v8483_v57 = vpop.f32.mrb[18].mxu1 }
 0x363   :  { %v2140_v13 = vadd.f32 %v8483_v57, %v10371_v55  ;;  %v2131_v48 = vpop.f32.mrb[19].mxu1  ;;  %v2241_v39 = vmax.f32 %v2137_v27, 0.0 }
 0x364   :  { %v2239_v29 = vmax.f32 %v2129_v54, 0.0  ;;  %v2132_v1 = vadd.f32 %v10371_v55, %v2131_v48 }
 0x365   :  { %v2242_v36 = vmax.f32 %v2140_v13, 0.0  ;;  %v2312_v52 = vmul.f32 %v10378_v34, %v2241_v39  ;;  %v2454_v13 = vld [vmem:[#allocation2] sm:$0x1] }
 0x366   :  { %v2240_v2 = vmax.f32 %v2132_v1, 0.0  ;;  %2420 = vadd.xlane.f32.xlu1 %v2309_v26  ;;  %2418 = vadd.xlane.f32.xlu0 %v2308_v17  ;;  %v2310_v63 = vmul.f32 %v10378_v34, %v2239_v29 }
 0x367   :  { %v2313_v15 = vmul.f32 %v10378_v34, %v2242_v36 }
 0x368   :  { %v2311_v56 = vmul.f32 %v10378_v34, %v2240_v2  ;;  %v8486_v10 = vpop.f32.mrb[20].mxu1 }
 0x369   :  { %v2144_v7 = vpop.f32.mrb[21].mxu1  ;;  %v2153_v14 = vadd.f32 %v8486_v10, %v10371_v55 }
 0x36a   :  { %v2145_v46 = vadd.f32 %v10371_v55, %v2144_v7  ;;  %2424 = vadd.xlane.f32.xlu1 %v2311_v56  ;;  %2422 = vadd.xlane.f32.xlu0 %v2310_v63  ;;  %v8487_v49 = vpop.f32.mrb[22].mxu1 }
 0x36b   :  { %v2147_v62 = vpop.f32.mrb[23].mxu1  ;;  %v2156_v20 = vadd.f32 %v8487_v49, %v10371_v55  ;;  %v2245_v28 = vmax.f32 %v2153_v14, 0.0 }
 0x36c   :  { %v2243_v25 = vmax.f32 %v2145_v46, 0.0  ;;  %v2148_v40 = vadd.f32 %v10371_v55, %v2147_v62 }
 0x36d   :  { %v2246_v43 = vmax.f32 %v2156_v20, 0.0  ;;  %v2316_v5 = vmul.f32 %v10378_v34, %v2245_v28 }
 0x36e   :  { %v2244_v6 = vmax.f32 %v2148_v40, 0.0  ;;  %2428 = vadd.xlane.f32.xlu1 %v2313_v15  ;;  %2426 = vadd.xlane.f32.xlu0 %v2312_v52  ;;  %v2314_v58 = vmul.f32 %v10378_v34, %v2243_v25 }
 0x36f   :  { %v2317_v47 = vmul.f32 %v10378_v34, %v2246_v43 }
 0x370   :  { %v2315_v41 = vmul.f32 %v10378_v34, %v2244_v6  ;;  %v8490_v50 = vpop.f32.mrb[24].mxu1 }
 0x371   :  { %v2160_v8 = vpop.f32.mrb[25].mxu1  ;;  %v2169_v42 = vadd.f32 %v8490_v50, %v10371_v55 }
 0x372   :  { %v2161_v31 = vadd.f32 %v10371_v55, %v2160_v8  ;;  %2432 = vadd.xlane.f32.xlu1 %v2315_v41  ;;  %2430 = vadd.xlane.f32.xlu0 %v2314_v58  ;;  %v8491_v60 = vpop.f32.mrb[26].mxu1 }
 0x373   :  { %v2172_v12 = vadd.f32 %v8491_v60, %v10371_v55  ;;  %v2163_v3 = vpop.f32.mrb[27].mxu1  ;;  %v2249_v51 = vmax.f32 %v2169_v42, 0.0 }
 0x374   :  { %v2247_v23 = vmax.f32 %v2161_v31, 0.0  ;;  %v2164_v4 = vadd.f32 %v10371_v55, %v2163_v3 }
 0x375   :  { %v2250_v35 = vmax.f32 %v2172_v12, 0.0  ;;  %v2320_v45 = vmul.f32 %v10378_v34, %v2249_v51 }
 0x376   :  { %v2248_v22 = vmax.f32 %v2164_v4, 0.0  ;;  %2436 = vadd.xlane.f32.xlu1 %v2317_v47  ;;  %2434 = vadd.xlane.f32.xlu0 %v2316_v5  ;;  %v2318_v44 = vmul.f32 %v10378_v34, %v2247_v23 }
 0x377   :  { %v2321_v24 = vmul.f32 %v10378_v34, %v2250_v35 }
 0x378   :  { %v2319_v37 = vmul.f32 %v10378_v34, %v2248_v22  ;;  %v8494_v18 = vpop.f32.mrb[28].mxu1 }
 0x379   :  { %v2176_v30 = vpop.f32.mrb[29].mxu1  ;;  %v2185_v53 = vadd.f32 %v8494_v18, %v10371_v55 }
 0x37a   :  { %v2177_v0 = vadd.f32 %v10371_v55, %v2176_v30  ;;  %2440 = vadd.xlane.f32.xlu1 %v2319_v37  ;;  %2438 = vadd.xlane.f32.xlu0 %v2318_v44  ;;  %v8495_v61 = vpop.f32.mrb[30].mxu1 }
 0x37b   :  { %v2179_v32 = vpop.f32.mrb[31].mxu1  ;;  %v2188_v33 = vadd.f32 %v8495_v61, %v10371_v55  ;;  %v2253_v59 = vmax.f32 %v2185_v53, 0.0 }
 0x37c   :  { %v2251_v9 = vmax.f32 %v2177_v0, 0.0  ;;  %v2180_v11 = vadd.f32 %v10371_v55, %v2179_v32 }
 0x37d   :  { %v2254_v21 = vmax.f32 %v2188_v33, 0.0  ;;  %v2324_v54 = vmul.f32 %v10378_v34, %v2253_v59 }
 0x37e   :  { %v2252_v19 = vmax.f32 %v2180_v11, 0.0  ;;  %2444 = vadd.xlane.f32.xlu1 %v2321_v24  ;;  %2442 = vadd.xlane.f32.xlu0 %v2320_v45  ;;  %v2322_v38 = vmul.f32 %v10378_v34, %v2251_v9  ;;  %v12648_v11 = vlaneseq }
 0x37f   :  { %v2325_v57 = vmul.f32 %v10378_v34, %v2254_v21  ;;  %v8601_v21 = vmov 1966171168  }
 0x380   :  { %v2323_v16 = vmul.f32 %v10378_v34, %v2252_v19 }
 0x382   :  { %2448 = vadd.xlane.f32.xlu1 %v2323_v16  ;;  %2446 = vadd.xlane.f32.xlu0 %v2322_v38  ;;  %v10621_v38 = vshrl.u32 %v12648_v11, 7  ;;  %v4645_v16 = vunpack.c.l.s4 %v8601_v21 }
 0x384   :  { %13131 = vst [vmem:[#allocation63_spill] sm:$0xff] %v10621_v38  ;;  %v10637_v11 = vsub.s32 2, %v10621_v38  ;;  %v10640_v21 = vsub.s32 3, %v10621_v38 }
 0x386   :  { %2452 = vadd.xlane.f32.xlu1 %v2325_v57  ;;  %2450 = vadd.xlane.f32.xlu0 %v2324_v54  ;;  %v10626_v57 = vsub.s32 0, %v10621_v38  ;;  %13135 = vst [vmem:[#allocation86_spill] sm:$0xff] %v10637_v11  ;;  %13136 = vst [vmem:[#allocation67_spill] sm:$0xff] %v10640_v21  ;;  %v10660_v11 = vsub.s32 7, %v10621_v38 }
 0x395   :  { %v10506_v27 = vpop.xlane.xlu1 %2326 }
 0x397   :  { %v10508_v55 = vpop.xlane.xlu0 %2328 }
 0x399   :  { %v10510_v48 = vpop.xlane.xlu1 %2332 }
 0x39b   :  { %v10512_v17 = vpop.xlane.xlu0 %2330 }
 0x39c   :  { %2457 = vperm.xlu0 %8529, %v2454_v13  }
 0x39f   :  { %v10514_v26 = vpop.xlane.xlu1 %2336  ;;  %v10516_v29 = vpop.xlane.xlu0 %2334 }
 0x3a3   :  { %v10518_v1 = vpop.xlane.xlu1 %2340  ;;  %v10520_v2 = vpop.xlane.xlu0 %2338 }
 0x3a7   :  { %v10522_v34 = vpop.xlane.xlu1 %2344  ;;  %v10524_v39 = vpop.xlane.xlu0 %2342 }
 0x3ab   :  { %v10526_v36 = vpop.xlane.xlu1 %2348  ;;  %v10528_v63 = vpop.xlane.xlu0 %2346 }
 0x3af   :  { %v10530_v56 = vpop.xlane.xlu1 %2352  ;;  %v10532_v10 = vpop.xlane.xlu0 %2350 }
 0x3b3   :  { %v10534_v7 = vpop.xlane.xlu1 %2356  ;;  %v10536_v46 = vpop.xlane.xlu0 %2354 }
 0x3b7   :  { %v10538_v49 = vpop.xlane.xlu1 %2360  ;;  %v10540_v52 = vpop.xlane.xlu0 %2358 }
 0x3bb   :  { %v10542_v15 = vpop.xlane.xlu1 %2364  ;;  %v10544_v62 = vpop.xlane.xlu0 %2362 }
 0x3bf   :  { %v10546_v14 = vpop.xlane.xlu1 %2368  ;;  %v10548_v25 = vpop.xlane.xlu0 %2366 }
 0x3c3   :  { %v10550_v20 = vpop.xlane.xlu1 %2372  ;;  %v10552_v40 = vpop.xlane.xlu0 %2370 }
 0x3c7   :  { %v10554_v6 = vpop.xlane.xlu1 %2376  ;;  %v10556_v28 = vpop.xlane.xlu0 %2374 }
 0x3cb   :  { %v10558_v58 = vpop.xlane.xlu0 %2378  ;;  %v10560_v43 = vpop.xlane.xlu1 %2380 }
 0x3cf   :  { %v10562_v41 = vpop.xlane.xlu0 %2382  ;;  %v10564_v50 = vpop.xlane.xlu1 %2384 }
 0x3d3   :  { %v10566_v8 = vpop.xlane.xlu0 %2386  ;;  %v10570_v60 = vpop.xlane.xlu1 %2388 }
 0x3d7   :  { %v10568_v31 = vpop.xlane.xlu0 %2390  ;;  %v10574_v12 = vpop.xlane.xlu1 %2392 }
 0x3db   :  { %v10572_v42 = vpop.xlane.xlu0 %2394  ;;  %v10580_v47 = vpop.xlane.xlu1 %2396 }
 0x3df   :  { %v10576_v3 = vpop.xlane.xlu0 %2398  ;;  %v10584_v4 = vpop.xlane.xlu1 %2400 }
 0x3e3   :  { %v10578_v5 = vpop.xlane.xlu0 %2402  ;;  %v10590_v35 = vpop.xlane.xlu1 %2404 }
 0x3e7   :  { %v10582_v23 = vpop.xlane.xlu0 %2406  ;;  %v10594_v37 = vpop.xlane.xlu1 %2408 }
 0x3eb   :  { %v10586_v22 = vpop.xlane.xlu0 %2410  ;;  %v10600_v0 = vpop.xlane.xlu1 %2412 }
 0x3ef   :  { %v10588_v51 = vpop.xlane.xlu0 %2414  ;;  %v10604_v45 = vpop.xlane.xlu1 %2416 }
 0x3f3   :  { %v10592_v44 = vpop.xlane.xlu0 %2418  ;;  %v10610_v53 = vpop.xlane.xlu1 %2420 }
 0x3f7   :  { %v10596_v18 = vpop.xlane.xlu0 %2422  ;;  %v10614_v33 = vpop.xlane.xlu1 %2424 }
 0x3fb   :  { %v10598_v30 = vpop.xlane.xlu0 %2426  ;;  %v10618_v59 = vpop.xlane.xlu1 %2428 }
 0x3ff   :  { %v10602_v61 = vpop.xlane.xlu0 %2430  ;;  %v10628_v13 = vpop.xlane.xlu1 %2432 }
 0x400   :  { %13126 = vst [vmem:[#allocation59_spill] sm:$0xff] %v10602_v61  ;;  %v10646_v61 = vsub.s32 5, %v10621_v38 }
 0x402   :  { %13137 = vst [vmem:[#allocation68_spill] sm:$0xff] %v10646_v61 }
 0x403   :  { %v10606_v24 = vpop.xlane.xlu0 %2434 }
 0x404   :  { %13127 = vst [vmem:[#allocation60_spill] sm:$0xff] %v10606_v24 }
 0x407   :  { %v10608_v32 = vpop.xlane.xlu0 %2438 }
 0x408   :  { %13128 = vst [vmem:[#allocation61_spill] sm:$0xff] %v10608_v32 }
 0x40b   :  { %v10612_v9 = vpop.xlane.xlu0 %2442 }
 0x40c   :  { %13129 = vst [vmem:[#allocation20_spill] sm:$0xff] %v10612_v9  ;;  %v4646_v9 = vunpack.c.0.s8 %v4645_v16  ;;  %v10649_v16 = vsub.s32 6, %v10621_v38 }
 0x40e   :  { %13138 = vst [vmem:[#allocation69_spill] sm:$0xff] %v10649_v16  ;;  %v10663_v21 = vsub.s32 %v4646_v9, %v10621_v38 }
 0x40f   :  { %v10616_v19 = vpop.xlane.xlu0 %2446 }
 0x410   :  { %13130 = vst [vmem:[#allocation62_spill] sm:$0xff] %v10616_v19  ;;  %v10634_v19 = vsub.s32 1, %v10621_v38  ;;  %13140 = vst [vmem:[#allocation70_spill] sm:$0xff] %v10663_v21 }
 0x412   :  { %13134 = vst [vmem:[#allocation66_spill] sm:$0xff] %v10634_v19 }
 0x413   :  { %v10623_v54 = vpop.xlane.xlu0 %2450 }
 0x414   :  { %13132 = vst [vmem:[#allocation64_spill] sm:$0xff] %v10623_v54  ;;  %v10643_v54 = vsub.s32 4, %v10621_v38 }
 0x41b   :  { %v2458_v32 = vpop.permute.xlu0 %2457 }
 0x41c   :  { %v10631_v24 = vrot.slane %v2458_v32, %v10626_v57 }
 0x41e   :  { %13133 = vst [vmem:[#allocation65_spill] sm:$0xff] %v10631_v24  ;;  %v10653_v32 = vadd.f32 %v10631_v24, %v10506_v27  ;;  %v10657_v19 = vadd.f32 %v10631_v24, %v10508_v55  ;;  %v10667_v61 = vadd.f32 %v10631_v24, %v10512_v17  ;;  %v10671_v16 = vadd.f32 %v10631_v24, %v10510_v48 }
 0x41f   :  { %v10675_v27 = vadd.f32 %v10631_v24, %v10516_v29  ;;  %v10679_v55 = vadd.f32 %v10631_v24, %v10514_v26  ;;  %v10683_v9 = vadd.f32 %v10631_v24, %v10520_v2  ;;  %v10687_v17 = vadd.f32 %v10631_v24, %v10518_v1 }
 0x420   :  { %13139 = vst [vmem:[#allocation23_spill] sm:$0xff] %v10657_v19  ;;  %v2437_v19 = vpop.xlane.xlu1 %2436  ;;  %v10691_v48 = vadd.f32 %v10631_v24, %v10524_v39  ;;  %v10695_v29 = vadd.f32 %v10631_v24, %v10522_v34  ;;  %v10699_v26 = vadd.f32 %v10631_v24, %v10528_v63  ;;  %v10703_v2 = vadd.f32 %v10631_v24, %v10526_v36 }
 0x421   :  { %v10707_v1 = vadd.f32 %v10631_v24, %v10532_v10  ;;  %v10711_v39 = vadd.f32 %v10631_v24, %v10530_v56  ;;  %v10715_v34 = vadd.f32 %v10631_v24, %v10536_v46  ;;  %v10719_v63 = vadd.f32 %v10631_v24, %v10534_v7 }
 0x422   :  { %v10723_v36 = vadd.f32 %v10631_v24, %v10540_v52  ;;  %v10727_v10 = vadd.f32 %v10631_v24, %v10538_v49  ;;  %v10731_v56 = vadd.f32 %v10631_v24, %v10544_v62  ;;  %v10735_v46 = vadd.f32 %v10631_v24, %v10542_v15 }
 0x423   :  { %v10739_v7 = vadd.f32 %v10631_v24, %v10548_v25  ;;  %v10743_v52 = vadd.f32 %v10631_v24, %v10546_v14  ;;  %v10747_v49 = vadd.f32 %v10631_v24, %v10552_v40  ;;  %v10751_v62 = vadd.f32 %v10631_v24, %v10550_v20 }
 0x424   :  { %v10755_v15 = vadd.f32 %v10631_v24, %v10556_v28  ;;  %v10759_v25 = vadd.f32 %v10631_v24, %v10554_v6  ;;  %v10763_v14 = vadd.f32 %v10631_v24, %v10558_v58  ;;  %v10767_v40 = vadd.f32 %v10631_v24, %v10560_v43  ;;  %v2441_v38 = vpop.xlane.xlu1 %2440 }
 0x425   :  { %v10771_v20 = vadd.f32 %v10631_v24, %v10562_v41  ;;  %v10775_v28 = vadd.f32 %v10631_v24, %v10564_v50  ;;  %v10779_v6 = vadd.f32 %v10631_v24, %v10566_v8  ;;  %v10783_v58 = vadd.f32 %v10631_v24, %v10570_v60 }
 0x426   :  { %13141 = vst [vmem:[#allocation71_spill] sm:$0xff] %v10767_v40  ;;  %v10787_v43 = vadd.f32 %v10631_v24, %v10568_v31  ;;  %v10791_v41 = vadd.f32 %v10631_v24, %v10574_v12  ;;  %v10795_v50 = vadd.f32 %v10631_v24, %v10572_v42  ;;  %v10799_v8 = vadd.f32 %v10631_v24, %v10580_v47 }
 0x427   :  { %13142 = vst [vmem:[#allocation88_spill] sm:$0xff] %v10775_v28  ;;  %13143 = vst [vmem:[#allocation87_spill] sm:$0xff] %v10783_v58  ;;  %v10803_v60 = vadd.f32 %v10631_v24, %v10576_v3  ;;  %v10807_v31 = vadd.f32 %v10631_v24, %v10578_v5  ;;  %v10811_v12 = vadd.f32 %v10631_v24, %v10584_v4 }
 0x428   :  { %13144 = vst [vmem:[#allocation90_spill] sm:$0xff] %v10791_v41  ;;  %13145 = vst [vmem:[#allocation72_spill] sm:$0xff] %v10799_v8  ;;  %v10815_v42 = vadd.f32 %v10631_v24, %v10590_v35  ;;  %v10819_v47 = vadd.f32 %v10631_v24, %v10582_v23  ;;  %v10823_v3 = vadd.f32 %v10631_v24, %v10586_v22 }
 0x429   :  { %13146 = vst [vmem:[#allocation89_spill] sm:$0xff] %v10811_v12  ;;  %v10827_v5 = vadd.f32 %v10631_v24, %v10594_v37  ;;  %v10831_v4 = vadd.f32 %v10631_v24, %v10600_v0  ;;  %v10835_v35 = vadd.f32 %v10631_v24, %v10588_v51  ;;  %v10839_v23 = vadd.f32 %v10631_v24, %v10592_v44 }
 0x42a   :  { %13147 = vst [vmem:[#allocation73_spill] sm:$0xff] %v10815_v42  ;;  %13148 = vst [vmem:[#allocation92_spill] sm:$0xff] %v10823_v3  ;;  %v10843_v22 = vadd.f32 %v10631_v24, %v10604_v45  ;;  %v10847_v37 = vadd.f32 %v10631_v24, %v10610_v53  ;;  %v10851_v0 = vadd.f32 %v10631_v24, %v10596_v18 }
 0x42b   :  { %13149 = vst [vmem:[#allocation91_spill] sm:$0xff] %v10827_v5  ;;  %13150 = vst [vmem:[#allocation94_spill] sm:$0xff] %v10831_v4  ;;  %v10855_v51 = vadd.f32 %v10631_v24, %v10598_v30  ;;  %v10859_v44 = vadd.f32 %v10631_v24, %v10614_v33  ;;  %v10863_v45 = vadd.f32 %v10631_v24, %v10618_v59 }
 0x42c   :  { %13151 = vst [vmem:[#allocation93_spill] sm:$0xff] %v10835_v35  ;;  %13152 = vst [vmem:[#allocation96_spill] sm:$0xff] %v10839_v23  ;;  %v13159_v23 = vld [vmem:[#allocation59_spill] sm:$0xff]  ;;  %v10875_v30 = vadd.f32 %v10631_v24, %v10628_v13  ;;  %v10878_v33 = vadd.f32 %v10631_v24, %v2437_v19  ;;  %v10889_v5 = vadd.f32 %v10631_v24, %v2441_v38  ;;  %v13171_v35 = vld [vmem:[#allocation62_spill] sm:$0xff] }
 0x42d   :  { %13153 = vst [vmem:[#allocation74_spill] sm:$0xff] %v10843_v22  ;;  %13154 = vst [vmem:[#allocation95_spill] sm:$0xff] %v10847_v37  ;;  %v10867_v53 = vadd.f32 %v10631_v24, %v13159_v23  ;;  %v13161_v37 = vld [vmem:[#allocation60_spill] sm:$0xff]  ;;  %v2445_v22 = vpop.xlane.xlu1 %2444  ;;  %v10896_v13 = vadd.f32 %v10631_v24, %v13171_v35  ;;  %v2867_v35 = vrot.slane %v10691_v48, %v10643_v54 }
 0x42e   :  { %13155 = vst [vmem:[#allocation98_spill] sm:$0xff] %v10851_v0  ;;  %13156 = vst [vmem:[#allocation75_spill] sm:$0xff] %v10855_v51  ;;  %v10871_v18 = vadd.f32 %v10631_v24, %v13161_v37  ;;  %v10892_v37 = vadd.f32 %v10631_v24, %v2445_v22  ;;  %v13173_v19 = vld [vmem:[#allocation64_spill] sm:$0xff]  ;;  %v2595_v12 = vrot.slane %v10653_v32, %v10626_v57 }
 0x42f   :  { %13157 = vst [vmem:[#allocation97_spill] sm:$0xff] %v10859_v44  ;;  %13158 = vst [vmem:[#allocation100_spill] sm:$0xff] %v10863_v45  ;;  %v13165_v44 = vld [vmem:[#allocation61_spill] sm:$0xff]  ;;  %v13167_v45 = vld [vmem:[#allocation20_spill] sm:$0xff]  ;;  %v2915_v51 = vrot.slane %v10699_v26, %v10626_v57 }
 0x430   :  { %13160 = vst [vmem:[#allocation99_spill] sm:$0xff] %v10867_v53  ;;  %13162 = vst [vmem:[#allocation102_spill] sm:$0xff] %v10871_v18  ;;  %v10882_v59 = vadd.f32 %v10631_v24, %v13165_v44  ;;  %v10886_v23 = vadd.f32 %v10631_v24, %v13167_v45  ;;  %v2851_v44 = vrot.slane %v10691_v48, %v10626_v57 }
 0x431   :  { %13163 = vst [vmem:[#allocation101_spill] sm:$0xff] %v10875_v30  ;;  %13164 = vst [vmem:[#allocation104_spill] sm:$0xff] %v10878_v33  ;;  %v10900_v33 = vadd.f32 %v10631_v24, %v13173_v19  ;;  %v13175_v30 = vld [vmem:[#allocation66_spill] sm:$0xff]  ;;  %v13179_v19 = vld [vmem:[#allocation69_spill] sm:$0xff]  ;;  %v2879_v24 = vrot.slane %v10691_v48, %v10660_v11 }
 0x432   :  { %13166 = vst [vmem:[#allocation103_spill] sm:$0xff] %v10882_v59  ;;  %13168 = vst [vmem:[#allocation106_spill] sm:$0xff] %v10886_v23  ;;  %v2855_v45 = vrot.slane %v10691_v48, %v13175_v30  ;;  %v13176_v23 = vld [vmem:[#allocation86_spill] sm:$0xff]  ;;  %v2599_v3 = vrot.slane %v10653_v32, %v13175_v30 }
 0x433   :  { %13169 = vst [vmem:[#allocation76_spill] sm:$0xff] %v10889_v5  ;;  %13170 = vst [vmem:[#allocation77_spill] sm:$0xff] %v10892_v37  ;;  %v2859_v38 = vrot.slane %v10691_v48, %v13176_v23  ;;  %v13177_v5 = vld [vmem:[#allocation67_spill] sm:$0xff]  ;;  %v2603_v41 = vrot.slane %v10653_v32, %v13176_v23 }
 0x434   :  { %13172 = vst [vmem:[#allocation31_spill] sm:$0xff] %v10896_v13  ;;  %13174 = vst [vmem:[#allocation105_spill] sm:$0xff] %v10900_v33  ;;  %v2863_v22 = vrot.slane %v10691_v48, %v13177_v5  ;;  %v13178_v13 = vld [vmem:[#allocation68_spill] sm:$0xff]  ;;  %v2875_v33 = vrot.slane %v10691_v48, %v13179_v19  ;;  %v5032_v42 = vcombine.low %v2851_v44, %v2855_v45 }
 0x435   :  { %v2871_v37 = vrot.slane %v10691_v48, %v13178_v13  ;;  %v2607_v18 = vrot.slane %v10653_v32, %v13177_v5  ;;  %v2611_v44 = vrot.slane %v10653_v32, %v10643_v54  ;;  %v2615_v45 = vrot.slane %v10653_v32, %v13178_v13 }
 0x436   :  { %v5033_v4 = vcombine.low %v2859_v38, %v2863_v22  ;;  %v5035_v59 = vcombine.low %v2875_v33, %v2879_v24  ;;  %v5042_v58 = vrot.slane %v5032_v42, %v10663_v21  ;;  %v2619_v33 = vrot.slane %v10653_v32, %v13179_v19 }
 0x437   :  { %v5034_v8 = vcombine.low %v2867_v35, %v2871_v37  ;;  %v2623_v37 = vrot.slane %v10653_v32, %v10660_v11  ;;  %v4640_v42 = vcombine.low %v2595_v12, %v2599_v3  ;;  %v4641_v35 = vcombine.low %v2603_v41, %v2607_v18 }
 0x438   :  { %v5049_v48 = vrot.slane %v5033_v4, %v10663_v21  ;;  %v5063_v24 = vrot.slane %v5035_v59, %v10663_v21  ;;  %v4642_v4 = vcombine.low %v2611_v44, %v2615_v45  ;;  %v2923_v12 = vrot.slane %v10699_v26, %v13176_v23 }
 0x439   :  { %v5056_v38 = vrot.slane %v5034_v8, %v10663_v21  ;;  %v4643_v28 = vcombine.low %v2619_v33, %v2623_v37  ;;  %v2919_v8 = vrot.slane %v10699_v26, %v13175_v30  ;;  %v4650_v40 = vrot.slane %v4640_v42, %v10663_v21 }
 0x43a   :  { %v5064_v22 = vcombine.low %v5042_v58, %v5049_v48  ;;  %v4657_v0 = vrot.slane %v4641_v35, %v10663_v21  ;;  %v4664_v32 = vrot.slane %v4642_v4, %v10663_v21  ;;  %v2927_v3 = vrot.slane %v10699_v26, %v13177_v5 }
 0x43b   :  { %v5065_v53 = vcombine.low %v5056_v38, %v5063_v24  ;;  %v4671_v41 = vrot.slane %v4643_v28, %v10663_v21  ;;  %v2931_v48 = vrot.slane %v10699_v26, %v10643_v54  ;;  %v2935_v44 = vrot.slane %v10699_v26, %v13178_v13 }
 0x43c   :  { %v5072_v59 = vrot.slane %v5064_v22, %v10663_v21  ;;  %v4672_v18 = vcombine.low %v4650_v40, %v4657_v0  ;;  %v2939_v45 = vrot.slane %v10699_v26, %v13179_v19  ;;  %v2943_v28 = vrot.slane %v10699_v26, %v10660_v11  ;;  %v13180_v40 = vld [vmem:[#allocation23_spill] sm:$0xff] }
 0x43d   :  { %v5079_v58 = vrot.slane %v5065_v53, %v10663_v21  ;;  %v4673_v53 = vcombine.low %v4664_v32, %v4671_v41  ;;  %v5130_v24 = vcombine.low %v2915_v51, %v2919_v8  ;;  %v5131_v37 = vcombine.low %v2923_v12, %v2927_v3 }
 0x43e   :  { %v4680_v33 = vrot.slane %v4672_v18, %v10663_v21  ;;  %v5132_v22 = vcombine.low %v2931_v48, %v2935_v44  ;;  %v2627_v0 = vrot.slane %v13180_v40, %v10626_v57  ;;  %v5133_v35 = vcombine.low %v2939_v45, %v2943_v28 }
 0x43f   :  { %v5080_v38 = vcombine.low %v5072_v59, %v5079_v58  ;;  %v4687_v42 = vrot.slane %v4673_v53, %v10663_v21  ;;  %v5140_v4 = vrot.slane %v5130_v24, %v10663_v21  ;;  %v2631_v59 = vrot.slane %v13180_v40, %v13175_v30 }
 0x440   :  { %v5147_v32 = vrot.slane %v5131_v37, %v10663_v21  ;;  %v5154_v26 = vrot.slane %v5132_v22, %v10663_v21  ;;  %v2635_v51 = vrot.slane %v13180_v40, %v13176_v23  ;;  %v2639_v8 = vrot.slane %v13180_v40, %v13177_v5 }
 0x441   :  { %7801 = vperm.xlu0 %8529, %v5080_v38   ;;  %v4688_v58 = vcombine.low %v4680_v33, %v4687_v42  ;;  %v5161_v41 = vrot.slane %v5133_v35, %v10663_v21  ;;  %v2643_v12 = vrot.slane %v13180_v40, %v10643_v54  ;;  %v2647_v3 = vrot.slane %v13180_v40, %v13178_v13 }
 0x442   :  { %v5162_v18 = vcombine.low %v5140_v4, %v5147_v32  ;;  %v2651_v48 = vrot.slane %v13180_v40, %v13179_v19  ;;  %v2655_v44 = vrot.slane %v13180_v40, %v10660_v11  ;;  %v4689_v45 = vcombine.low %v2627_v0, %v2631_v59 }
 0x443   :  { %7777 = vperm.xlu1 %8530, %v4688_v58   ;;  %v5163_v38 = vcombine.low %v5154_v26, %v5161_v41  ;;  %v4690_v53 = vcombine.low %v2635_v51, %v2639_v8  ;;  %v4691_v28 = vcombine.low %v2643_v12, %v2647_v3  ;;  %v2979_v24 = vrot.slane %v10707_v1, %v10626_v57 }
 0x444   :  { %v5170_v33 = vrot.slane %v5162_v18, %v10663_v21  ;;  %v4692_v37 = vcombine.low %v2651_v48, %v2655_v44  ;;  %v4699_v22 = vrot.slane %v4689_v45, %v10663_v21  ;;  %v2983_v42 = vrot.slane %v10707_v1, %v13175_v30 }
 0x445   :  { %v5177_v35 = vrot.slane %v5163_v38, %v10663_v21  ;;  %v4706_v40 = vrot.slane %v4690_v53, %v10663_v21  ;;  %v4713_v0 = vrot.slane %v4691_v28, %v10663_v21  ;;  %v2987_v4 = vrot.slane %v10707_v1, %v13176_v23 }
 0x446   :  { %v4720_v59 = vrot.slane %v4692_v37, %v10663_v21  ;;  %v2991_v32 = vrot.slane %v10707_v1, %v13177_v5  ;;  %v2995_v26 = vrot.slane %v10707_v1, %v10643_v54  ;;  %v2999_v51 = vrot.slane %v10707_v1, %v13178_v13 }
 0x447   :  { %v5178_v8 = vcombine.low %v5170_v33, %v5177_v35  ;;  %v4721_v58 = vcombine.low %v4699_v22, %v4706_v40  ;;  %v3003_v41 = vrot.slane %v10707_v1, %v13179_v19  ;;  %v3007_v12 = vrot.slane %v10707_v1, %v10660_v11 }
 0x448   :  { %v4722_v3 = vcombine.low %v4713_v0, %v4720_v59  ;;  %v5228_v18 = vcombine.low %v2979_v24, %v2983_v42  ;;  %v5229_v48 = vcombine.low %v2987_v4, %v2991_v32  ;;  %v5230_v44 = vcombine.low %v2995_v26, %v2999_v51 }
 0x449   :  { %7807 = vperm.xlu0 %8529, %v5178_v8   ;;  %v4729_v45 = vrot.slane %v4721_v58, %v10663_v21  ;;  %v5231_v38 = vcombine.low %v3003_v41, %v3007_v12  ;;  %v2659_v53 = vrot.slane %v10667_v61, %v10626_v57  ;;  %v2663_v28 = vrot.slane %v10667_v61, %v13175_v30 }
 0x44a   :  { %v4736_v33 = vrot.slane %v4722_v3, %v10663_v21  ;;  %v5238_v37 = vrot.slane %v5228_v18, %v10663_v21  ;;  %v5245_v1 = vrot.slane %v5229_v48, %v10663_v21  ;;  %v5252_v24 = vrot.slane %v5230_v44, %v10663_v21 }
 0x44b   :  { %v5259_v22 = vrot.slane %v5231_v38, %v10663_v21  ;;  %v2667_v42 = vrot.slane %v10667_v61, %v13176_v23  ;;  %v2671_v35 = vrot.slane %v10667_v61, %v13177_v5  ;;  %v2675_v40 = vrot.slane %v10667_v61, %v10643_v54 }
 0x44c   :  { %v4737_v0 = vcombine.low %v4729_v45, %v4736_v33  ;;  %v5260_v4 = vcombine.low %v5238_v37, %v5245_v1  ;;  %v2679_v59 = vrot.slane %v10667_v61, %v13178_v13  ;;  %v2683_v32 = vrot.slane %v10667_v61, %v13179_v19 }
 0x44d   :  { %v5261_v26 = vcombine.low %v5252_v24, %v5259_v22  ;;  %v2687_v51 = vrot.slane %v10667_v61, %v10660_v11  ;;  %v4738_v8 = vcombine.low %v2659_v53, %v2663_v28  ;;  %v4739_v58 = vcombine.low %v2667_v42, %v2671_v35 }
 0x44e   :  { %7780 = vperm.xlu1 %8530, %v4737_v0   ;;  %v5268_v41 = vrot.slane %v5260_v4, %v10663_v21  ;;  %v4740_v12 = vcombine.low %v2675_v40, %v2679_v59  ;;  %v3043_v3 = vrot.slane %v10715_v34, %v10626_v57  ;;  %v3047_v18 = vrot.slane %v10715_v34, %v13175_v30 }
 0x44f   :  { %v5275_v48 = vrot.slane %v5261_v26, %v10663_v21  ;;  %v4741_v44 = vcombine.low %v2683_v32, %v2687_v51  ;;  %v4748_v45 = vrot.slane %v4738_v8, %v10663_v21  ;;  %v4755_v38 = vrot.slane %v4739_v58, %v10663_v21 }
 0x450   :  { %v4762_v61 = vrot.slane %v4740_v12, %v10663_v21  ;;  %v3051_v53 = vrot.slane %v10715_v34, %v13176_v23  ;;  %v3055_v28 = vrot.slane %v10715_v34, %v13177_v5  ;;  %v3059_v33 = vrot.slane %v10715_v34, %v10643_v54 }
 0x451   :  { %v5276_v37 = vcombine.low %v5268_v41, %v5275_v48  ;;  %v4769_v1 = vrot.slane %v4741_v44, %v10663_v21  ;;  %v4770_v24 = vcombine.low %v4748_v45, %v4755_v38  ;;  %v3063_v22 = vrot.slane %v10715_v34, %v13178_v13 }
 0x452   :  { %v3067_v42 = vrot.slane %v10715_v34, %v13179_v19  ;;  %v3071_v35 = vrot.slane %v10715_v34, %v10660_v11  ;;  %v5326_v40 = vcombine.low %v3043_v3, %v3047_v18  ;;  %v5327_v0 = vcombine.low %v3051_v53, %v3055_v28 }
 0x453   :  { %7813 = vperm.xlu0 %8529, %v5276_v37   ;;  %v4771_v4 = vcombine.low %v4762_v61, %v4769_v1  ;;  %v4778_v59 = vrot.slane %v4770_v24, %v10663_v21  ;;  %v5328_v32 = vcombine.low %v3059_v33, %v3063_v22  ;;  %v2691_v26 = vrot.slane %v10671_v16, %v10626_v57 }
 0x454   :  { %v5329_v51 = vcombine.low %v3067_v42, %v3071_v35  ;;  %v5336_v8 = vrot.slane %v5326_v40, %v10663_v21  ;;  %v5343_v58 = vrot.slane %v5327_v0, %v10663_v21  ;;  %v2695_v41 = vrot.slane %v10671_v16, %v13175_v30 }
 0x455   :  { %v4785_v34 = vrot.slane %v4771_v4, %v10663_v21  ;;  %v5350_v12 = vrot.slane %v5328_v32, %v10663_v21  ;;  %v2699_v3 = vrot.slane %v10671_v16, %v13176_v23  ;;  %v2703_v18 = vrot.slane %v10671_v16, %v13177_v5 }
 0x456   :  { %v5357_v48 = vrot.slane %v5329_v51, %v10663_v21  ;;  %v5358_v44 = vcombine.low %v5336_v8, %v5343_v58  ;;  %v2707_v45 = vrot.slane %v10671_v16, %v10643_v54  ;;  %v2711_v38 = vrot.slane %v10671_v16, %v13178_v13 }
 0x457   :  { %v4786_v61 = vcombine.low %v4778_v59, %v4785_v34  ;;  %v2715_v53 = vrot.slane %v10671_v16, %v13179_v19  ;;  %v2719_v28 = vrot.slane %v10671_v16, %v10660_v11  ;;  %v4787_v33 = vcombine.low %v2691_v26, %v2695_v41 }
 0x458   :  { %v5359_v37 = vcombine.low %v5350_v12, %v5357_v48  ;;  %v5366_v1 = vrot.slane %v5358_v44, %v10663_v21  ;;  %v4788_v24 = vcombine.low %v2699_v3, %v2703_v18  ;;  %v4789_v22 = vcombine.low %v2707_v45, %v2711_v38 }
 0x459   :  { %7783 = vperm.xlu1 %8530, %v4786_v61   ;;  %v4790_v42 = vcombine.low %v2715_v53, %v2719_v28  ;;  %v4797_v35 = vrot.slane %v4787_v33, %v10663_v21  ;;  %v3107_v40 = vrot.slane %v10723_v36, %v10626_v57  ;;  %v3111_v0 = vrot.slane %v10723_v36, %v13175_v30 }
 0x45a   :  { %v5373_v4 = vrot.slane %v5359_v37, %v10663_v21  ;;  %v4804_v16 = vrot.slane %v4788_v24, %v10663_v21  ;;  %v4811_v59 = vrot.slane %v4789_v22, %v10663_v21  ;;  %v3115_v32 = vrot.slane %v10723_v36, %v13176_v23 }
 0x45b   :  { %v4818_v26 = vrot.slane %v4790_v42, %v10663_v21  ;;  %v3119_v51 = vrot.slane %v10723_v36, %v13177_v5  ;;  %v3123_v8 = vrot.slane %v10723_v36, %v10643_v54  ;;  %v3127_v58 = vrot.slane %v10723_v36, %v13178_v13 }
 0x45c   :  { %v5374_v41 = vcombine.low %v5366_v1, %v5373_v4  ;;  %v4819_v34 = vcombine.low %v4797_v35, %v4804_v16  ;;  %v3131_v12 = vrot.slane %v10723_v36, %v13179_v19  ;;  %v3135_v3 = vrot.slane %v10723_v36, %v10660_v11 }
 0x45d   :  { %v4820_v18 = vcombine.low %v4811_v59, %v4818_v26  ;;  %v5424_v48 = vcombine.low %v3107_v40, %v3111_v0  ;;  %v5425_v44 = vcombine.low %v3115_v32, %v3119_v51  ;;  %v5426_v45 = vcombine.low %v3123_v8, %v3127_v58 }
 0x45e   :  { %7819 = vperm.xlu0 %8529, %v5374_v41   ;;  %v4827_v38 = vrot.slane %v4819_v34, %v10663_v21  ;;  %v5427_v61 = vcombine.low %v3131_v12, %v3135_v3  ;;  %v2723_v53 = vrot.slane %v10675_v27, %v10626_v57  ;;  %v2727_v28 = vrot.slane %v10675_v27, %v13175_v30 }
 0x45f   :  { %v4834_v33 = vrot.slane %v4820_v18, %v10663_v21  ;;  %v5434_v37 = vrot.slane %v5424_v48, %v10663_v21  ;;  %v5441_v36 = vrot.slane %v5425_v44, %v10663_v21  ;;  %v5448_v1 = vrot.slane %v5426_v45, %v10663_v21 }
 0x460   :  { %v5455_v24 = vrot.slane %v5427_v61, %v10663_v21  ;;  %v2731_v22 = vrot.slane %v10675_v27, %v13176_v23  ;;  %v2735_v42 = vrot.slane %v10675_v27, %v13177_v5  ;;  %v2739_v35 = vrot.slane %v10675_v27, %v10643_v54 }
 0x461   :  { %v4835_v40 = vcombine.low %v4827_v38, %v4834_v33  ;;  %v5456_v0 = vcombine.low %v5434_v37, %v5441_v36  ;;  %v2743_v4 = vrot.slane %v10675_v27, %v13178_v13  ;;  %v2747_v16 = vrot.slane %v10675_v27, %v13179_v19 }
 0x462   :  { %v5457_v59 = vcombine.low %v5448_v1, %v5455_v24  ;;  %v2751_v32 = vrot.slane %v10675_v27, %v10660_v11  ;;  %v4836_v26 = vcombine.low %v2723_v53, %v2727_v28  ;;  %v4837_v51 = vcombine.low %v2731_v22, %v2735_v42 }
 0x463   :  { %7786 = vperm.xlu1 %8530, %v4835_v40   ;;  %v5464_v8 = vrot.slane %v5456_v0, %v10663_v21  ;;  %v4838_v58 = vcombine.low %v2739_v35, %v2743_v4  ;;  %v3171_v41 = vrot.slane %v10731_v56, %v10626_v57  ;;  %v3175_v34 = vrot.slane %v10731_v56, %v13175_v30 }
 0x464   :  { %v5471_v12 = vrot.slane %v5457_v59, %v10663_v21  ;;  %v4839_v3 = vcombine.low %v2747_v16, %v2751_v32  ;;  %v4846_v18 = vrot.slane %v4836_v26, %v10663_v21  ;;  %v4853_v48 = vrot.slane %v4837_v51, %v10663_v21 }
 0x465   :  { %v4860_v27 = vrot.slane %v4838_v58, %v10663_v21  ;;  %v3179_v44 = vrot.slane %v10731_v56, %v13176_v23  ;;  %v3183_v45 = vrot.slane %v10731_v56, %v13177_v5  ;;  %v3187_v38 = vrot.slane %v10731_v56, %v10643_v54 }
 0x466   :  { %v5472_v61 = vcombine.low %v5464_v8, %v5471_v12  ;;  %v4867_v53 = vrot.slane %v4839_v3, %v10663_v21  ;;  %v4868_v28 = vcombine.low %v4846_v18, %v4853_v48  ;;  %v3191_v33 = vrot.slane %v10731_v56, %v13178_v13 }
 0x467   :  { %v3195_v37 = vrot.slane %v10731_v56, %v13179_v19  ;;  %v3199_v36 = vrot.slane %v10731_v56, %v10660_v11  ;;  %v5522_v1 = vcombine.low %v3171_v41, %v3175_v34  ;;  %v5523_v24 = vcombine.low %v3179_v44, %v3183_v45 }
 0x468   :  { %7825 = vperm.xlu0 %8529, %v5472_v61   ;;  %v4869_v22 = vcombine.low %v4860_v27, %v4867_v53  ;;  %v4876_v42 = vrot.slane %v4868_v28, %v10663_v21  ;;  %v5524_v35 = vcombine.low %v3187_v38, %v3191_v33  ;;  %v2755_v40 = vrot.slane %v10679_v55, %v10626_v57 }
 0x469   :  { %v5525_v0 = vcombine.low %v3195_v37, %v3199_v36  ;;  %v5532_v4 = vrot.slane %v5522_v1, %v10663_v21  ;;  %v5539_v16 = vrot.slane %v5523_v24, %v10663_v21  ;;  %v2759_v59 = vrot.slane %v10679_v55, %v13175_v30 }
 0x46a   :  { %v4883_v56 = vrot.slane %v4869_v22, %v10663_v21  ;;  %v5546_v32 = vrot.slane %v5524_v35, %v10663_v21  ;;  %v2763_v26 = vrot.slane %v10679_v55, %v13176_v23  ;;  %v2767_v51 = vrot.slane %v10679_v55, %v13177_v5 }
 0x46b   :  { %v5553_v8 = vrot.slane %v5525_v0, %v10663_v21  ;;  %v5554_v58 = vcombine.low %v5532_v4, %v5539_v16  ;;  %v2771_v41 = vrot.slane %v10679_v55, %v10643_v54  ;;  %v2775_v34 = vrot.slane %v10679_v55, %v13178_v13 }
 0x46c   :  { %v4884_v12 = vcombine.low %v4876_v42, %v4883_v56  ;;  %v2779_v3 = vrot.slane %v10679_v55, %v13179_v19  ;;  %v2783_v18 = vrot.slane %v10679_v55, %v10660_v11  ;;  %v4885_v48 = vcombine.low %v2755_v40, %v2759_v59 }
 0x46d   :  { %v5555_v27 = vcombine.low %v5546_v32, %v5553_v8  ;;  %v5562_v44 = vrot.slane %v5554_v58, %v10663_v21  ;;  %v4886_v45 = vcombine.low %v2763_v26, %v2767_v51  ;;  %v4887_v38 = vcombine.low %v2771_v41, %v2775_v34 }
 0x46e   :  { %7789 = vperm.xlu1 %8530, %v4884_v12   ;;  %v4888_v61 = vcombine.low %v2779_v3, %v2783_v18  ;;  %v4895_v53 = vrot.slane %v4885_v48, %v10663_v21  ;;  %v3235_v28 = vrot.slane %v10739_v7, %v10626_v57  ;;  %v3239_v33 = vrot.slane %v10739_v7, %v13175_v30 }
 0x46f   :  { %v5569_v37 = vrot.slane %v5555_v27, %v10663_v21  ;;  %v4902_v55 = vrot.slane %v4886_v45, %v10663_v21  ;;  %v4909_v36 = vrot.slane %v4887_v38, %v10663_v21  ;;  %v3243_v1 = vrot.slane %v10739_v7, %v13176_v23 }
 0x470   :  { %v4916_v24 = vrot.slane %v4888_v61, %v10663_v21  ;;  %v3247_v22 = vrot.slane %v10739_v7, %v13177_v5  ;;  %v3251_v42 = vrot.slane %v10739_v7, %v10643_v54  ;;  %v3255_v35 = vrot.slane %v10739_v7, %v13178_v13 }
 0x471   :  { %v5570_v40 = vcombine.low %v5562_v44, %v5569_v37  ;;  %v4917_v0 = vcombine.low %v4895_v53, %v4902_v55  ;;  %v3259_v4 = vrot.slane %v10739_v7, %v13179_v19  ;;  %v3263_v16 = vrot.slane %v10739_v7, %v10660_v11 }
 0x472   :  { %v4918_v59 = vcombine.low %v4909_v36, %v4916_v24  ;;  %v5620_v56 = vcombine.low %v3235_v28, %v3239_v33  ;;  %v5621_v32 = vcombine.low %v3243_v1, %v3247_v22  ;;  %v5622_v26 = vcombine.low %v3251_v42, %v3255_v35 }
 0x473   :  { %7831 = vperm.xlu0 %8529, %v5570_v40   ;;  %v4925_v51 = vrot.slane %v4917_v0, %v10663_v21  ;;  %v5623_v8 = vcombine.low %v3259_v4, %v3263_v16  ;;  %v2787_v58 = vrot.slane %v10683_v9, %v10626_v57  ;;  %v2791_v41 = vrot.slane %v10683_v9, %v13175_v30 }
 0x474   :  { %v4932_v34 = vrot.slane %v4918_v59, %v10663_v21  ;;  %v5630_v12 = vrot.slane %v5620_v56, %v10663_v21  ;;  %v5637_v7 = vrot.slane %v5621_v32, %v10663_v21  ;;  %v5644_v3 = vrot.slane %v5622_v26, %v10663_v21 }
 0x475   :  { %v5651_v18 = vrot.slane %v5623_v8, %v10663_v21  ;;  %v2795_v48 = vrot.slane %v10683_v9, %v13176_v23  ;;  %v2799_v27 = vrot.slane %v10683_v9, %v13177_v5  ;;  %v2803_v44 = vrot.slane %v10683_v9, %v10643_v54 }
 0x476   :  { %v4933_v45 = vcombine.low %v4925_v51, %v4932_v34  ;;  %v5652_v38 = vcombine.low %v5630_v12, %v5637_v7  ;;  %v2807_v61 = vrot.slane %v10683_v9, %v13178_v13  ;;  %v2811_v53 = vrot.slane %v10683_v9, %v13179_v19 }
 0x477   :  { %v5653_v28 = vcombine.low %v5644_v3, %v5651_v18  ;;  %v2815_v33 = vrot.slane %v10683_v9, %v10660_v11  ;;  %v4934_v37 = vcombine.low %v2787_v58, %v2791_v41  ;;  %v4935_v55 = vcombine.low %v2795_v48, %v2799_v27 }
 0x478   :  { %7792 = vperm.xlu1 %8530, %v4933_v45   ;;  %v5660_v36 = vrot.slane %v5652_v38, %v10663_v21  ;;  %v4936_v1 = vcombine.low %v2803_v44, %v2807_v61  ;;  %v3299_v24 = vrot.slane %v10747_v49, %v10626_v57  ;;  %v3303_v22 = vrot.slane %v10747_v49, %v13175_v30 }
 0x479   :  { %v5667_v42 = vrot.slane %v5653_v28, %v10663_v21  ;;  %v4937_v35 = vcombine.low %v2811_v53, %v2815_v33  ;;  %v4944_v40 = vrot.slane %v4934_v37, %v10663_v21  ;;  %v4951_v0 = vrot.slane %v4935_v55, %v10663_v21 }
 0x47a   :  { %v4958_v9 = vrot.slane %v4936_v1, %v10663_v21  ;;  %v3307_v4 = vrot.slane %v10747_v49, %v13176_v23  ;;  %v3311_v16 = vrot.slane %v10747_v49, %v13177_v5  ;;  %v3315_v59 = vrot.slane %v10747_v49, %v10643_v54 }
 0x47b   :  { %v5668_v56 = vcombine.low %v5660_v36, %v5667_v42  ;;  %v4965_v32 = vrot.slane %v4937_v35, %v10663_v21  ;;  %v4966_v26 = vcombine.low %v4944_v40, %v4951_v0  ;;  %v3319_v51 = vrot.slane %v10747_v49, %v13178_v13 }
 0x47c   :  { %v3323_v8 = vrot.slane %v10747_v49, %v13179_v19  ;;  %v3327_v58 = vrot.slane %v10747_v49, %v10660_v11  ;;  %v5718_v41 = vcombine.low %v3299_v24, %v3303_v22  ;;  %v5719_v34 = vcombine.low %v3307_v4, %v3311_v16 }
 0x47d   :  { %7837 = vperm.xlu0 %8529, %v5668_v56   ;;  %v4967_v12 = vcombine.low %v4958_v9, %v4965_v32  ;;  %v4974_v7 = vrot.slane %v4966_v26, %v10663_v21  ;;  %v5720_v3 = vcombine.low %v3315_v59, %v3319_v51  ;;  %v2819_v18 = vrot.slane %v10687_v17, %v10626_v57 }
 0x47e   :  { %v5721_v48 = vcombine.low %v3323_v8, %v3327_v58  ;;  %v5728_v27 = vrot.slane %v5718_v41, %v10663_v21  ;;  %v5735_v44 = vrot.slane %v5719_v34, %v10663_v21  ;;  %v2823_v45 = vrot.slane %v10687_v17, %v13175_v30 }
 0x47f   :  { %v4981_v49 = vrot.slane %v4967_v12, %v10663_v21  ;;  %v5742_v38 = vrot.slane %v5720_v3, %v10663_v21  ;;  %v2827_v61 = vrot.slane %v10687_v17, %v13176_v23  ;;  %v2831_v53 = vrot.slane %v10687_v17, %v13177_v5 }
 0x480   :  { %v5749_v28 = vrot.slane %v5721_v48, %v10663_v21  ;;  %v5750_v33 = vcombine.low %v5728_v27, %v5735_v44  ;;  %v2835_v37 = vrot.slane %v10687_v17, %v10643_v54  ;;  %v2839_v55 = vrot.slane %v10687_v17, %v13178_v13 }
 0x481   :  { %v4982_v36 = vcombine.low %v4974_v7, %v4981_v49  ;;  %v2843_v1 = vrot.slane %v10687_v17, %v13179_v19  ;;  %v2847_v24 = vrot.slane %v10687_v17, %v10660_v11  ;;  %v4983_v22 = vcombine.low %v2819_v18, %v2823_v45 }
 0x482   :  { %v5751_v42 = vcombine.low %v5742_v38, %v5749_v28  ;;  %v5758_v35 = vrot.slane %v5750_v33, %v10663_v21  ;;  %v4984_v40 = vcombine.low %v2827_v61, %v2831_v53  ;;  %v4985_v0 = vcombine.low %v2835_v37, %v2839_v55 }
 0x483   :  { %7795 = vperm.xlu1 %8530, %v4982_v36   ;;  %v4986_v9 = vcombine.low %v2843_v1, %v2847_v24  ;;  %v4993_v4 = vrot.slane %v4983_v22, %v10663_v21  ;;  %v3363_v16 = vrot.slane %v10755_v15, %v10626_v57  ;;  %v3367_v59 = vrot.slane %v10755_v15, %v13175_v30 }
 0x484   :  { %v5765_v56 = vrot.slane %v5751_v42, %v10663_v21  ;;  %v5000_v17 = vrot.slane %v4984_v40, %v10663_v21  ;;  %v5007_v32 = vrot.slane %v4985_v0, %v10663_v21  ;;  %v3371_v26 = vrot.slane %v10755_v15, %v13176_v23 }
 0x485   :  { %v5014_v51 = vrot.slane %v4986_v9, %v10663_v21  ;;  %v3375_v8 = vrot.slane %v10755_v15, %v13177_v5  ;;  %v3379_v58 = vrot.slane %v10755_v15, %v10643_v54  ;;  %v3383_v41 = vrot.slane %v10755_v15, %v13178_v13 }
 0x486   :  { %v5766_v34 = vcombine.low %v5758_v35, %v5765_v56  ;;  %v5015_v12 = vcombine.low %v4993_v4, %v5000_v17  ;;  %v3387_v7 = vrot.slane %v10755_v15, %v13179_v19  ;;  %v3391_v3 = vrot.slane %v10755_v15, %v10660_v11 }
 0x487   :  { %v5016_v18 = vcombine.low %v5007_v32, %v5014_v51  ;;  %v5816_v48 = vcombine.low %v3363_v16, %v3367_v59  ;;  %v5817_v27 = vcombine.low %v3371_v26, %v3375_v8  ;;  %v5818_v44 = vcombine.low %v3379_v58, %v3383_v41 }
 0x488   :  { %7843 = vperm.xlu0 %8529, %v5766_v34   ;;  %v5023_v45 = vrot.slane %v5015_v12, %v10663_v21  ;;  %v5819_v49 = vcombine.low %v3387_v7, %v3391_v3  ;;  %v2883_v38 = vrot.slane %v10695_v29, %v10626_v57  ;;  %v2887_v61 = vrot.slane %v10695_v29, %v13175_v30 }
 0x489   :  { %v5030_v53 = vrot.slane %v5016_v18, %v10663_v21  ;;  %v5826_v28 = vrot.slane %v5816_v48, %v10663_v21  ;;  %v5833_v15 = vrot.slane %v5817_v27, %v10663_v21  ;;  %v5840_v33 = vrot.slane %v5818_v44, %v10663_v21 }
 0x48a   :  { %v5847_v37 = vrot.slane %v5819_v49, %v10663_v21  ;;  %v2891_v55 = vrot.slane %v10695_v29, %v13176_v23  ;;  %v2895_v36 = vrot.slane %v10695_v29, %v13177_v5  ;;  %v2899_v1 = vrot.slane %v10695_v29, %v10643_v54 }
 0x48b   :  { %v5031_v24 = vcombine.low %v5023_v45, %v5030_v53  ;;  %v5848_v22 = vcombine.low %v5826_v28, %v5833_v15  ;;  %v2903_v42 = vrot.slane %v10695_v29, %v13178_v13  ;;  %v2907_v35 = vrot.slane %v10695_v29, %v13179_v19 }
 0x48c   :  { %v5849_v40 = vcombine.low %v5840_v33, %v5847_v37  ;;  %v2911_v0 = vrot.slane %v10695_v29, %v10660_v11  ;;  %v5081_v9 = vcombine.low %v2883_v38, %v2887_v61  ;;  %v5082_v4 = vcombine.low %v2891_v55, %v2895_v36 }
 0x48d   :  { %7798 = vperm.xlu1 %8530, %v5031_v24   ;;  %v5856_v16 = vrot.slane %v5848_v22, %v10663_v21  ;;  %v5083_v59 = vcombine.low %v2899_v1, %v2903_v42  ;;  %v3427_v56 = vrot.slane %v10763_v14, %v10626_v57  ;;  %v3431_v17 = vrot.slane %v10763_v14, %v13175_v30 }
 0x48e   :  { %v5863_v32 = vrot.slane %v5849_v40, %v10663_v21  ;;  %v5084_v26 = vcombine.low %v2907_v35, %v2911_v0  ;;  %v5091_v51 = vrot.slane %v5081_v9, %v10663_v21  ;;  %v5098_v8 = vrot.slane %v5082_v4, %v10663_v21 }
 0x48f   :  { %v5105_v29 = vrot.slane %v5083_v59, %v10663_v21  ;;  %v3435_v58 = vrot.slane %v10763_v14, %v13176_v23  ;;  %v3439_v41 = vrot.slane %v10763_v14, %v13177_v5  ;;  %v3443_v34 = vrot.slane %v10763_v14, %v10643_v54 }
 0x490   :  { %v5864_v12 = vcombine.low %v5856_v16, %v5863_v32  ;;  %v5112_v7 = vrot.slane %v5084_v26, %v10663_v21  ;;  %v5113_v3 = vcombine.low %v5091_v51, %v5098_v8  ;;  %v3447_v18 = vrot.slane %v10763_v14, %v13178_v13 }
 0x491   :  { %v3451_v48 = vrot.slane %v10763_v14, %v13179_v19  ;;  %v3455_v27 = vrot.slane %v10763_v14, %v10660_v11  ;;  %v5914_v44 = vcombine.low %v3427_v56, %v3431_v17  ;;  %v5915_v45 = vcombine.low %v3435_v58, %v3439_v41 }
 0x492   :  { %7849 = vperm.xlu0 %8529, %v5864_v12   ;;  %v5114_v49 = vcombine.low %v5105_v29, %v5112_v7  ;;  %v5121_v38 = vrot.slane %v5113_v3, %v10663_v21  ;;  %v5916_v61 = vcombine.low %v3443_v34, %v3447_v18  ;;  %v2947_v53 = vrot.slane %v10703_v2, %v10626_v57 }
 0x493   :  { %v5917_v28 = vcombine.low %v3451_v48, %v3455_v27  ;;  %v5924_v15 = vrot.slane %v5914_v44, %v10663_v21  ;;  %v5931_v33 = vrot.slane %v5915_v45, %v10663_v21  ;;  %v2951_v37 = vrot.slane %v10703_v2, %v13175_v30 }
 0x494   :  { %v5128_v14 = vrot.slane %v5114_v49, %v10663_v21  ;;  %v5938_v55 = vrot.slane %v5916_v61, %v10663_v21  ;;  %v2955_v36 = vrot.slane %v10703_v2, %v13176_v23  ;;  %v2959_v1 = vrot.slane %v10703_v2, %v13177_v5 }
 0x495   :  { %v5945_v24 = vrot.slane %v5917_v28, %v10663_v21  ;;  %v5946_v22 = vcombine.low %v5924_v15, %v5931_v33  ;;  %v2963_v42 = vrot.slane %v10703_v2, %v10643_v54  ;;  %v2967_v35 = vrot.slane %v10703_v2, %v13178_v13 }
 0x496   :  { %v5129_v40 = vcombine.low %v5121_v38, %v5128_v14  ;;  %v2971_v0 = vrot.slane %v10703_v2, %v13179_v19  ;;  %v2975_v9 = vrot.slane %v10703_v2, %v10660_v11  ;;  %v5179_v4 = vcombine.low %v2947_v53, %v2951_v37 }
 0x497   :  { %v5947_v16 = vcombine.low %v5938_v55, %v5945_v24  ;;  %v5954_v59 = vrot.slane %v5946_v22, %v10663_v21  ;;  %v5180_v56 = vcombine.low %v2955_v36, %v2959_v1  ;;  %v5181_v17 = vcombine.low %v2963_v42, %v2967_v35 }
 0x498   :  { %7804 = vperm.xlu1 %8530, %v5129_v40   ;;  %v5182_v32 = vcombine.low %v2971_v0, %v2975_v9  ;;  %v5189_v26 = vrot.slane %v5179_v4, %v10663_v21  ;;  %v3491_v51 = vrot.slane %v10771_v20, %v10626_v57  ;;  %v3495_v8 = vrot.slane %v10771_v20, %v13175_v30 }
 0x499   :  { %v5961_v29 = vrot.slane %v5947_v16, %v10663_v21  ;;  %v5196_v2 = vrot.slane %v5180_v56, %v10663_v21  ;;  %v5203_v58 = vrot.slane %v5181_v17, %v10663_v21  ;;  %v3499_v41 = vrot.slane %v10771_v20, %v13176_v23 }
 0x49a   :  { %v5210_v34 = vrot.slane %v5182_v32, %v10663_v21  ;;  %v3503_v12 = vrot.slane %v10771_v20, %v13177_v5  ;;  %v3507_v7 = vrot.slane %v10771_v20, %v10643_v54  ;;  %v3511_v3 = vrot.slane %v10771_v20, %v13178_v13 }
 0x49b   :  { %v5962_v18 = vcombine.low %v5954_v59, %v5961_v29  ;;  %v5211_v48 = vcombine.low %v5189_v26, %v5196_v2  ;;  %v3515_v27 = vrot.slane %v10771_v20, %v13179_v19  ;;  %v3519_v44 = vrot.slane %v10771_v20, %v10660_v11 }
 0x49c   :  { %v5212_v45 = vcombine.low %v5203_v58, %v5210_v34  ;;  %v6012_v49 = vcombine.low %v3491_v51, %v3495_v8  ;;  %v6013_v38 = vcombine.low %v3499_v41, %v3503_v12  ;;  %v6014_v61 = vcombine.low %v3507_v7, %v3511_v3 }
 0x49d   :  { %7855 = vperm.xlu0 %8529, %v5962_v18   ;;  %v5219_v53 = vrot.slane %v5211_v48, %v10663_v21  ;;  %v6015_v28 = vcombine.low %v3515_v27, %v3519_v44  ;;  %v3011_v15 = vrot.slane %v10711_v39, %v10626_v57  ;;  %v3015_v33 = vrot.slane %v10711_v39, %v13175_v30 }
 0x49e   :  { %v5226_v37 = vrot.slane %v5212_v45, %v10663_v21  ;;  %v6022_v14 = vrot.slane %v6012_v49, %v10663_v21  ;;  %v6029_v20 = vrot.slane %v6013_v38, %v10663_v21  ;;  %v6036_v55 = vrot.slane %v6014_v61, %v10663_v21 }
 0x49f   :  { %v6043_v36 = vrot.slane %v6015_v28, %v10663_v21  ;;  %v3019_v1 = vrot.slane %v10711_v39, %v13176_v23  ;;  %v3023_v24 = vrot.slane %v10711_v39, %v13177_v5  ;;  %v3027_v22 = vrot.slane %v10711_v39, %v10643_v54 }
 0x4a0   :  { %v5227_v42 = vcombine.low %v5219_v53, %v5226_v37  ;;  %v6044_v35 = vcombine.low %v6022_v14, %v6029_v20  ;;  %v3031_v40 = vrot.slane %v10711_v39, %v13178_v13  ;;  %v3035_v0 = vrot.slane %v10711_v39, %v13179_v19 }
 0x4a1   :  { %v6045_v9 = vcombine.low %v6036_v55, %v6043_v36  ;;  %v3039_v4 = vrot.slane %v10711_v39, %v10660_v11  ;;  %v5277_v16 = vcombine.low %v3011_v15, %v3015_v33  ;;  %v5278_v59 = vcombine.low %v3019_v1, %v3023_v24 }
 0x4a2   :  { %7810 = vperm.xlu1 %8530, %v5227_v42   ;;  %v6052_v56 = vrot.slane %v6044_v35, %v10663_v21  ;;  %v5279_v17 = vcombine.low %v3027_v22, %v3031_v40  ;;  %v3555_v32 = vrot.slane %v10779_v6, %v10626_v57  ;;  %v3559_v26 = vrot.slane %v10779_v6, %v13175_v30 }
 0x4a3   :  { %v6059_v51 = vrot.slane %v6045_v9, %v10663_v21  ;;  %v5280_v8 = vcombine.low %v3035_v0, %v3039_v4  ;;  %v5287_v29 = vrot.slane %v5277_v16, %v10663_v21  ;;  %v5294_v2 = vrot.slane %v5278_v59, %v10663_v21 }
 0x4a4   :  { %v5301_v39 = vrot.slane %v5279_v17, %v10663_v21  ;;  %v3563_v58 = vrot.slane %v10779_v6, %v13176_v23  ;;  %v3567_v41 = vrot.slane %v10779_v6, %v13177_v5  ;;  %v3571_v34 = vrot.slane %v10779_v6, %v10643_v54 }
 0x4a5   :  { %v6060_v12 = vcombine.low %v6052_v56, %v6059_v51  ;;  %v5308_v7 = vrot.slane %v5280_v8, %v10663_v21  ;;  %v5309_v3 = vcombine.low %v5287_v29, %v5294_v2  ;;  %v3575_v18 = vrot.slane %v10779_v6, %v13178_v13 }
 0x4a6   :  { %v3579_v48 = vrot.slane %v10779_v6, %v13179_v19  ;;  %v3583_v27 = vrot.slane %v10779_v6, %v10660_v11  ;;  %v6110_v44 = vcombine.low %v3555_v32, %v3559_v26  ;;  %v6111_v45 = vcombine.low %v3563_v58, %v3567_v41 }
 0x4a7   :  { %7861 = vperm.xlu0 %8529, %v6060_v12   ;;  %v5310_v49 = vcombine.low %v5301_v39, %v5308_v7  ;;  %v5317_v38 = vrot.slane %v5309_v3, %v10663_v21  ;;  %v6112_v61 = vcombine.low %v3571_v34, %v3575_v18  ;;  %v3075_v53 = vrot.slane %v10719_v63, %v10626_v57 }
 0x4a8   :  { %v6113_v28 = vcombine.low %v3579_v48, %v3583_v27  ;;  %v6120_v15 = vrot.slane %v6110_v44, %v10663_v21  ;;  %v6127_v33 = vrot.slane %v6111_v45, %v10663_v21  ;;  %v3079_v37 = vrot.slane %v10719_v63, %v13175_v30 }
 0x4a9   :  { %v5324_v6 = vrot.slane %v5310_v49, %v10663_v21  ;;  %v6134_v14 = vrot.slane %v6112_v61, %v10663_v21  ;;  %v3083_v20 = vrot.slane %v10719_v63, %v13176_v23  ;;  %v3087_v55 = vrot.slane %v10719_v63, %v13177_v5 }
 0x4aa   :  { %v6141_v36 = vrot.slane %v6113_v28, %v10663_v21  ;;  %v6142_v1 = vcombine.low %v6120_v15, %v6127_v33  ;;  %v3091_v24 = vrot.slane %v10719_v63, %v10643_v54  ;;  %v3095_v22 = vrot.slane %v10719_v63, %v13178_v13 }
 0x4ab   :  { %v5325_v42 = vcombine.low %v5317_v38, %v5324_v6  ;;  %v3099_v35 = vrot.slane %v10719_v63, %v13179_v19  ;;  %v3103_v40 = vrot.slane %v10719_v63, %v10660_v11  ;;  %v5375_v0 = vcombine.low %v3075_v53, %v3079_v37 }
 0x4ac   :  { %v6143_v9 = vcombine.low %v6134_v14, %v6141_v36  ;;  %v6150_v4 = vrot.slane %v6142_v1, %v10663_v21  ;;  %v5376_v16 = vcombine.low %v3083_v20, %v3087_v55  ;;  %v5377_v59 = vcombine.low %v3091_v24, %v3095_v22 }
 0x4ad   :  { %7816 = vperm.xlu1 %8530, %v5325_v42   ;;  %v5378_v56 = vcombine.low %v3099_v35, %v3103_v40  ;;  %v5385_v17 = vrot.slane %v5375_v0, %v10663_v21  ;;  %v3619_v32 = vrot.slane %v10787_v43, %v10626_v57  ;;  %v3623_v26 = vrot.slane %v10787_v43, %v13175_v30 }
 0x4ae   :  { %v6157_v51 = vrot.slane %v6143_v9, %v10663_v21  ;;  %v5392_v63 = vrot.slane %v5376_v16, %v10663_v21  ;;  %v5399_v8 = vrot.slane %v5377_v59, %v10663_v21  ;;  %v3627_v29 = vrot.slane %v10787_v43, %v13176_v23 }
 0x4af   :  { %v5406_v2 = vrot.slane %v5378_v56, %v10663_v21  ;;  %v3631_v39 = vrot.slane %v10787_v43, %v13177_v5  ;;  %v3635_v58 = vrot.slane %v10787_v43, %v10643_v54  ;;  %v3639_v41 = vrot.slane %v10787_v43, %v13178_v13 }
 0x4b0   :  { %v6158_v34 = vcombine.low %v6150_v4, %v6157_v51  ;;  %v5407_v12 = vcombine.low %v5385_v17, %v5392_v63  ;;  %v3643_v7 = vrot.slane %v10787_v43, %v13179_v19  ;;  %v3647_v3 = vrot.slane %v10787_v43, %v10660_v11 }
 0x4b1   :  { %v5408_v18 = vcombine.low %v5399_v8, %v5406_v2  ;;  %v6208_v48 = vcombine.low %v3619_v32, %v3623_v26  ;;  %v6209_v27 = vcombine.low %v3627_v29, %v3631_v39  ;;  %v6210_v44 = vcombine.low %v3635_v58, %v3639_v41 }
 0x4b2   :  { %7867 = vperm.xlu0 %8529, %v6158_v34   ;;  %v5415_v45 = vrot.slane %v5407_v12, %v10663_v21  ;;  %v6211_v49 = vcombine.low %v3643_v7, %v3647_v3  ;;  %v3139_v38 = vrot.slane %v10727_v10, %v10626_v57  ;;  %v3143_v61 = vrot.slane %v10727_v10, %v13175_v30 }
 0x4b3   :  { %v5422_v53 = vrot.slane %v5408_v18, %v10663_v21  ;;  %v6218_v28 = vrot.slane %v6208_v48, %v10663_v21  ;;  %v6225_v43 = vrot.slane %v6209_v27, %v10663_v21  ;;  %v6232_v15 = vrot.slane %v6210_v44, %v10663_v21 }
 0x4b4   :  { %v6239_v33 = vrot.slane %v6211_v49, %v10663_v21  ;;  %v3147_v37 = vrot.slane %v10727_v10, %v13176_v23  ;;  %v3151_v6 = vrot.slane %v10727_v10, %v13177_v5  ;;  %v3155_v14 = vrot.slane %v10727_v10, %v10643_v54 }
 0x4b5   :  { %v5423_v20 = vcombine.low %v5415_v45, %v5422_v53  ;;  %v6240_v55 = vcombine.low %v6218_v28, %v6225_v43  ;;  %v3159_v36 = vrot.slane %v10727_v10, %v13178_v13  ;;  %v3163_v1 = vrot.slane %v10727_v10, %v13179_v19 }
 0x4b6   :  { %v6241_v24 = vcombine.low %v6232_v15, %v6239_v33  ;;  %v3167_v22 = vrot.slane %v10727_v10, %v10660_v11  ;;  %v5473_v42 = vcombine.low %v3139_v38, %v3143_v61  ;;  %v5474_v35 = vcombine.low %v3147_v37, %v3151_v6 }
 0x4b7   :  { %7822 = vperm.xlu1 %8530, %v5423_v20   ;;  %v6248_v40 = vrot.slane %v6240_v55, %v10663_v21  ;;  %v5475_v0 = vcombine.low %v3155_v14, %v3159_v36  ;;  %v3683_v9 = vrot.slane %v10795_v50, %v10626_v57  ;;  %v3687_v4 = vrot.slane %v10795_v50, %v13175_v30 }
 0x4b8   :  { %v6255_v16 = vrot.slane %v6241_v24, %v10663_v21  ;;  %v5476_v59 = vcombine.low %v3163_v1, %v3167_v22  ;;  %v5483_v56 = vrot.slane %v5473_v42, %v10663_v21  ;;  %v5490_v17 = vrot.slane %v5474_v35, %v10663_v21 }
 0x4b9   :  { %v5497_v10 = vrot.slane %v5475_v0, %v10663_v21  ;;  %v3691_v32 = vrot.slane %v10795_v50, %v13176_v23  ;;  %v3695_v26 = vrot.slane %v10795_v50, %v13177_v5  ;;  %v3699_v51 = vrot.slane %v10795_v50, %v10643_v54 }
 0x4ba   :  { %v6256_v63 = vcombine.low %v6248_v40, %v6255_v16  ;;  %v5504_v8 = vrot.slane %v5476_v59, %v10663_v21  ;;  %v5505_v29 = vcombine.low %v5483_v56, %v5490_v17  ;;  %v3703_v2 = vrot.slane %v10795_v50, %v13178_v13 }
 0x4bb   :  { %v3707_v39 = vrot.slane %v10795_v50, %v13179_v19  ;;  %v3711_v58 = vrot.slane %v10795_v50, %v10660_v11  ;;  %v6306_v41 = vcombine.low %v3683_v9, %v3687_v4  ;;  %v6307_v34 = vcombine.low %v3691_v32, %v3695_v26 }
 0x4bc   :  { %7873 = vperm.xlu0 %8529, %v6256_v63   ;;  %v5506_v12 = vcombine.low %v5497_v10, %v5504_v8  ;;  %v5513_v7 = vrot.slane %v5505_v29, %v10663_v21  ;;  %v6308_v3 = vcombine.low %v3699_v51, %v3703_v2  ;;  %v3203_v18 = vrot.slane %v10735_v46, %v10626_v57 }
 0x4bd   :  { %v6309_v48 = vcombine.low %v3707_v39, %v3711_v58  ;;  %v6316_v27 = vrot.slane %v6306_v41, %v10663_v21  ;;  %v6323_v44 = vrot.slane %v6307_v34, %v10663_v21  ;;  %v3207_v45 = vrot.slane %v10735_v46, %v13175_v30 }
 0x4be   :  { %v5520_v50 = vrot.slane %v5506_v12, %v10663_v21  ;;  %v6330_v49 = vrot.slane %v6308_v3, %v10663_v21  ;;  %v3211_v38 = vrot.slane %v10735_v46, %v13176_v23  ;;  %v3215_v61 = vrot.slane %v10735_v46, %v13177_v5 }
 0x4bf   :  { %v6337_v53 = vrot.slane %v6309_v48, %v10663_v21  ;;  %v6338_v28 = vcombine.low %v6316_v27, %v6323_v44  ;;  %v3219_v43 = vrot.slane %v10735_v46, %v10643_v54  ;;  %v3223_v15 = vrot.slane %v10735_v46, %v13178_v13 }
 0x4c0   :  { %v5521_v33 = vcombine.low %v5513_v7, %v5520_v50  ;;  %v3227_v37 = vrot.slane %v10735_v46, %v13179_v19  ;;  %v3231_v6 = vrot.slane %v10735_v46, %v10660_v11  ;;  %v5571_v14 = vcombine.low %v3203_v18, %v3207_v45 }
 0x4c1   :  { %v6339_v20 = vcombine.low %v6330_v49, %v6337_v53  ;;  %v6346_v55 = vrot.slane %v6338_v28, %v10663_v21  ;;  %v5572_v36 = vcombine.low %v3211_v38, %v3215_v61  ;;  %v5573_v1 = vcombine.low %v3219_v43, %v3223_v15 }
 0x4c2   :  { %7828 = vperm.xlu1 %8530, %v5521_v33   ;;  %v5574_v24 = vcombine.low %v3227_v37, %v3231_v6  ;;  %v5581_v22 = vrot.slane %v5571_v14, %v10663_v21  ;;  %v3747_v42 = vrot.slane %v10803_v60, %v10626_v57  ;;  %v3751_v35 = vrot.slane %v10803_v60, %v13175_v30 }
 0x4c3   :  { %v6353_v40 = vrot.slane %v6339_v20, %v10663_v21  ;;  %v5588_v46 = vrot.slane %v5572_v36, %v10663_v21  ;;  %v5595_v0 = vrot.slane %v5573_v1, %v10663_v21  ;;  %v3755_v9 = vrot.slane %v10803_v60, %v13176_v23 }
 0x4c4   :  { %v5602_v4 = vrot.slane %v5574_v24, %v10663_v21  ;;  %v3759_v16 = vrot.slane %v10803_v60, %v13177_v5  ;;  %v3763_v59 = vrot.slane %v10803_v60, %v10643_v54  ;;  %v3767_v56 = vrot.slane %v10803_v60, %v13178_v13 }
 0x4c5   :  { %v6354_v17 = vcombine.low %v6346_v55, %v6353_v40  ;;  %v5603_v10 = vcombine.low %v5581_v22, %v5588_v46  ;;  %v3771_v32 = vrot.slane %v10803_v60, %v13179_v19  ;;  %v3775_v26 = vrot.slane %v10803_v60, %v10660_v11 }
 0x4c6   :  { %v5604_v51 = vcombine.low %v5595_v0, %v5602_v4  ;;  %v6404_v63 = vcombine.low %v3747_v42, %v3751_v35  ;;  %v6405_v8 = vcombine.low %v3755_v9, %v3759_v16  ;;  %v6406_v29 = vcombine.low %v3763_v59, %v3767_v56 }
 0x4c7   :  { %7879 = vperm.xlu0 %8529, %v6354_v17   ;;  %v5611_v2 = vrot.slane %v5603_v10, %v10663_v21  ;;  %v6407_v39 = vcombine.low %v3771_v32, %v3775_v26  ;;  %v3267_v58 = vrot.slane %v10743_v52, %v10626_v57  ;;  %v3271_v41 = vrot.slane %v10743_v52, %v13175_v30 }
 0x4c8   :  { %v5618_v34 = vrot.slane %v5604_v51, %v10663_v21  ;;  %v6414_v12 = vrot.slane %v6404_v63, %v10663_v21  ;;  %v6421_v60 = vrot.slane %v6405_v8, %v10663_v21  ;;  %v6428_v7 = vrot.slane %v6406_v29, %v10663_v21 }
 0x4c9   :  { %v6435_v3 = vrot.slane %v6407_v39, %v10663_v21  ;;  %v3275_v18 = vrot.slane %v10743_v52, %v13176_v23  ;;  %v3279_v48 = vrot.slane %v10743_v52, %v13177_v5  ;;  %v3283_v27 = vrot.slane %v10743_v52, %v10643_v54 }
 0x4ca   :  { %v5619_v44 = vcombine.low %v5611_v2, %v5618_v34  ;;  %v6436_v45 = vcombine.low %v6414_v12, %v6421_v60  ;;  %v3287_v50 = vrot.slane %v10743_v52, %v13178_v13  ;;  %v3291_v49 = vrot.slane %v10743_v52, %v13179_v19 }
 0x4cb   :  { %v6437_v38 = vcombine.low %v6428_v7, %v6435_v3  ;;  %v3295_v61 = vrot.slane %v10743_v52, %v10660_v11  ;;  %v5669_v53 = vcombine.low %v3267_v58, %v3271_v41  ;;  %v5670_v28 = vcombine.low %v3275_v18, %v3279_v48 }
 0x4cc   :  { %7834 = vperm.xlu1 %8530, %v5619_v44   ;;  %v6444_v43 = vrot.slane %v6436_v45, %v10663_v21  ;;  %v5671_v15 = vcombine.low %v3283_v27, %v3287_v50  ;;  %v3811_v33 = vrot.slane %v10807_v31, %v10626_v57  ;;  %v3815_v37 = vrot.slane %v10807_v31, %v13175_v30 }
 0x4cd   :  { %v6451_v6 = vrot.slane %v6437_v38, %v10663_v21  ;;  %v5672_v14 = vcombine.low %v3291_v49, %v3295_v61  ;;  %v5679_v20 = vrot.slane %v5669_v53, %v10663_v21  ;;  %v5686_v55 = vrot.slane %v5670_v28, %v10663_v21 }
 0x4ce   :  { %v5693_v52 = vrot.slane %v5671_v15, %v10663_v21  ;;  %v3819_v36 = vrot.slane %v10807_v31, %v13176_v23  ;;  %v3823_v1 = vrot.slane %v10807_v31, %v13177_v5  ;;  %v3827_v24 = vrot.slane %v10807_v31, %v10643_v54 }
 0x4cf   :  { %v6452_v22 = vcombine.low %v6444_v43, %v6451_v6  ;;  %v5700_v42 = vrot.slane %v5672_v14, %v10663_v21  ;;  %v5701_v35 = vcombine.low %v5679_v20, %v5686_v55  ;;  %v3831_v40 = vrot.slane %v10807_v31, %v13178_v13 }
 0x4d0   :  { %v3835_v46 = vrot.slane %v10807_v31, %v13179_v19  ;;  %v3839_v0 = vrot.slane %v10807_v31, %v10660_v11  ;;  %v6502_v9 = vcombine.low %v3811_v33, %v3815_v37  ;;  %v6503_v4 = vcombine.low %v3819_v36, %v3823_v1 }
 0x4d1   :  { %7885 = vperm.xlu0 %8529, %v6452_v22   ;;  %v5702_v16 = vcombine.low %v5693_v52, %v5700_v42  ;;  %v5709_v59 = vrot.slane %v5701_v35, %v10663_v21  ;;  %v6504_v56 = vcombine.low %v3827_v24, %v3831_v40  ;;  %v3331_v17 = vrot.slane %v10751_v62, %v10626_v57 }
 0x4d2   :  { %v6505_v10 = vcombine.low %v3835_v46, %v3839_v0  ;;  %v6512_v32 = vrot.slane %v6502_v9, %v10663_v21  ;;  %v6519_v26 = vrot.slane %v6503_v4, %v10663_v21  ;;  %v3335_v51 = vrot.slane %v10751_v62, %v13175_v30 }
 0x4d3   :  { %v5716_v31 = vrot.slane %v5702_v16, %v10663_v21  ;;  %v6526_v63 = vrot.slane %v6504_v56, %v10663_v21  ;;  %v3339_v8 = vrot.slane %v10751_v62, %v13176_v23  ;;  %v3343_v29 = vrot.slane %v10751_v62, %v13177_v5 }
 0x4d4   :  { %v6533_v2 = vrot.slane %v6505_v10, %v10663_v21  ;;  %v6534_v39 = vcombine.low %v6512_v32, %v6519_v26  ;;  %v3347_v58 = vrot.slane %v10751_v62, %v10643_v54  ;;  %v3351_v41 = vrot.slane %v10751_v62, %v13178_v13 }
 0x4d5   :  { %v5717_v34 = vcombine.low %v5709_v59, %v5716_v31  ;;  %v3355_v12 = vrot.slane %v10751_v62, %v13179_v19  ;;  %v3359_v60 = vrot.slane %v10751_v62, %v10660_v11  ;;  %v5767_v7 = vcombine.low %v3331_v17, %v3335_v51 }
 0x4d6   :  { %v6535_v3 = vcombine.low %v6526_v63, %v6533_v2  ;;  %v6542_v18 = vrot.slane %v6534_v39, %v10663_v21  ;;  %v5768_v48 = vcombine.low %v3339_v8, %v3343_v29  ;;  %v5769_v27 = vcombine.low %v3347_v58, %v3351_v41  ;;  %v13181_v2 = vld [vmem:[#allocation98_spill] sm:$0xff] }
 0x4d7   :  { %7840 = vperm.xlu1 %8530, %v5717_v34   ;;  %v5770_v44 = vcombine.low %v3355_v12, %v3359_v60  ;;  %v5777_v45 = vrot.slane %v5767_v7, %v10663_v21  ;;  %v3875_v50 = vrot.slane %v10819_v47, %v10626_v57  ;;  %v3879_v49 = vrot.slane %v10819_v47, %v13175_v30 }
 0x4d8   :  { %v6549_v38 = vrot.slane %v6535_v3, %v10663_v21  ;;  %v5784_v62 = vrot.slane %v5768_v48, %v10663_v21  ;;  %v5791_v61 = vrot.slane %v5769_v27, %v10663_v21  ;;  %v3883_v53 = vrot.slane %v10819_v47, %v13176_v23 }
 0x4d9   :  { %v5798_v28 = vrot.slane %v5770_v44, %v10663_v21  ;;  %v3887_v43 = vrot.slane %v10819_v47, %v13177_v5  ;;  %v3891_v15 = vrot.slane %v10819_v47, %v10643_v54  ;;  %v3895_v33 = vrot.slane %v10819_v47, %v13178_v13 }
 0x4da   :  { %v6550_v37 = vcombine.low %v6542_v18, %v6549_v38  ;;  %v5799_v6 = vcombine.low %v5777_v45, %v5784_v62  ;;  %v3899_v14 = vrot.slane %v10819_v47, %v13179_v19  ;;  %v3903_v20 = vrot.slane %v10819_v47, %v10660_v11 }
 0x4db   :  { %v5800_v55 = vcombine.low %v5791_v61, %v5798_v28  ;;  %v6600_v52 = vcombine.low %v3875_v50, %v3879_v49  ;;  %v6601_v36 = vcombine.low %v3883_v53, %v3887_v43  ;;  %v6602_v1 = vcombine.low %v3891_v15, %v3895_v33  ;;  %v13182_v43 = vld [vmem:[#allocation71_spill] sm:$0xff] }
 0x4dc   :  { %7891 = vperm.xlu0 %8529, %v6550_v37   ;;  %v5807_v24 = vrot.slane %v5799_v6, %v10663_v21  ;;  %v6603_v22 = vcombine.low %v3899_v14, %v3903_v20  ;;  %v3395_v42 = vrot.slane %v10759_v25, %v10626_v57  ;;  %v3399_v35 = vrot.slane %v10759_v25, %v13175_v30 }
 0x4dd   :  { %v5814_v40 = vrot.slane %v5800_v55, %v10663_v21  ;;  %v6610_v46 = vrot.slane %v6600_v52, %v10663_v21  ;;  %v6617_v47 = vrot.slane %v6601_v36, %v10663_v21  ;;  %v6624_v0 = vrot.slane %v6602_v1, %v10663_v21 }
 0x4de   :  { %v6631_v9 = vrot.slane %v6603_v22, %v10663_v21  ;;  %v3403_v4 = vrot.slane %v10759_v25, %v13176_v23  ;;  %v3407_v16 = vrot.slane %v10759_v25, %v13177_v5  ;;  %v3411_v59 = vrot.slane %v10759_v25, %v10643_v54 }
 0x4df   :  { %v5815_v56 = vcombine.low %v5807_v24, %v5814_v40  ;;  %v6632_v17 = vcombine.low %v6610_v46, %v6617_v47  ;;  %v3415_v10 = vrot.slane %v10759_v25, %v13178_v13  ;;  %v3419_v32 = vrot.slane %v10759_v25, %v13179_v19 }
 0x4e0   :  { %v6633_v26 = vcombine.low %v6624_v0, %v6631_v9  ;;  %v3423_v51 = vrot.slane %v10759_v25, %v10660_v11  ;;  %v5865_v31 = vcombine.low %v3395_v42, %v3399_v35  ;;  %v5866_v63 = vcombine.low %v3403_v4, %v3407_v16 }
 0x4e1   :  { %7846 = vperm.xlu1 %8530, %v5815_v56   ;;  %v6640_v8 = vrot.slane %v6632_v17, %v10663_v21  ;;  %v5867_v29 = vcombine.low %v3411_v59, %v3415_v10  ;;  %v4131_v39 = vrot.slane %v13181_v2, %v10626_v57  ;;  %v4135_v58 = vrot.slane %v13181_v2, %v13175_v30  ;;  %v13183_v17 = vld [vmem:[#allocation75_spill] sm:$0xff] }
 0x4e2   :  { %v6647_v41 = vrot.slane %v6633_v26, %v10663_v21  ;;  %v5868_v34 = vcombine.low %v3419_v32, %v3423_v51  ;;  %v5875_v12 = vrot.slane %v5865_v31, %v10663_v21  ;;  %v5882_v60 = vrot.slane %v5866_v63, %v10663_v21 }
 0x4e3   :  { %v5889_v25 = vrot.slane %v5867_v29, %v10663_v21  ;;  %v4139_v7 = vrot.slane %v13181_v2, %v13176_v23  ;;  %v4143_v3 = vrot.slane %v13181_v2, %v13177_v5  ;;  %v4147_v18 = vrot.slane %v13181_v2, %v10643_v54 }
 0x4e4   :  { %v6648_v48 = vcombine.low %v6640_v8, %v6647_v41  ;;  %v5896_v27 = vrot.slane %v5868_v34, %v10663_v21  ;;  %v5897_v44 = vcombine.low %v5875_v12, %v5882_v60  ;;  %v4151_v45 = vrot.slane %v13181_v2, %v13178_v13 }
 0x4e5   :  { %v4155_v50 = vrot.slane %v13181_v2, %v13179_v19  ;;  %v4159_v49 = vrot.slane %v13181_v2, %v10660_v11  ;;  %v6992_v38 = vcombine.low %v4131_v39, %v4135_v58  ;;  %v6993_v62 = vcombine.low %v4139_v7, %v4143_v3 }
 0x4e6   :  { %7897 = vperm.xlu0 %8529, %v6648_v48   ;;  %v5898_v61 = vcombine.low %v5889_v25, %v5896_v27  ;;  %v5905_v53 = vrot.slane %v5897_v44, %v10663_v21  ;;  %v6994_v28 = vcombine.low %v4147_v18, %v4151_v45  ;;  %v3459_v15 = vrot.slane %v13182_v43, %v10626_v57  ;;  %v13184_v27 = vld [vmem:[#allocation88_spill] sm:$0xff] }
 0x4e7   :  { %v6995_v33 = vcombine.low %v4155_v50, %v4159_v49  ;;  %v7002_v37 = vrot.slane %v6992_v38, %v10663_v21  ;;  %v7009_v6 = vrot.slane %v6993_v62, %v10663_v21  ;;  %v3463_v14 = vrot.slane %v13182_v43, %v13175_v30 }
 0x4e8   :  { %v5912_v20 = vrot.slane %v5898_v61, %v10663_v21  ;;  %v7016_v55 = vrot.slane %v6994_v28, %v10663_v21  ;;  %v3467_v52 = vrot.slane %v13182_v43, %v13176_v23  ;;  %v3471_v36 = vrot.slane %v13182_v43, %v13177_v5 }
 0x4e9   :  { %v7023_v1 = vrot.slane %v6995_v33, %v10663_v21  ;;  %v7024_v24 = vcombine.low %v7002_v37, %v7009_v6  ;;  %v3475_v22 = vrot.slane %v13182_v43, %v10643_v54  ;;  %v3479_v42 = vrot.slane %v13182_v43, %v13178_v13 }
 0x4ea   :  { %v5913_v35 = vcombine.low %v5905_v53, %v5912_v20  ;;  %v3483_v40 = vrot.slane %v13182_v43, %v13179_v19  ;;  %v3487_v46 = vrot.slane %v13182_v43, %v10660_v11  ;;  %v5963_v47 = vcombine.low %v3459_v15, %v3463_v14 }
 0x4eb   :  { %v7025_v0 = vcombine.low %v7016_v55, %v7023_v1  ;;  %v7032_v9 = vrot.slane %v7024_v24, %v10663_v21  ;;  %v5964_v4 = vcombine.low %v3467_v52, %v3471_v36  ;;  %v5965_v16 = vcombine.low %v3475_v22, %v3479_v42  ;;  %v13185_v24 = vld [vmem:[#allocation99_spill] sm:$0xff] }
 0x4ec   :  { %7852 = vperm.xlu1 %8530, %v5913_v35   ;;  %v5966_v59 = vcombine.low %v3483_v40, %v3487_v46  ;;  %v5973_v56 = vrot.slane %v5963_v47, %v10663_v21  ;;  %v4195_v10 = vrot.slane %v13183_v17, %v10626_v57  ;;  %v4199_v32 = vrot.slane %v13183_v17, %v13175_v30 }
 0x4ed   :  { %v7039_v26 = vrot.slane %v7025_v0, %v10663_v21  ;;  %v5980_v51 = vrot.slane %v5964_v4, %v10663_v21  ;;  %v5987_v31 = vrot.slane %v5965_v16, %v10663_v21  ;;  %v4203_v63 = vrot.slane %v13183_v17, %v13176_v23 }
 0x4ee   :  { %v5994_v8 = vrot.slane %v5966_v59, %v10663_v21  ;;  %v4207_v29 = vrot.slane %v13183_v17, %v13177_v5  ;;  %v4211_v2 = vrot.slane %v13183_v17, %v10643_v54  ;;  %v4215_v39 = vrot.slane %v13183_v17, %v13178_v13 }
 0x4ef   :  { %v7040_v58 = vcombine.low %v7032_v9, %v7039_v26  ;;  %v5995_v41 = vcombine.low %v5973_v56, %v5980_v51  ;;  %v4219_v34 = vrot.slane %v13183_v17, %v13179_v19  ;;  %v4223_v12 = vrot.slane %v13183_v17, %v10660_v11 }
 0x4f0   :  { %v5996_v60 = vcombine.low %v5987_v31, %v5994_v8  ;;  %v7090_v25 = vcombine.low %v4195_v10, %v4199_v32  ;;  %v7091_v7 = vcombine.low %v4203_v63, %v4207_v29  ;;  %v7092_v3 = vcombine.low %v4211_v2, %v4215_v39  ;;  %v13186_v2 = vld [vmem:[#allocation87_spill] sm:$0xff] }
 0x4f1   :  { %7921 = vperm.xlu0 %8529, %v7040_v58   ;;  %v6003_v18 = vrot.slane %v5995_v41, %v10663_v21  ;;  %v7093_v48 = vcombine.low %v4219_v34, %v4223_v12  ;;  %v3523_v44 = vrot.slane %v13184_v27, %v10626_v57  ;;  %v3527_v45 = vrot.slane %v13184_v27, %v13175_v30 }
 0x4f2   :  { %v6010_v50 = vrot.slane %v5996_v60, %v10663_v21  ;;  %v7100_v49 = vrot.slane %v7090_v25, %v10663_v21  ;;  %v7107_v38 = vrot.slane %v7091_v7, %v10663_v21  ;;  %v7114_v62 = vrot.slane %v7092_v3, %v10663_v21 }
 0x4f3   :  { %v7121_v61 = vrot.slane %v7093_v48, %v10663_v21  ;;  %v3531_v53 = vrot.slane %v13184_v27, %v13176_v23  ;;  %v3535_v28 = vrot.slane %v13184_v27, %v13177_v5  ;;  %v3539_v43 = vrot.slane %v13184_v27, %v10643_v54 }
 0x4f4   :  { %v6011_v15 = vcombine.low %v6003_v18, %v6010_v50  ;;  %v7122_v33 = vcombine.low %v7100_v49, %v7107_v38  ;;  %v3543_v37 = vrot.slane %v13184_v27, %v13178_v13  ;;  %v3547_v6 = vrot.slane %v13184_v27, %v13179_v19 }
 0x4f5   :  { %v7123_v14 = vcombine.low %v7114_v62, %v7121_v61  ;;  %v3551_v20 = vrot.slane %v13184_v27, %v10660_v11  ;;  %v6061_v55 = vcombine.low %v3523_v44, %v3527_v45  ;;  %v6062_v52 = vcombine.low %v3531_v53, %v3535_v28 }
 0x4f6   :  { %7858 = vperm.xlu1 %8530, %v6011_v15   ;;  %v7130_v36 = vrot.slane %v7122_v33, %v10663_v21  ;;  %v6063_v1 = vcombine.low %v3539_v43, %v3543_v37  ;;  %v4259_v22 = vrot.slane %v13185_v24, %v10626_v57  ;;  %v4263_v42 = vrot.slane %v13185_v24, %v13175_v30  ;;  %v13187_v33 = vld [vmem:[#allocation102_spill] sm:$0xff] }
 0x4f7   :  { %v7137_v35 = vrot.slane %v7123_v14, %v10663_v21  ;;  %v6064_v40 = vcombine.low %v3547_v6, %v3551_v20  ;;  %v6071_v46 = vrot.slane %v6061_v55, %v10663_v21  ;;  %v6078_v47 = vrot.slane %v6062_v52, %v10663_v21 }
 0x4f8   :  { %v6085_v0 = vrot.slane %v6063_v1, %v10663_v21  ;;  %v4267_v9 = vrot.slane %v13185_v24, %v13176_v23  ;;  %v4271_v4 = vrot.slane %v13185_v24, %v13177_v5  ;;  %v4275_v16 = vrot.slane %v13185_v24, %v10643_v54 }
 0x4f9   :  { %v7138_v59 = vcombine.low %v7130_v36, %v7137_v35  ;;  %v6092_v56 = vrot.slane %v6064_v40, %v10663_v21  ;;  %v6093_v17 = vcombine.low %v6071_v46, %v6078_v47  ;;  %v4279_v10 = vrot.slane %v13185_v24, %v13178_v13 }
 0x4fa   :  { %v4283_v32 = vrot.slane %v13185_v24, %v13179_v19  ;;  %v4287_v26 = vrot.slane %v13185_v24, %v10660_v11  ;;  %v7188_v51 = vcombine.low %v4259_v22, %v4263_v42  ;;  %v7189_v31 = vcombine.low %v4267_v9, %v4271_v4 }
 0x4fb   :  { %7927 = vperm.xlu0 %8529, %v7138_v59   ;;  %v6094_v63 = vcombine.low %v6085_v0, %v6092_v56  ;;  %v6101_v8 = vrot.slane %v6093_v17, %v10663_v21  ;;  %v7190_v29 = vcombine.low %v4275_v16, %v4279_v10  ;;  %v3587_v39 = vrot.slane %v13186_v2, %v10626_v57  ;;  %v13188_v56 = vld [vmem:[#allocation90_spill] sm:$0xff] }
 0x4fc   :  { %v7191_v58 = vcombine.low %v4283_v32, %v4287_v26  ;;  %v7198_v41 = vrot.slane %v7188_v51, %v10663_v21  ;;  %v7205_v34 = vrot.slane %v7189_v31, %v10663_v21  ;;  %v3591_v12 = vrot.slane %v13186_v2, %v13175_v30 }
 0x4fd   :  { %v6108_v60 = vrot.slane %v6094_v63, %v10663_v21  ;;  %v7212_v25 = vrot.slane %v7190_v29, %v10663_v21  ;;  %v3595_v7 = vrot.slane %v13186_v2, %v13176_v23  ;;  %v3599_v3 = vrot.slane %v13186_v2, %v13177_v5 }
 0x4fe   :  { %v7219_v18 = vrot.slane %v7191_v58, %v10663_v21  ;;  %v7220_v48 = vcombine.low %v7198_v41, %v7205_v34  ;;  %v3603_v27 = vrot.slane %v13186_v2, %v10643_v54  ;;  %v3607_v44 = vrot.slane %v13186_v2, %v13178_v13 }
 0x4ff   :  { %v6109_v45 = vcombine.low %v6101_v8, %v6108_v60  ;;  %v3611_v50 = vrot.slane %v13186_v2, %v13179_v19  ;;  %v3615_v49 = vrot.slane %v13186_v2, %v10660_v11  ;;  %v6159_v38 = vcombine.low %v3587_v39, %v3591_v12 }
 0x500   :  { %v7221_v62 = vcombine.low %v7212_v25, %v7219_v18  ;;  %v7228_v61 = vrot.slane %v7220_v48, %v10663_v21  ;;  %v6160_v53 = vcombine.low %v3595_v7, %v3599_v3  ;;  %v6161_v28 = vcombine.low %v3603_v27, %v3607_v44  ;;  %v13189_v48 = vld [vmem:[#allocation103_spill] sm:$0xff] }
 0x501   :  { %7864 = vperm.xlu1 %8530, %v6109_v45   ;;  %v6162_v43 = vcombine.low %v3611_v50, %v3615_v49  ;;  %v6169_v15 = vrot.slane %v6159_v38, %v10663_v21  ;;  %v4323_v37 = vrot.slane %v13187_v33, %v10626_v57  ;;  %v4327_v6 = vrot.slane %v13187_v33, %v13175_v30 }
 0x502   :  { %v7235_v14 = vrot.slane %v7221_v62, %v10663_v21  ;;  %v6176_v20 = vrot.slane %v6160_v53, %v10663_v21  ;;  %v6183_v55 = vrot.slane %v6161_v28, %v10663_v21  ;;  %v4331_v52 = vrot.slane %v13187_v33, %v13176_v23 }
 0x503   :  { %v6190_v36 = vrot.slane %v6162_v43, %v10663_v21  ;;  %v4335_v1 = vrot.slane %v13187_v33, %v13177_v5  ;;  %v4339_v24 = vrot.slane %v13187_v33, %v10643_v54  ;;  %v4343_v22 = vrot.slane %v13187_v33, %v13178_v13 }
 0x504   :  { %v7236_v42 = vcombine.low %v7228_v61, %v7235_v14  ;;  %v6191_v35 = vcombine.low %v6169_v15, %v6176_v20  ;;  %v4347_v40 = vrot.slane %v13187_v33, %v13179_v19  ;;  %v4351_v46 = vrot.slane %v13187_v33, %v10660_v11 }
 0x505   :  { %v6192_v47 = vcombine.low %v6183_v55, %v6190_v36  ;;  %v7286_v0 = vcombine.low %v4323_v37, %v4327_v6  ;;  %v7287_v9 = vcombine.low %v4331_v52, %v4335_v1  ;;  %v7288_v4 = vcombine.low %v4339_v24, %v4343_v22  ;;  %v13190_v24 = vld [vmem:[#allocation72_spill] sm:$0xff] }
 0x506   :  { %7933 = vperm.xlu0 %8529, %v7236_v42   ;;  %v6199_v16 = vrot.slane %v6191_v35, %v10663_v21  ;;  %v7289_v59 = vcombine.low %v4347_v40, %v4351_v46  ;;  %v3651_v17 = vrot.slane %v13188_v56, %v10626_v57  ;;  %v3655_v10 = vrot.slane %v13188_v56, %v13175_v30 }
 0x507   :  { %v6206_v32 = vrot.slane %v6192_v47, %v10663_v21  ;;  %v7296_v26 = vrot.slane %v7286_v0, %v10663_v21  ;;  %v7303_v51 = vrot.slane %v7287_v9, %v10663_v21  ;;  %v7310_v31 = vrot.slane %v7288_v4, %v10663_v21 }
 0x508   :  { %v7317_v63 = vrot.slane %v7289_v59, %v10663_v21  ;;  %v3659_v8 = vrot.slane %v13188_v56, %v13176_v23  ;;  %v3663_v29 = vrot.slane %v13188_v56, %v13177_v5  ;;  %v3667_v2 = vrot.slane %v13188_v56, %v10643_v54 }
 0x509   :  { %v6207_v39 = vcombine.low %v6199_v16, %v6206_v32  ;;  %v7318_v58 = vcombine.low %v7296_v26, %v7303_v51  ;;  %v3671_v41 = vrot.slane %v13188_v56, %v13178_v13  ;;  %v3675_v34 = vrot.slane %v13188_v56, %v13179_v19 }
 0x50a   :  { %v7319_v12 = vcombine.low %v7310_v31, %v7317_v63  ;;  %v3679_v60 = vrot.slane %v13188_v56, %v10660_v11  ;;  %v6257_v25 = vcombine.low %v3651_v17, %v3655_v10  ;;  %v6258_v7 = vcombine.low %v3659_v8, %v3663_v29 }
 0x50b   :  { %7870 = vperm.xlu1 %8530, %v6207_v39   ;;  %v7326_v3 = vrot.slane %v7318_v58, %v10663_v21  ;;  %v6259_v18 = vcombine.low %v3667_v2, %v3671_v41  ;;  %v4387_v27 = vrot.slane %v13189_v48, %v10626_v57  ;;  %v4391_v44 = vrot.slane %v13189_v48, %v13175_v30  ;;  %v13191_v58 = vld [vmem:[#allocation92_spill] sm:$0xff] }
 0x50c   :  { %v7333_v45 = vrot.slane %v7319_v12, %v10663_v21  ;;  %v6260_v50 = vcombine.low %v3675_v34, %v3679_v60  ;;  %v6267_v49 = vrot.slane %v6257_v25, %v10663_v21  ;;  %v6274_v38 = vrot.slane %v6258_v7, %v10663_v21 }
 0x50d   :  { %v6281_v62 = vrot.slane %v6259_v18, %v10663_v21  ;;  %v4395_v61 = vrot.slane %v13189_v48, %v13176_v23  ;;  %v4399_v53 = vrot.slane %v13189_v48, %v13177_v5  ;;  %v4403_v28 = vrot.slane %v13189_v48, %v10643_v54 }
 0x50e   :  { %v7334_v43 = vcombine.low %v7326_v3, %v7333_v45  ;;  %v6288_v15 = vrot.slane %v6260_v50, %v10663_v21  ;;  %v6289_v33 = vcombine.low %v6267_v49, %v6274_v38  ;;  %v4407_v37 = vrot.slane %v13189_v48, %v13178_v13 }
 0x50f   :  { %v4411_v6 = vrot.slane %v13189_v48, %v13179_v19  ;;  %v4415_v14 = vrot.slane %v13189_v48, %v10660_v11  ;;  %v7384_v20 = vcombine.low %v4387_v27, %v4391_v44  ;;  %v7385_v55 = vcombine.low %v4395_v61, %v4399_v53 }
 0x510   :  { %7939 = vperm.xlu0 %8529, %v7334_v43   ;;  %v6290_v52 = vcombine.low %v6281_v62, %v6288_v15  ;;  %v6297_v36 = vrot.slane %v6289_v33, %v10663_v21  ;;  %v7386_v1 = vcombine.low %v4403_v28, %v4407_v37  ;;  %v3715_v22 = vrot.slane %v13190_v24, %v10626_v57  ;;  %v13192_v15 = vld [vmem:[#allocation89_spill] sm:$0xff] }
 0x511   :  { %v7387_v42 = vcombine.low %v4411_v6, %v4415_v14  ;;  %v7394_v35 = vrot.slane %v7384_v20, %v10663_v21  ;;  %v7401_v40 = vrot.slane %v7385_v55, %v10663_v21  ;;  %v3719_v46 = vrot.slane %v13190_v24, %v13175_v30 }
 0x512   :  { %v6304_v47 = vrot.slane %v6290_v52, %v10663_v21  ;;  %v7408_v0 = vrot.slane %v7386_v1, %v10663_v21  ;;  %v3723_v9 = vrot.slane %v13190_v24, %v13176_v23  ;;  %v3727_v4 = vrot.slane %v13190_v24, %v13177_v5 }
 0x513   :  { %v7415_v16 = vrot.slane %v7387_v42, %v10663_v21  ;;  %v7416_v59 = vcombine.low %v7394_v35, %v7401_v40  ;;  %v3731_v56 = vrot.slane %v13190_v24, %v10643_v54  ;;  %v3735_v17 = vrot.slane %v13190_v24, %v13178_v13 }
 0x514   :  { %v6305_v10 = vcombine.low %v6297_v36, %v6304_v47  ;;  %v3739_v32 = vrot.slane %v13190_v24, %v13179_v19  ;;  %v3743_v26 = vrot.slane %v13190_v24, %v10660_v11  ;;  %v6355_v51 = vcombine.low %v3715_v22, %v3719_v46 }
 0x515   :  { %v7417_v31 = vcombine.low %v7408_v0, %v7415_v16  ;;  %v7424_v63 = vrot.slane %v7416_v59, %v10663_v21  ;;  %v6356_v8 = vcombine.low %v3723_v9, %v3727_v4  ;;  %v6357_v29 = vcombine.low %v3731_v56, %v3735_v17  ;;  %v13193_v59 = vld [vmem:[#allocation94_spill] sm:$0xff] }
 0x516   :  { %7876 = vperm.xlu1 %8530, %v6305_v10   ;;  %v6358_v2 = vcombine.low %v3739_v32, %v3743_v26  ;;  %v6365_v39 = vrot.slane %v6355_v51, %v10663_v21  ;;  %v3939_v41 = vrot.slane %v13191_v58, %v10626_v57  ;;  %v3943_v34 = vrot.slane %v13191_v58, %v13175_v30 }
 0x517   :  { %v7431_v12 = vrot.slane %v7417_v31, %v10663_v21  ;;  %v6372_v60 = vrot.slane %v6356_v8, %v10663_v21  ;;  %v6379_v25 = vrot.slane %v6357_v29, %v10663_v21  ;;  %v3947_v7 = vrot.slane %v13191_v58, %v13176_v23  ;;  %v11914_v31 = vpop.xlane.xlu1 %2448 }
 0x518   :  { %v6386_v3 = vrot.slane %v6358_v2, %v10663_v21  ;;  %v3951_v18 = vrot.slane %v13191_v58, %v13177_v5  ;;  %v3955_v48 = vrot.slane %v13191_v58, %v10643_v54  ;;  %v3959_v27 = vrot.slane %v13191_v58, %v13178_v13 }
 0x519   :  { %v7432_v44 = vcombine.low %v7424_v63, %v7431_v12  ;;  %v6387_v45 = vcombine.low %v6365_v39, %v6372_v60  ;;  %v3963_v50 = vrot.slane %v13191_v58, %v13179_v19  ;;  %v3967_v49 = vrot.slane %v13191_v58, %v10660_v11 }
 0x51a   :  { %v6388_v38 = vcombine.low %v6379_v25, %v6386_v3  ;;  %v6698_v62 = vcombine.low %v3939_v41, %v3943_v34  ;;  %v6699_v61 = vcombine.low %v3947_v7, %v3951_v18  ;;  %v6700_v53 = vcombine.low %v3955_v48, %v3959_v27  ;;  %v13194_v27 = vld [vmem:[#allocation73_spill] sm:$0xff] }
 0x51b   :  { %7945 = vperm.xlu0 %8529, %v7432_v44   ;;  %v6395_v28 = vrot.slane %v6387_v45, %v10663_v21  ;;  %v6701_v43 = vcombine.low %v3963_v50, %v3967_v49  ;;  %v3779_v33 = vrot.slane %v13192_v15, %v10626_v57  ;;  %v3783_v37 = vrot.slane %v13192_v15, %v13175_v30 }
 0x51c   :  { %v6402_v6 = vrot.slane %v6388_v38, %v10663_v21  ;;  %v6708_v14 = vrot.slane %v6698_v62, %v10663_v21  ;;  %v6715_v20 = vrot.slane %v6699_v61, %v10663_v21  ;;  %v6722_v55 = vrot.slane %v6700_v53, %v10663_v21 }
 0x51d   :  { %v6729_v52 = vrot.slane %v6701_v43, %v10663_v21  ;;  %v3787_v36 = vrot.slane %v13192_v15, %v13176_v23  ;;  %v3791_v1 = vrot.slane %v13192_v15, %v13177_v5  ;;  %v3795_v24 = vrot.slane %v13192_v15, %v10643_v54  ;;  %v11943_v43 = vpop.xlane.xlu1 %2452 }
 0x51e   :  { %v6403_v22 = vcombine.low %v6395_v28, %v6402_v6  ;;  %v6730_v42 = vcombine.low %v6708_v14, %v6715_v20  ;;  %v3799_v35 = vrot.slane %v13192_v15, %v13178_v13  ;;  %v3803_v40 = vrot.slane %v13192_v15, %v13179_v19 }
 0x51f   :  { %v6731_v46 = vcombine.low %v6722_v55, %v6729_v52  ;;  %v3807_v47 = vrot.slane %v13192_v15, %v10660_v11  ;;  %v6453_v0 = vcombine.low %v3779_v33, %v3783_v37  ;;  %v6454_v9 = vcombine.low %v3787_v36, %v3791_v1 }
 0x520   :  { %7882 = vperm.xlu1 %8530, %v6403_v22   ;;  %v6738_v4 = vrot.slane %v6730_v42, %v10663_v21  ;;  %v6455_v16 = vcombine.low %v3795_v24, %v3799_v35  ;;  %v3971_v56 = vrot.slane %v13193_v59, %v10626_v57  ;;  %v3975_v17 = vrot.slane %v13193_v59, %v13175_v30 }
 0x521   :  { %v6745_v10 = vrot.slane %v6731_v46, %v10663_v21  ;;  %v6456_v32 = vcombine.low %v3803_v40, %v3807_v47  ;;  %v6463_v26 = vrot.slane %v6453_v0, %v10663_v21  ;;  %v6470_v51 = vrot.slane %v6454_v9, %v10663_v21  ;;  %v13195_v40 = vld [vmem:[#allocation93_spill] sm:$0xff] }
 0x522   :  { %v6477_v63 = vrot.slane %v6455_v16, %v10663_v21  ;;  %v3979_v8 = vrot.slane %v13193_v59, %v13176_v23  ;;  %v3983_v29 = vrot.slane %v13193_v59, %v13177_v5  ;;  %v3987_v2 = vrot.slane %v13193_v59, %v10643_v54 }
 0x523   :  { %v6746_v39 = vcombine.low %v6738_v4, %v6745_v10  ;;  %v6484_v58 = vrot.slane %v6456_v32, %v10663_v21  ;;  %v6485_v41 = vcombine.low %v6463_v26, %v6470_v51  ;;  %v3991_v34 = vrot.slane %v13193_v59, %v13178_v13 }
 0x524   :  { %v3995_v12 = vrot.slane %v13193_v59, %v13179_v19  ;;  %v3999_v60 = vrot.slane %v13193_v59, %v10660_v11  ;;  %v6747_v25 = vcombine.low %v3971_v56, %v3975_v17  ;;  %v6748_v7 = vcombine.low %v3979_v8, %v3983_v29  ;;  %v11965_v59 = vpop.permute.xlu1 %7777 }
 0x525   :  { %7903 = vperm.xlu0 %8529, %v6746_v39   ;;  %v6486_v3 = vcombine.low %v6477_v63, %v6484_v58  ;;  %v6493_v18 = vrot.slane %v6485_v41, %v10663_v21  ;;  %v6749_v48 = vcombine.low %v3987_v2, %v3991_v34  ;;  %v3843_v44 = vrot.slane %v13194_v27, %v10626_v57 }
 0x526   :  { %v6750_v45 = vcombine.low %v3995_v12, %v3999_v60  ;;  %v6757_v50 = vrot.slane %v6747_v25, %v10663_v21  ;;  %v6764_v49 = vrot.slane %v6748_v7, %v10663_v21  ;;  %v3847_v38 = vrot.slane %v13194_v27, %v13175_v30  ;;  %v13196_v12 = vld [vmem:[#allocation91_spill] sm:$0xff] }
 0x527   :  { %v6500_v62 = vrot.slane %v6486_v3, %v10663_v21  ;;  %v6771_v61 = vrot.slane %v6749_v48, %v10663_v21  ;;  %v3851_v53 = vrot.slane %v13194_v27, %v13176_v23  ;;  %v3855_v28 = vrot.slane %v13194_v27, %v13177_v5 }
 0x528   :  { %v6778_v15 = vrot.slane %v6750_v45, %v10663_v21  ;;  %v6779_v33 = vcombine.low %v6757_v50, %v6764_v49  ;;  %v3859_v37 = vrot.slane %v13194_v27, %v10643_v54  ;;  %v3863_v6 = vrot.slane %v13194_v27, %v13178_v13  ;;  %v11994_v49 = vpop.permute.xlu1 %7780 }
 0x529   :  { %v6501_v14 = vcombine.low %v6493_v18, %v6500_v62  ;;  %v3867_v20 = vrot.slane %v13194_v27, %v13179_v19  ;;  %v3871_v55 = vrot.slane %v13194_v27, %v10660_v11  ;;  %v6551_v52 = vcombine.low %v3843_v44, %v3847_v38 }
 0x52a   :  { %v6780_v36 = vcombine.low %v6771_v61, %v6778_v15  ;;  %v6787_v1 = vrot.slane %v6779_v33, %v10663_v21  ;;  %v6552_v24 = vcombine.low %v3851_v53, %v3855_v28  ;;  %v6553_v22 = vcombine.low %v3859_v37, %v3863_v6 }
 0x52b   :  { %7888 = vperm.xlu1 %8530, %v6501_v14   ;;  %v6554_v42 = vcombine.low %v3867_v20, %v3871_v55  ;;  %v6561_v35 = vrot.slane %v6551_v52, %v10663_v21  ;;  %v4003_v46 = vrot.slane %v13195_v40, %v10626_v57  ;;  %v4007_v47 = vrot.slane %v13195_v40, %v13175_v30  ;;  %v13197_v20 = vld [vmem:[#allocation74_spill] sm:$0xff] }
 0x52c   :  { %v6794_v0 = vrot.slane %v6780_v36, %v10663_v21  ;;  %v6568_v9 = vrot.slane %v6552_v24, %v10663_v21  ;;  %v6575_v4 = vrot.slane %v6553_v22, %v10663_v21  ;;  %v4011_v16 = vrot.slane %v13195_v40, %v13176_v23 }
 0x52d   :  { %v6582_v56 = vrot.slane %v6554_v42, %v10663_v21  ;;  %v4015_v17 = vrot.slane %v13195_v40, %v13177_v5  ;;  %v4019_v10 = vrot.slane %v13195_v40, %v10643_v54  ;;  %v4023_v32 = vrot.slane %v13195_v40, %v13178_v13 }
 0x52e   :  { %v6795_v26 = vcombine.low %v6787_v1, %v6794_v0  ;;  %v6583_v51 = vcombine.low %v6561_v35, %v6568_v9  ;;  %v4027_v63 = vrot.slane %v13195_v40, %v13179_v19  ;;  %v4031_v8 = vrot.slane %v13195_v40, %v10660_v11 }
 0x52f   :  { %v6584_v29 = vcombine.low %v6575_v4, %v6582_v56  ;;  %v6796_v2 = vcombine.low %v4003_v46, %v4007_v47  ;;  %v6797_v39 = vcombine.low %v4011_v16, %v4015_v17  ;;  %v6798_v58 = vcombine.low %v4019_v10, %v4023_v32  ;;  %v12020_v16 = vpop.permute.xlu1 %7783 }
 0x530   :  { %7906 = vperm.xlu0 %8529, %v6795_v26   ;;  %v6591_v41 = vrot.slane %v6583_v51, %v10663_v21  ;;  %v6799_v34 = vcombine.low %v4027_v63, %v4031_v8  ;;  %v3907_v60 = vrot.slane %v13196_v12, %v10626_v57  ;;  %v3911_v25 = vrot.slane %v13196_v12, %v13175_v30  ;;  %v13198_v8 = vld [vmem:[#allocation97_spill] sm:$0xff] }
 0x531   :  { %v6598_v7 = vrot.slane %v6584_v29, %v10663_v21  ;;  %v6806_v3 = vrot.slane %v6796_v2, %v10663_v21  ;;  %v6813_v18 = vrot.slane %v6797_v39, %v10663_v21  ;;  %v6820_v48 = vrot.slane %v6798_v58, %v10663_v21 }
 0x532   :  { %v6827_v27 = vrot.slane %v6799_v34, %v10663_v21  ;;  %v3915_v44 = vrot.slane %v13196_v12, %v13176_v23  ;;  %v3919_v45 = vrot.slane %v13196_v12, %v13177_v5  ;;  %v3923_v50 = vrot.slane %v13196_v12, %v10643_v54 }
 0x533   :  { %v6599_v38 = vcombine.low %v6591_v41, %v6598_v7  ;;  %v6828_v62 = vcombine.low %v6806_v3, %v6813_v18  ;;  %v3927_v61 = vrot.slane %v13196_v12, %v13178_v13  ;;  %v3931_v53 = vrot.slane %v13196_v12, %v13179_v19 }
 0x534   :  { %v6829_v28 = vcombine.low %v6820_v48, %v6827_v27  ;;  %v3935_v15 = vrot.slane %v13196_v12, %v10660_v11  ;;  %v6649_v33 = vcombine.low %v3907_v60, %v3911_v25  ;;  %v6650_v37 = vcombine.low %v3915_v44, %v3919_v45 }
 0x535   :  { %7894 = vperm.xlu1 %8530, %v6599_v38   ;;  %v6836_v6 = vrot.slane %v6828_v62, %v10663_v21  ;;  %v6651_v14 = vcombine.low %v3923_v50, %v3927_v61  ;;  %v4035_v55 = vrot.slane %v13197_v20, %v10626_v57  ;;  %v4039_v52 = vrot.slane %v13197_v20, %v13175_v30  ;;  %v12048_v38 = vpop.permute.xlu1 %7786 }
 0x536   :  { %v6843_v36 = vrot.slane %v6829_v28, %v10663_v21  ;;  %v6652_v1 = vcombine.low %v3931_v53, %v3935_v15  ;;  %v6659_v24 = vrot.slane %v6649_v33, %v10663_v21  ;;  %v6666_v22 = vrot.slane %v6650_v37, %v10663_v21  ;;  %v13199_v37 = vld [vmem:[#allocation96_spill] sm:$0xff] }
 0x537   :  { %v6673_v42 = vrot.slane %v6651_v14, %v10663_v21  ;;  %v4043_v35 = vrot.slane %v13197_v20, %v13176_v23  ;;  %v4047_v40 = vrot.slane %v13197_v20, %v13177_v5  ;;  %v4051_v46 = vrot.slane %v13197_v20, %v10643_v54 }
 0x538   :  { %v6844_v47 = vcombine.low %v6836_v6, %v6843_v36  ;;  %v6680_v0 = vrot.slane %v6652_v1, %v10663_v21  ;;  %v6681_v9 = vcombine.low %v6659_v24, %v6666_v22  ;;  %v4055_v4 = vrot.slane %v13197_v20, %v13178_v13 }
 0x539   :  { %v4059_v56 = vrot.slane %v13197_v20, %v13179_v19  ;;  %v4063_v17 = vrot.slane %v13197_v20, %v10660_v11  ;;  %v6845_v10 = vcombine.low %v4035_v55, %v4039_v52  ;;  %v6846_v32 = vcombine.low %v4043_v35, %v4047_v40 }
 0x53a   :  { %7909 = vperm.xlu0 %8529, %v6844_v47   ;;  %v6682_v26 = vcombine.low %v6673_v42, %v6680_v0  ;;  %v6689_v51 = vrot.slane %v6681_v9, %v10663_v21  ;;  %v6847_v63 = vcombine.low %v4051_v46, %v4055_v4  ;;  %v4163_v29 = vrot.slane %v13198_v8, %v10626_v57 }
 0x53b   :  { %v6848_v2 = vcombine.low %v4059_v56, %v4063_v17  ;;  %v6855_v39 = vrot.slane %v6845_v10, %v10663_v21  ;;  %v6862_v58 = vrot.slane %v6846_v32, %v10663_v21  ;;  %v4167_v41 = vrot.slane %v13198_v8, %v13175_v30  ;;  %v12072_v17 = vpop.permute.xlu1 %7789 }
 0x53c   :  { %v6696_v34 = vrot.slane %v6682_v26, %v10663_v21  ;;  %v6869_v12 = vrot.slane %v6847_v63, %v10663_v21  ;;  %v4171_v60 = vrot.slane %v13198_v8, %v13176_v23  ;;  %v4175_v25 = vrot.slane %v13198_v8, %v13177_v5  ;;  %v13200_v26 = vld [vmem:[#allocation100_spill] sm:$0xff] }
 0x53d   :  { %v6876_v7 = vrot.slane %v6848_v2, %v10663_v21  ;;  %v6877_v3 = vcombine.low %v6855_v39, %v6862_v58  ;;  %v4179_v18 = vrot.slane %v13198_v8, %v10643_v54  ;;  %v4183_v48 = vrot.slane %v13198_v8, %v13178_v13 }
 0x53e   :  { %v6697_v27 = vcombine.low %v6689_v51, %v6696_v34  ;;  %v4187_v44 = vrot.slane %v13198_v8, %v13179_v19  ;;  %v4191_v45 = vrot.slane %v13198_v8, %v10660_v11  ;;  %v7041_v50 = vcombine.low %v4163_v29, %v4167_v41 }
 0x53f   :  { %v6878_v62 = vcombine.low %v6869_v12, %v6876_v7  ;;  %v6885_v61 = vrot.slane %v6877_v3, %v10663_v21  ;;  %v7042_v53 = vcombine.low %v4171_v60, %v4175_v25  ;;  %v7043_v28 = vcombine.low %v4179_v18, %v4183_v48 }
 0x540   :  { %7900 = vperm.xlu1 %8530, %v6697_v27   ;;  %v7044_v15 = vcombine.low %v4187_v44, %v4191_v45  ;;  %v7051_v33 = vrot.slane %v7041_v50, %v10663_v21  ;;  %v4067_v6 = vrot.slane %v13199_v37, %v10626_v57  ;;  %v4071_v14 = vrot.slane %v13199_v37, %v13175_v30 }
 0x541   :  { %v6892_v20 = vrot.slane %v6878_v62, %v10663_v21  ;;  %v7058_v55 = vrot.slane %v7042_v53, %v10663_v21  ;;  %v7065_v52 = vrot.slane %v7043_v28, %v10663_v21  ;;  %v4075_v36 = vrot.slane %v13199_v37, %v13176_v23  ;;  %v13201_v62 = vld [vmem:[#allocation95_spill] sm:$0xff]  ;;  %v12101_v28 = vpop.permute.xlu1 %7792 }
 0x542   :  { %v7072_v1 = vrot.slane %v7044_v15, %v10663_v21  ;;  %v4079_v24 = vrot.slane %v13199_v37, %v13177_v5  ;;  %v4083_v22 = vrot.slane %v13199_v37, %v10643_v54  ;;  %v4087_v42 = vrot.slane %v13199_v37, %v13178_v13 }
 0x543   :  { %v6893_v35 = vcombine.low %v6885_v61, %v6892_v20  ;;  %v7073_v40 = vcombine.low %v7051_v33, %v7058_v55  ;;  %v4091_v46 = vrot.slane %v13199_v37, %v13179_v19  ;;  %v4095_v47 = vrot.slane %v13199_v37, %v10660_v11 }
 0x544   :  { %v7074_v0 = vcombine.low %v7065_v52, %v7072_v1  ;;  %v6894_v9 = vcombine.low %v4067_v6, %v4071_v14  ;;  %v6895_v4 = vcombine.low %v4075_v36, %v4079_v24  ;;  %v6896_v56 = vcombine.low %v4083_v22, %v4087_v42 }
 0x545   :  { %7912 = vperm.xlu0 %8529, %v6893_v35   ;;  %v7081_v10 = vrot.slane %v7073_v40, %v10663_v21  ;;  %v6897_v32 = vcombine.low %v4091_v46, %v4095_v47  ;;  %v4227_v51 = vrot.slane %v13200_v26, %v10626_v57  ;;  %v4231_v63 = vrot.slane %v13200_v26, %v13175_v30 }
 0x546   :  { %v7088_v8 = vrot.slane %v7074_v0, %v10663_v21  ;;  %v6904_v29 = vrot.slane %v6894_v9, %v10663_v21  ;;  %v6911_v2 = vrot.slane %v6895_v4, %v10663_v21  ;;  %v6918_v39 = vrot.slane %v6896_v56, %v10663_v21  ;;  %v13202_v4 = vld [vmem:[#allocation101_spill] sm:$0xff] }
 0x547   :  { %v6925_v58 = vrot.slane %v6897_v32, %v10663_v21  ;;  %v4235_v41 = vrot.slane %v13200_v26, %v13176_v23  ;;  %v4239_v34 = vrot.slane %v13200_v26, %v13177_v5  ;;  %v4243_v12 = vrot.slane %v13200_v26, %v10643_v54 }
 0x548   :  { %v7089_v60 = vcombine.low %v7081_v10, %v7088_v8  ;;  %v6926_v25 = vcombine.low %v6904_v29, %v6911_v2  ;;  %v4247_v7 = vrot.slane %v13200_v26, %v13178_v13  ;;  %v4251_v3 = vrot.slane %v13200_v26, %v13179_v19 }
 0x549   :  { %v6927_v18 = vcombine.low %v6918_v39, %v6925_v58  ;;  %v4255_v48 = vrot.slane %v13200_v26, %v10660_v11  ;;  %v7139_v27 = vcombine.low %v4227_v51, %v4231_v63  ;;  %v7140_v44 = vcombine.low %v4235_v41, %v4239_v34  ;;  %v12127_v63 = vpop.permute.xlu1 %7795 }
 0x54a   :  { %7924 = vperm.xlu1 %8530, %v7089_v60   ;;  %v6934_v45 = vrot.slane %v6926_v25, %v10663_v21  ;;  %v7141_v50 = vcombine.low %v4243_v12, %v4247_v7  ;;  %v4099_v61 = vrot.slane %v13201_v62, %v10626_v57  ;;  %v4103_v53 = vrot.slane %v13201_v62, %v13175_v30 }
 0x54b   :  { %v6941_v15 = vrot.slane %v6927_v18, %v10663_v21  ;;  %v7142_v33 = vcombine.low %v4251_v3, %v4255_v48  ;;  %v7149_v37 = vrot.slane %v7139_v27, %v10663_v21  ;;  %v7156_v6 = vrot.slane %v7140_v44, %v10663_v21 }
 0x54c   :  { %v7163_v14 = vrot.slane %v7141_v50, %v10663_v21  ;;  %v4107_v20 = vrot.slane %v13201_v62, %v13176_v23  ;;  %v4111_v55 = vrot.slane %v13201_v62, %v13177_v5  ;;  %v4115_v52 = vrot.slane %v13201_v62, %v10643_v54 }
 0x54d   :  { %v6942_v36 = vcombine.low %v6934_v45, %v6941_v15  ;;  %v7170_v1 = vrot.slane %v7142_v33, %v10663_v21  ;;  %v7171_v24 = vcombine.low %v7149_v37, %v7156_v6  ;;  %v4119_v22 = vrot.slane %v13201_v62, %v13178_v13 }
 0x54e   :  { %v4123_v42 = vrot.slane %v13201_v62, %v13179_v19  ;;  %v4127_v35 = vrot.slane %v13201_v62, %v10660_v11  ;;  %v6943_v40 = vcombine.low %v4099_v61, %v4103_v53  ;;  %v6944_v46 = vcombine.low %v4107_v20, %v4111_v55  ;;  %v13203_v62 = vld [vmem:[#allocation104_spill] sm:$0xff] }
 0x54f   :  { %7915 = vperm.xlu0 %8529, %v6942_v36   ;;  %v7172_v47 = vcombine.low %v7163_v14, %v7170_v1  ;;  %v7179_v0 = vrot.slane %v7171_v24, %v10663_v21  ;;  %v6945_v9 = vcombine.low %v4115_v52, %v4119_v22  ;;  %v4291_v56 = vrot.slane %v13202_v4, %v10626_v57  ;;  %v12155_v14 = vpop.permute.xlu1 %7798 }
 0x550   :  { %v6946_v10 = vcombine.low %v4123_v42, %v4127_v35  ;;  %v6953_v32 = vrot.slane %v6943_v40, %v10663_v21  ;;  %v6960_v26 = vrot.slane %v6944_v46, %v10663_v21  ;;  %v4295_v51 = vrot.slane %v13202_v4, %v13175_v30 }
 0x551   :  { %v7186_v8 = vrot.slane %v7172_v47, %v10663_v21  ;;  %v6967_v29 = vrot.slane %v6945_v9, %v10663_v21  ;;  %v4299_v2 = vrot.slane %v13202_v4, %v13176_v23  ;;  %v4303_v39 = vrot.slane %v13202_v4, %v13177_v5 }
 0x552   :  { %v6974_v58 = vrot.slane %v6946_v10, %v10663_v21  ;;  %v6975_v41 = vcombine.low %v6953_v32, %v6960_v26  ;;  %v4307_v34 = vrot.slane %v13202_v4, %v10643_v54  ;;  %v4311_v12 = vrot.slane %v13202_v4, %v13178_v13 }
 0x553   :  { %v7187_v60 = vcombine.low %v7179_v0, %v7186_v8  ;;  %v4315_v25 = vrot.slane %v13202_v4, %v13179_v19  ;;  %v4319_v7 = vrot.slane %v13202_v4, %v10660_v11  ;;  %v7237_v3 = vcombine.low %v4291_v56, %v4295_v51  ;;  %v13204_v4 = vld [vmem:[#allocation76_spill] sm:$0xff] }
 0x554   :  { %v6976_v18 = vcombine.low %v6967_v29, %v6974_v58  ;;  %v6983_v48 = vrot.slane %v6975_v41, %v10663_v21  ;;  %v7238_v27 = vcombine.low %v4299_v2, %v4303_v39  ;;  %v7239_v44 = vcombine.low %v4307_v34, %v4311_v12  ;;  %v12184_v41 = vpop.permute.xlu1 %7804 }
 0x555   :  { %7930 = vperm.xlu1 %8530, %v7187_v60   ;;  %v7240_v45 = vcombine.low %v4315_v25, %v4319_v7  ;;  %v7247_v50 = vrot.slane %v7237_v3, %v10663_v21  ;;  %v4355_v61 = vrot.slane %v13203_v62, %v10626_v57  ;;  %v4359_v53 = vrot.slane %v13203_v62, %v13175_v30  ;;  %v12190_v7 = vpop.permute.xlu0 %7801 }
 0x556   :  { %v6990_v15 = vrot.slane %v6976_v18, %v10663_v21  ;;  %v7254_v33 = vrot.slane %v7238_v27, %v10663_v21  ;;  %v7261_v37 = vrot.slane %v7239_v44, %v10663_v21  ;;  %v4363_v6 = vrot.slane %v13203_v62, %v13176_v23 }
 0x557   :  { %v7268_v20 = vrot.slane %v7240_v45, %v10663_v21  ;;  %v4367_v55 = vrot.slane %v13203_v62, %v13177_v5  ;;  %v4371_v52 = vrot.slane %v13203_v62, %v10643_v54  ;;  %v4375_v36 = vrot.slane %v13203_v62, %v13178_v13 }
 0x558   :  { %v6991_v1 = vcombine.low %v6983_v48, %v6990_v15  ;;  %v7269_v24 = vcombine.low %v7247_v50, %v7254_v33  ;;  %v4379_v22 = vrot.slane %v13203_v62, %v13179_v19  ;;  %v4383_v42 = vrot.slane %v13203_v62, %v10660_v11  ;;  %v13205_v50 = vld [vmem:[#allocation106_spill] sm:$0xff] }
 0x559   :  { %v7270_v35 = vcombine.low %v7261_v37, %v7268_v20  ;;  %v7335_v40 = vcombine.low %v4355_v61, %v4359_v53  ;;  %v7336_v46 = vcombine.low %v4363_v6, %v4367_v55  ;;  %v7337_v47 = vcombine.low %v4371_v52, %v4375_v36 }
 0x55a   :  { %7918 = vperm.xlu0 %8529, %v6991_v1   ;;  %v7277_v0 = vrot.slane %v7269_v24, %v10663_v21  ;;  %v7338_v9 = vcombine.low %v4379_v22, %v4383_v42  ;;  %v4419_v56 = vrot.slane %v13204_v4, %v10626_v57  ;;  %v4423_v10 = vrot.slane %v13204_v4, %v13175_v30  ;;  %v12212_v42 = vpop.permute.xlu1 %7810 }
 0x55b   :  { %v7284_v32 = vrot.slane %v7270_v35, %v10663_v21  ;;  %v7345_v26 = vrot.slane %v7335_v40, %v10663_v21  ;;  %v7352_v51 = vrot.slane %v7336_v46, %v10663_v21  ;;  %v7359_v8 = vrot.slane %v7337_v47, %v10663_v21 }
 0x55c   :  { %v7366_v29 = vrot.slane %v7338_v9, %v10663_v21  ;;  %v4427_v2 = vrot.slane %v13204_v4, %v13176_v23  ;;  %v4431_v39 = vrot.slane %v13204_v4, %v13177_v5  ;;  %v4435_v58 = vrot.slane %v13204_v4, %v10643_v54 }
 0x55d   :  { %v7285_v34 = vcombine.low %v7277_v0, %v7284_v32  ;;  %v7367_v12 = vcombine.low %v7345_v26, %v7352_v51  ;;  %v4439_v60 = vrot.slane %v13204_v4, %v13178_v13  ;;  %v4443_v25 = vrot.slane %v13204_v4, %v13179_v19  ;;  %v12218_v0 = vpop.permute.xlu0 %7807 }
 0x55e   :  { %v7368_v3 = vcombine.low %v7359_v8, %v7366_v29  ;;  %v4447_v18 = vrot.slane %v13204_v4, %v10660_v11  ;;  %v7433_v48 = vcombine.low %v4419_v56, %v4423_v10  ;;  %v7434_v27 = vcombine.low %v4427_v2, %v4431_v39  ;;  %v13206_v10 = vld [vmem:[#allocation77_spill] sm:$0xff] }
 0x55f   :  { %7936 = vperm.xlu1 %8530, %v7285_v34   ;;  %v7375_v44 = vrot.slane %v7367_v12, %v10663_v21  ;;  %v7435_v45 = vcombine.low %v4435_v58, %v4439_v60  ;;  %v4451_v62 = vrot.slane %v13205_v50, %v10626_v57  ;;  %v4455_v61 = vrot.slane %v13205_v50, %v13175_v30 }
 0x560   :  { %v7382_v53 = vrot.slane %v7368_v3, %v10663_v21  ;;  %v7436_v15 = vcombine.low %v4443_v25, %v4447_v18  ;;  %v7443_v33 = vrot.slane %v7433_v48, %v10663_v21  ;;  %v7450_v37 = vrot.slane %v7434_v27, %v10663_v21 }
 0x561   :  { %v7457_v6 = vrot.slane %v7435_v45, %v10663_v21  ;;  %v4459_v20 = vrot.slane %v13205_v50, %v13176_v23  ;;  %v4463_v55 = vrot.slane %v13205_v50, %v13177_v5  ;;  %v4467_v52 = vrot.slane %v13205_v50, %v10643_v54  ;;  %v12242_v45 = vpop.permute.xlu1 %7816 }
 0x562   :  { %v7383_v36 = vcombine.low %v7375_v44, %v7382_v53  ;;  %v7464_v1 = vrot.slane %v7436_v15, %v10663_v21  ;;  %v7465_v24 = vcombine.low %v7443_v33, %v7450_v37  ;;  %v4471_v22 = vrot.slane %v13205_v50, %v13178_v13  ;;  %v12245_v15 = vpop.permute.xlu0 %7813 }
 0x563   :  { %v4475_v35 = vrot.slane %v13205_v50, %v13179_v19  ;;  %v4479_v40 = vrot.slane %v13205_v50, %v10660_v11  ;;  %v7482_v46 = vcombine.low %v4451_v62, %v4455_v61  ;;  %v7483_v47 = vcombine.low %v4459_v20, %v4463_v55 }
 0x564   :  { %7942 = vperm.xlu1 %8530, %v7383_v36   ;;  %v7466_v9 = vcombine.low %v7457_v6, %v7464_v1  ;;  %v7473_v4 = vrot.slane %v7465_v24, %v10663_v21  ;;  %v7484_v56 = vcombine.low %v4467_v52, %v4471_v22  ;;  %v4483_v32 = vrot.slane %v13206_v10, %v10626_v57  ;;  %v13207_v6 = vld [vmem:[#allocation31_spill] sm:$0xff] }
 0x565   :  { %v7485_v26 = vcombine.low %v4475_v35, %v4479_v40  ;;  %v7492_v51 = vrot.slane %v7482_v46, %v10663_v21  ;;  %v7499_v8 = vrot.slane %v7483_v47, %v10663_v21  ;;  %v4487_v29 = vrot.slane %v13206_v10, %v13175_v30 }
 0x566   :  { %v7480_v2 = vrot.slane %v7466_v9, %v10663_v21  ;;  %v7506_v39 = vrot.slane %v7484_v56, %v10663_v21  ;;  %v4491_v58 = vrot.slane %v13206_v10, %v13176_v23  ;;  %v4495_v34 = vrot.slane %v13206_v10, %v13177_v5  ;;  %v13208_v9 = vld [vmem:[#allocation65_spill] sm:$0xff] }
 0x567   :  { %v7513_v12 = vrot.slane %v7485_v26, %v10663_v21  ;;  %v7514_v60 = vcombine.low %v7492_v51, %v7499_v8  ;;  %v4499_v25 = vrot.slane %v13206_v10, %v10643_v54  ;;  %v4503_v3 = vrot.slane %v13206_v10, %v13178_v13 }
 0x568   :  { %v7481_v18 = vcombine.low %v7473_v4, %v7480_v2  ;;  %v4507_v48 = vrot.slane %v13206_v10, %v13179_v19  ;;  %v4511_v27 = vrot.slane %v13206_v10, %v10660_v11  ;;  %v7531_v44 = vcombine.low %v4483_v32, %v4487_v29  ;;  %v12266_v32 = vpop.permute.xlu1 %7822  ;;  %v12273_v2 = vpop.permute.xlu0 %7819 }
 0x569   :  { %v7515_v50 = vcombine.low %v7506_v39, %v7513_v12  ;;  %v7522_v62 = vrot.slane %v7514_v60, %v10663_v21  ;;  %v7532_v61 = vcombine.low %v4491_v58, %v4495_v34  ;;  %v7533_v53 = vcombine.low %v4499_v25, %v4503_v3 }
 0x56a   :  { %7948 = vperm.xlu1 %8530, %v7481_v18   ;;  %v7534_v33 = vcombine.low %v4507_v48, %v4511_v27  ;;  %v7541_v37 = vrot.slane %v7531_v44, %v10663_v21  ;;  %v4515_v20 = vrot.slane %v13207_v6, %v10626_v57  ;;  %v4519_v1 = vrot.slane %v13207_v6, %v13175_v30 }
 0x56b   :  { %v7529_v55 = vrot.slane %v7515_v50, %v10663_v21  ;;  %v7548_v52 = vrot.slane %v7532_v61, %v10663_v21  ;;  %v7555_v36 = vrot.slane %v7533_v53, %v10663_v21  ;;  %v4523_v22 = vrot.slane %v13207_v6, %v13176_v23 }
 0x56c   :  { %v7562_v24 = vrot.slane %v7534_v33, %v10663_v21  ;;  %v4527_v46 = vrot.slane %v13207_v6, %v13177_v5  ;;  %v4531_v47 = vrot.slane %v13207_v6, %v10643_v54  ;;  %v2525_v4 = vadd.f32 %v13208_v9, %v11914_v31  ;;  %v12284_v61 = vpop.permute.xlu1 %7828 }
 0x56d   :  { %v7530_v35 = vcombine.low %v7522_v62, %v7529_v55  ;;  %v7563_v40 = vcombine.low %v7541_v37, %v7548_v52  ;;  %v4535_v10 = vrot.slane %v13207_v6, %v13178_v13  ;;  %v4539_v51 = vrot.slane %v13207_v6, %v13179_v19  ;;  %v12287_v37 = vpop.permute.xlu0 %7825 }
 0x56e   :  { %v7564_v56 = vcombine.low %v7555_v36, %v7562_v24  ;;  %v4543_v8 = vrot.slane %v13207_v6, %v10660_v11  ;;  %v7580_v29 = vcombine.low %v4515_v20, %v4519_v1  ;;  %v7581_v39 = vcombine.low %v4523_v22, %v4527_v46 }
 0x56f   :  { %7951 = vperm.xlu1 %8530, %v7530_v35   ;;  %v7571_v26 = vrot.slane %v7563_v40, %v10663_v21  ;;  %v7582_v58 = vcombine.low %v4531_v47, %v4535_v10  ;;  %v4547_v48 = vrot.slane %v2525_v4, %v10626_v57  ;;  %v4551_v44 = vrot.slane %v2525_v4, %v13175_v30 }
 0x570   :  { %v7578_v31 = vrot.slane %v7564_v56, %v10663_v21  ;;  %v7583_v34 = vcombine.low %v4539_v51, %v4543_v8  ;;  %v7590_v12 = vrot.slane %v7580_v29, %v10663_v21  ;;  %v7597_v25 = vrot.slane %v7581_v39, %v10663_v21 }
 0x571   :  { %v7604_v3 = vrot.slane %v7582_v58, %v10663_v21  ;;  %v4555_v50 = vrot.slane %v2525_v4, %v13176_v23  ;;  %v4559_v62 = vrot.slane %v2525_v4, %v13177_v5  ;;  %v4563_v33 = vrot.slane %v2525_v4, %v10643_v54  ;;  %v12306_v39 = vpop.permute.xlu0 %7831 }
 0x572   :  { %v7579_v60 = vcombine.low %v7571_v26, %v7578_v31  ;;  %v7611_v18 = vrot.slane %v7583_v34, %v10663_v21  ;;  %v7612_v27 = vcombine.low %v7590_v12, %v7597_v25  ;;  %v4567_v20 = vrot.slane %v2525_v4, %v13178_v13  ;;  %v12298_v26 = vpop.permute.xlu1 %7834 }
 0x573   :  { %v4571_v55 = vrot.slane %v2525_v4, %v13179_v19  ;;  %v4575_v52 = vrot.slane %v2525_v4, %v10660_v11  ;;  %v7629_v1 = vcombine.low %v4547_v48, %v4551_v44  ;;  %v7630_v24 = vcombine.low %v4555_v50, %v4559_v62  ;;  %v13209_v4 = vld [vmem:[#allocation105_spill] sm:$0xff] }
 0x574   :  { %7954 = vperm.xlu1 %8530, %v7579_v60   ;;  %v7613_v53 = vcombine.low %v7604_v3, %v7611_v18  ;;  %v7620_v6 = vrot.slane %v7612_v27, %v10663_v21  ;;  %v7631_v22 = vcombine.low %v4563_v33, %v4567_v20  ;;  %v4579_v8 = vrot.slane %v13209_v4, %v10626_v57 }
 0x575   :  { %v7632_v35 = vcombine.low %v4571_v55, %v4575_v52  ;;  %v7639_v46 = vrot.slane %v7629_v1, %v10663_v21  ;;  %v7646_v47 = vrot.slane %v7630_v24, %v10663_v21  ;;  %v4583_v29 = vrot.slane %v13209_v4, %v13175_v30 }
 0x576   :  { %v7627_v36 = vrot.slane %v7613_v53, %v10663_v21  ;;  %v7653_v56 = vrot.slane %v7631_v22, %v10663_v21  ;;  %v4587_v31 = vrot.slane %v13209_v4, %v13176_v23  ;;  %v4591_v34 = vrot.slane %v13209_v4, %v13177_v5  ;;  %v12323_v20 = vpop.permute.xlu1 %7840 }
 0x577   :  { %v7660_v10 = vrot.slane %v7632_v35, %v10663_v21  ;;  %v7661_v51 = vcombine.low %v7639_v46, %v7646_v47  ;;  %v4595_v60 = vrot.slane %v13209_v4, %v10643_v54  ;;  %v4599_v25 = vrot.slane %v13209_v4, %v13178_v13 }
 0x578   :  { %v7628_v40 = vcombine.low %v7620_v6, %v7627_v36  ;;  %v4603_v3 = vrot.slane %v13209_v4, %v13179_v19  ;;  %v2527_v18 = vadd.f32 %v13208_v9, %v11943_v43  ;;  %v4607_v27 = vrot.slane %v13209_v4, %v10660_v11  ;;  %v12327_v36 = vpop.permute.xlu0 %7837 }
 0x579   :  { %v7662_v58 = vcombine.low %v7653_v56, %v7660_v10  ;;  %v7669_v12 = vrot.slane %v7661_v51, %v10663_v21  ;;  %v7678_v44 = vcombine.low %v4579_v8, %v4583_v29  ;;  %v7679_v50 = vcombine.low %v4587_v31, %v4591_v34 }
 0x57a   :  { %7957 = vperm.xlu1 %8530, %v7628_v40   ;;  %v7680_v62 = vcombine.low %v4595_v60, %v4599_v25  ;;  %v7681_v33 = vcombine.low %v4603_v3, %v4607_v27  ;;  %v4611_v9 = vrot.slane %v2527_v18, %v10626_v57  ;;  %v4615_v1 = vrot.slane %v2527_v18, %v13175_v30 }
 0x57b   :  { %v7676_v48 = vrot.slane %v7662_v58, %v10663_v21  ;;  %v7688_v6 = vrot.slane %v7678_v44, %v10663_v21  ;;  %v7695_v55 = vrot.slane %v7679_v50, %v10663_v21  ;;  %v4619_v24 = vrot.slane %v2527_v18, %v13176_v23  ;;  %v12340_v23 = vpop.permute.xlu1 %7846 }
 0x57c   :  { %v7702_v52 = vrot.slane %v7680_v62, %v10663_v21  ;;  %v7709_v43 = vrot.slane %v7681_v33, %v10663_v21  ;;  %v4623_v35 = vrot.slane %v2527_v18, %v13177_v5  ;;  %v4627_v46 = vrot.slane %v2527_v18, %v10643_v54  ;;  %v12343_v31 = vpop.permute.xlu0 %7843 }
 0x57d   :  { %v7677_v53 = vcombine.low %v7669_v12, %v7676_v48  ;;  %v7710_v22 = vcombine.low %v7688_v6, %v7695_v55  ;;  %v4631_v47 = vrot.slane %v2527_v18, %v13178_v13  ;;  %v4635_v56 = vrot.slane %v2527_v18, %v13179_v19  ;;  %v13211_v55 = vld [vmem:[#allocation63_spill] sm:$0xff] }
 0x57e   :  { %v7711_v40 = vcombine.low %v7702_v52, %v7709_v43  ;;  %v4639_v51 = vrot.slane %v2527_v18, %v10660_v11  ;;  %v7727_v4 = vcombine.low %v4611_v9, %v4615_v1  ;;  %v7728_v30 = vcombine.low %v4619_v24, %v4623_v35 }
 0x57f   :  { %7960 = vperm.xlu1 %8530, %v7677_v53   ;;  %v7718_v10 = vrot.slane %v7710_v22, %v10663_v21  ;;  %v7729_v8 = vcombine.low %v4627_v46, %v4631_v47  ;;  %v13210_v11 = vlaneseq  ;;  %v12350_v3 = vpop.permute.xlu1 %7852 }
 0x580   :  { %v7725_v57 = vrot.slane %v7711_v40, %v10663_v21  ;;  %v7730_v29 = vcombine.low %v4635_v56, %v4639_v51  ;;  %v7737_v5 = vrot.slane %v7727_v4, %v10663_v21  ;;  %v7744_v13 = vrot.slane %v7728_v30, %v10663_v21  ;;  %v12353_v48 = vpop.permute.xlu0 %7849 }
 0x581   :  { %v7751_v19 = vrot.slane %v7729_v8, %v10663_v21  ;;  %v7969_v34 = vand.u32 127, %v13210_v11 }
 0x582   :  { %v7726_v54 = vcombine.low %v7718_v10, %v7725_v57  ;;  %v7758_v58 = vrot.slane %v7730_v29, %v10663_v21  ;;  %v7759_v12 = vcombine.low %v7737_v5, %v7744_v13 }
 0x583   :  { %v8023_v27 = vadd.s32 4294967232, %v7969_v34  ;;  %v8037_v44 = vadd.s32 4294967216, %v7969_v34  ;;  %v7974_v50 = vadd.s32 4294967288, %v7969_v34  ;;  %v7981_v53 = vadd.s32 4294967280, %v7969_v34  ;;  %v12361_v1 = vpop.permute.xlu1 %7858 }
 0x584   :  { %7963 = vperm.xlu1 %8530, %v7726_v54   ;;  %v7760_v60 = vcombine.low %v7751_v19, %v7758_v58  ;;  %v7767_v25 = vrot.slane %v7759_v12, %v10663_v21  ;;  %v7988_v33 = vadd.s32 4294967272, %v7969_v34  ;;  %v8002_v6 = vadd.s32 4294967256, %v7969_v34  ;;  %v7856_v46 = vpop.permute.xlu0 %7855 }
 0x585   :  { %v12356_v52 = vsub.s32 %v8023_v27, %v13211_v55  ;;  %v12359_v43 = vsub.s32 %v7969_v34, %v13211_v55  ;;  %v7995_v9 = vadd.s32 4294967264, %v7969_v34  ;;  %v12364_v24 = vsub.s32 %v8037_v44, %v13211_v55 }
 0x586   :  { %v7774_v18 = vrot.slane %v7760_v60, %v10663_v21  ;;  %v12367_v22 = vsub.s32 %v7974_v50, %v13211_v55  ;;  %v8051_v35 = vadd.s32 4294967200, %v7969_v34  ;;  %v8016_v40 = vadd.s32 4294967240, %v7969_v34 }
 0x587   :  { %v12370_v47 = vsub.s32 %v7981_v53, %v13211_v55  ;;  %v12373_v56 = vsub.s32 %v7988_v33, %v13211_v55  ;;  %v8009_v10 = vadd.s32 4294967248, %v7969_v34  ;;  %v8082_v51 = vrot.slane %v12287_v37, %v12359_v43  ;;  %v7865_v12 = vpop.permute.xlu1 %7864 }
 0x588   :  { %v7775_v62 = vcombine.low %v7767_v25, %v7774_v18  ;;  %v12378_v4 = vsub.s32 %v8002_v6, %v13211_v55  ;;  %v8030_v57 = vadd.s32 4294967224, %v7969_v34  ;;  %v8086_v30 = vrot.slane %v12284_v61, %v12367_v22  ;;  %v7862_v60 = vpop.permute.xlu0 %7861 }
 0x589   :  { %v12383_v8 = vsub.s32 %v7995_v9, %v13211_v55  ;;  %v8091_v29 = vrot.slane %v12306_v39, %v12370_v47  ;;  %v8096_v5 = vrot.slane %v12298_v26, %v12373_v56  ;;  %v12390_v54 = vsub.s32 %v8016_v40, %v13211_v55 }
 0x58a   :  { %7966 = vperm.xlu1 %8530, %v7775_v62   ;;  %v8044_v37 = vadd.s32 4294967208, %v7969_v34  ;;  %v8087_v13 = vsel %vm7979_vm0, %v8086_v30, %v8082_v51  ;;  %v8106_v19 = vrot.slane %v12323_v20, %v12378_v4  ;;  %v12398_v58 = vsub.s32 %v8009_v10, %v13211_v55 }
 0x58b   :  { %v8101_v61 = vrot.slane %v12327_v36, %v12383_v8  ;;  %v8092_v39 = vsel %vm7986_vm1, %v8091_v29, %v8087_v13  ;;  %v12402_v26 = vsub.s32 %v8030_v57, %v13211_v55  ;;  %v8058_v25 = vadd.s32 4294967192, %v7969_v34 }
 0x58c   :  { %v8097_v18 = vsel %vm7993_vm2, %v8096_v5, %v8092_v39  ;;  %v8116_v20 = vrot.slane %v12340_v23, %v12390_v54  ;;  %v8111_v36 = vrot.slane %v12343_v31, %v12398_v58  ;;  %v12411_v44 = vsub.s32 %v8044_v37, %v13211_v55  ;;  %v7868_v51 = vpop.permute.xlu0 %7867 }
 0x58d   :  { %v8102_v27 = vsel %vm8000_vm3, %v8101_v61, %v8097_v18  ;;  %v8072_v50 = vadd.s32 4294967176, %v7969_v34  ;;  %v8126_v53 = vrot.slane %v12350_v3, %v12402_v26  ;;  %v8065_v33 = vadd.s32 4294967184, %v7969_v34 }
 0x58e   :  { %v8107_v62 = vsel %vm8007_vm4, %v8106_v19, %v8102_v27  ;;  %v8121_v23 = vrot.slane %v12353_v48, %v12356_v52  ;;  %v12420_v31 = vsub.s32 %v8058_v25, %v13211_v55  ;;  %v8136_v40 = vrot.slane %v12361_v1, %v12411_v44  ;;  %v7871_v48 = vpop.permute.xlu1 %7870 }
 0x58f   :  { %v8112_v6 = vsel %vm8014_vm5, %v8111_v36, %v8107_v62  ;;  %v12426_v10 = vsub.s32 %v8051_v35, %v13211_v55  ;;  %v8131_v34 = vrot.slane %v7856_v46, %v12364_v24  ;;  %v12431_v57 = vsub.s32 %v8072_v50, %v13211_v55 }
 0x590   :  { %v8117_v9 = vsel %vm8021_vm6, %v8116_v20, %v8112_v6  ;;  %v8146_v29 = vrot.slane %v7865_v12, %v12420_v31  ;;  %v12436_v1 = vsub.s32 %v8065_v33, %v13211_v55  ;;  %v7874_v12 = vpop.permute.xlu0 %7873  ;;  %v7999_v21 = vrot.slane %v12072_v17, %v12383_v8 }
 0x591   :  { %v8122_v3 = vsel %vm8028_vm7, %v8121_v23, %v8117_v9  ;;  %v8141_v35 = vrot.slane %v7862_v60, %v12426_v10  ;;  %v8156_v37 = vrot.slane %v7871_v48, %v12431_v57 }
 0x592   :  { %v8127_v30 = vsel %vm8035_vm8, %v8126_v53, %v8122_v3  ;;  %v8151_v13 = vrot.slane %v7868_v51, %v12436_v1 }
 0x593   :  { %v8132_v46 = vsel %vm8042_vm9, %v8131_v34, %v8127_v30 }
 0x594   :  { %v8137_v5 = vsel %vm8049_vm10, %v8136_v40, %v8132_v46  ;;  %v7880_v25 = vpop.permute.xlu0 %7879 }
 0x595   :  { %v8142_v19 = vsel %vm8056_vm11, %v8141_v35, %v8137_v5  ;;  %v7877_v60 = vpop.permute.xlu1 %7876  ;;  %v8161_v5 = vrot.slane %v7874_v12, %v12359_v43  ;;  %v8170_v11 = vrot.slane %v7880_v25, %v12370_v47  ;;  %v7992_v12 = vrot.slane %v12048_v38, %v12373_v56 }
 0x596   :  { %v8147_v61 = vsel %vm8063_vm12, %v8146_v29, %v8142_v19  ;;  %v8165_v35 = vrot.slane %v7877_v60, %v12367_v22  ;;  %v7973_v60 = vrot.slane %v11965_v59, %v12359_v43  ;;  %v8006_v38 = vrot.slane %v12101_v28, %v12378_v4 }
 0x597   :  { %v8152_v55 = vsel %vm8070_vm13, %v8151_v13, %v8147_v61  ;;  %v7978_v13 = vrot.slane %v11994_v49, %v12367_v22 }
 0x598   :  { %v12447_v39 = vsel %vm8077_vm14, %v8156_v37, %v8152_v55  ;;  %v7886_v20 = vpop.permute.xlu0 %7885  ;;  %v8166_v19 = vsel %vm7979_vm0, %v8165_v35, %v8161_v5  ;;  %v7985_v55 = vrot.slane %v12020_v16, %v12370_v47 }
 0x599   :  { %13212 = vst [vmem:[#allocation12_spill] sm:$0xff] %v12447_v39  ;;  %v8171_v49 = vsel %vm7986_vm1, %v8170_v11, %v8166_v19  ;;  %v8180_v5 = vrot.slane %v7886_v20, %v12383_v8 }
 0x59c   :  { %v7892_v27 = vpop.permute.xlu0 %7891 }
 0x59f   :  { %v7883_v18 = vpop.permute.xlu1 %7882 }
 0x5a0   :  { %v12449_v62 = vpop.permute.xlu0 %7897  ;;  %v8175_v61 = vrot.slane %v7883_v18, %v12373_v56  ;;  %v7980_v18 = vsel %vm7979_vm0, %v7978_v13, %v7973_v60  ;;  %v8013_v13 = vrot.slane %v12127_v63, %v12398_v58  ;;  %v8190_v63 = vrot.slane %v7892_v27, %v12398_v58 }
 0x5a1   :  { %v7987_v59 = vsel %vm7986_vm1, %v7985_v55, %v7980_v18  ;;  %v8200_v18 = vrot.slane %v12449_v62, %v12356_v52 }
 0x5a2   :  { %v8176_v35 = vsel %vm7993_vm2, %v8175_v61, %v8171_v49  ;;  %v7994_v11 = vsel %vm7993_vm2, %v7992_v12, %v7987_v59 }
 0x5a4   :  { %v7922_v33 = vpop.permute.xlu0 %7921 }
 0x5a5   :  { %v8240_v19 = vrot.slane %v7922_v33, %v12359_v43 }
 0x5a8   :  { %v7928_v6 = vpop.permute.xlu0 %7927 }
 0x5a9   :  { %v8249_v43 = vrot.slane %v7928_v6, %v12370_v47 }
 0x5aa   :  { %v7889_v36 = vpop.permute.xlu1 %7888 }
 0x5ab   :  { %v8185_v16 = vrot.slane %v7889_v36, %v12378_v4  ;;  %v8001_v36 = vsel %vm8000_vm3, %v7999_v21, %v7994_v11 }
 0x5ac   :  { %v7934_v40 = vpop.permute.xlu0 %7933  ;;  %v8008_v60 = vsel %vm8007_vm4, %v8006_v38, %v8001_v36 }
 0x5ad   :  { %v8015_v33 = vsel %vm8014_vm5, %v8013_v13, %v8008_v60  ;;  %v8055_v13 = vrot.slane %v12245_v15, %v12426_v10 }
 0x5b0   :  { %v12455_v3 = vpop.permute.xlu0 %7939 }
 0x5b4   :  { %v7895_v50 = vpop.permute.xlu1 %7894  ;;  %v12459_v51 = vpop.permute.xlu0 %7945 }
 0x5b5   :  { %v8195_v20 = vrot.slane %v7895_v50, %v12390_v54  ;;  %v8034_v50 = vrot.slane %v12184_v41, %v12402_v26  ;;  %v8259_v41 = vrot.slane %v7934_v40, %v12383_v8  ;;  %v8269_v40 = vrot.slane %v12455_v3, %v12398_v58 }
 0x5b6   :  { %v8279_v15 = vrot.slane %v12459_v51, %v12356_v52 }
 0x5b8   :  { %v12463_v29 = vpop.permute.xlu0 %7903 }
 0x5bc   :  { %v12469_v37 = vpop.permute.xlu0 %7906 }
 0x5bd   :  { %v8215_v58 = vrot.slane %v12469_v37, %v12411_v44 }
 0x5bf   :  { %v12451_v53 = vpop.permute.xlu1 %7900 }
 0x5c0   :  { %v12495_v17 = vpop.permute.xlu0 %7909  ;;  %v8205_v47 = vrot.slane %v12451_v53, %v12402_v26 }
 0x5c9   :  { %v7925_v23 = vpop.permute.xlu1 %7924 }
 0x5ca   :  { %v8244_v25 = vrot.slane %v7925_v23, %v12367_v22  ;;  %v8020_v22 = vrot.slane %v12155_v14, %v12390_v54  ;;  %v8181_v23 = vsel %vm8000_vm3, %v8180_v5, %v8176_v35  ;;  %v8027_v14 = vrot.slane %v12190_v7, %v12356_v52 }
 0x5cb   :  { %v8186_v28 = vsel %vm8007_vm4, %v8185_v16, %v8181_v23  ;;  %v8069_v23 = vrot.slane %v12273_v2, %v12436_v1  ;;  %v8220_v52 = vrot.slane %v12495_v17, %v12426_v10 }
 0x5cc   :  { %v8245_v61 = vsel %vm7979_vm0, %v8244_v25, %v8240_v19  ;;  %v8022_v12 = vsel %vm8021_vm6, %v8020_v22, %v8015_v33  ;;  %v8191_v49 = vsel %vm8014_vm5, %v8190_v63, %v8186_v28  ;;  %v8048_v25 = vrot.slane %v12212_v42, %v12411_v44 }
 0x5cd   :  { %v8196_v27 = vsel %vm8021_vm6, %v8195_v20, %v8191_v49  ;;  %v8029_v35 = vsel %vm8028_vm7, %v8027_v14, %v8022_v12  ;;  %v8210_v42 = vrot.slane %v12463_v29, %v12364_v24  ;;  %v13213_v12 = vld [vmem:[#allocation12_spill] sm:$0xff] }
 0x5ce   :  { %v8036_v16 = vsel %vm8035_vm8, %v8034_v50, %v8029_v35  ;;  %v8201_v59 = vsel %vm8028_vm7, %v8200_v18, %v8196_v27 }
 0x5d4   :  { %v7931_v9 = vpop.permute.xlu1 %7930 }
 0x5d5   :  { %v8254_v55 = vrot.slane %v7931_v9, %v12373_v56  ;;  %v7913_v56 = vpop.permute.xlu0 %7912  ;;  %v8250_v9 = vsel %vm7986_vm1, %v8249_v43, %v8245_v61 }
 0x5d7   :  { %v8255_v6 = vsel %vm7993_vm2, %v8254_v55, %v8250_v9 }
 0x5d8   :  { %v8260_v53 = vsel %vm8000_vm3, %v8259_v41, %v8255_v6  ;;  %v13215_v41 = vlaneseq }
 0x5d9   :  { %v7916_v5 = vpop.permute.xlu0 %7915 }
 0x5da   :  { %vm8343_vm15 = vcmp.lt.s32.totalorder %v13215_v41, 512 }
 0x5dd   :  { %v7919_v51 = vpop.permute.xlu0 %7918 }
 0x5de   :  { %v12453_v34 = vpop.permute.xlu1 %7936  ;;  %v8235_v55 = vrot.slane %v7919_v51, %v12431_v57 }
 0x5df   :  { %v8264_v7 = vrot.slane %v12453_v34, %v12378_v4  ;;  %v8041_v4 = vrot.slane %v12218_v0, %v12364_v24  ;;  %v8206_v34 = vsel %vm8035_vm8, %v8205_v47, %v8201_v59  ;;  %v13214_v47 = vld [vmem:[#allocation70_spill] sm:$0xff] }
 0x5e0   :  { %v8211_v19 = vsel %vm8042_vm9, %v8210_v42, %v8206_v34 }
 0x5e1   :  { %v8265_v62 = vsel %vm8007_vm4, %v8264_v7, %v8260_v53  ;;  %v8043_v11 = vsel %vm8042_vm9, %v8041_v4, %v8036_v16  ;;  %v8216_v28 = vsel %vm8049_vm10, %v8215_v58, %v8211_v19 }
 0x5e2   :  { %v8050_v0 = vsel %vm8049_vm10, %v8048_v25, %v8043_v11  ;;  %v8270_v36 = vsel %vm8014_vm5, %v8269_v40, %v8265_v62 }
 0x5e3   :  { %v12457_v48 = vpop.permute.xlu1 %7942 }
 0x5e4   :  { %v8274_v8 = vrot.slane %v12457_v48, %v12390_v54  ;;  %v8062_v54 = vrot.slane %v12242_v45, %v12420_v31  ;;  %v8057_v45 = vsel %vm8056_vm11, %v8055_v13, %v8050_v0 }
 0x5e6   :  { %v8275_v3 = vsel %vm8021_vm6, %v8274_v8, %v8270_v36  ;;  %v8064_v2 = vsel %vm8063_vm12, %v8062_v54, %v8057_v45 }
 0x5e7   :  { %v8071_v60 = vsel %vm8070_vm13, %v8069_v23, %v8064_v2 }
 0x5e9   :  { %v12461_v30 = vpop.permute.xlu1 %7948 }
 0x5ea   :  { %v8284_v48 = vrot.slane %v12461_v30, %v12402_v26  ;;  %v8076_v26 = vrot.slane %v12266_v32, %v12431_v57  ;;  %v8230_v32 = vrot.slane %v7916_v5, %v12436_v1 }
 0x5ee   :  { %v12466_v46 = vpop.permute.xlu1 %7951 }
 0x5ef   :  { %v8289_v29 = vrot.slane %v12466_v46, %v12364_v24  ;;  %v8280_v24 = vsel %vm8028_vm7, %v8279_v15, %v8275_v3  ;;  %v8225_v46 = vrot.slane %v7913_v56, %v12420_v31 }
 0x5f0   :  { %v8285_v20 = vsel %vm8035_vm8, %v8284_v48, %v8280_v24 }
 0x5f3   :  { %v12485_v39 = vpop.permute.xlu1 %7954 }
 0x5f4   :  { %v8294_v37 = vrot.slane %v12485_v39, %v12411_v44  ;;  %v8221_v44 = vsel %vm8056_vm11, %v8220_v52, %v8216_v28  ;;  %v8290_v39 = vsel %vm8042_vm9, %v8289_v29, %v8285_v20 }
 0x5f9   :  { %v7958_v21 = vpop.permute.xlu1 %7957 }
 0x5fa   :  { %v8299_v30 = vrot.slane %v7958_v21, %v12426_v10  ;;  %v8295_v10 = vsel %vm8049_vm10, %v8294_v37, %v8290_v39  ;;  %v8078_v21 = vsel %vm8077_vm14, %v8076_v26, %v8071_v60 }
 0x5fb   :  { %v8316_v50 = vcombine.low %v8078_v21, %v13213_v12 }
 0x5fc   :  { %v8300_v63 = vsel %vm8056_vm11, %v8299_v30, %v8295_v10 }
 0x5fd   :  { %v8324_v6 = vrot.slane %v8316_v50, %v13214_v47 }
 0x5fe   :  { %v7961_v38 = vpop.permute.xlu1 %7960 }
 0x5ff   :  { %v8304_v61 = vrot.slane %v7961_v38, %v12420_v31  ;;  %v8226_v31 = vsel %vm8063_vm12, %v8225_v46, %v8221_v44 }
 0x601   :  { %v8305_v14 = vsel %vm8063_vm12, %v8304_v61, %v8300_v63 }
 0x603   :  { %v7964_v22 = vpop.permute.xlu1 %7963 }
 0x604   :  { %v8309_v17 = vrot.slane %v7964_v22, %v12436_v1  ;;  %v8231_v1 = vsel %vm8070_vm13, %v8230_v32, %v8226_v31 }
 0x605   :  { %v8236_v56 = vsel %vm8077_vm14, %v8235_v55, %v8231_v1 }
 0x606   :  { %v8310_v49 = vsel %vm8070_vm13, %v8309_v17, %v8305_v14 }
 0x609   :  { %v7967_v43 = vpop.permute.xlu1 %7966 }
 0x60a   :  { %v8314_v33 = vrot.slane %v7967_v43, %v12431_v57 }
 0x60c   :  { %v8315_v9 = vsel %vm8077_vm14, %v8314_v33, %v8310_v49 }
 0x60d   :  { %v8317_v27 = vcombine.low %v8236_v56, %v8315_v9 }
 0x60f   :  { %v8331_v7 = vrot.slane %v8317_v27, %v13214_v47 }
 0x611   :  { %v8332_v18 = vcombine.low %v8324_v6, %v8331_v7 }
 0x613   :  { %v8339_v57 = vrot.slane %v8332_v18, %v13214_v47 }
 0x615   :  { %8345 = vst.msk [vmem:[#allocation6] sm:$0xf] %vm8343_vm15, %v8339_v57 }
 0x616   :  { %8579 = shalt.err (!%p8576_p12)
}
 0x617   :  { %s8580_s21 = scalar_lea.hbm %s12618_s7, 64 }
 0x618   :  { %p8581_p13 = scmp.ne.s32.totalorder %s12618_s7, %s8580_s21  ;;  %p8584_p0 = scmp.lt.u32.totalorder %s8580_s21, %s12618_s7 }
 0x61a   :  { %p8586_p1 = pnand %p8584_p0, %p8581_p13 }
 0x61c   :  { %8589 = shalt.err (!%p8586_p1)
}
 0x61d   :  { %8355 = dma.vmem_to_hbm [thread:$0]  %s8353_s5, 64, %s12618_s7, [#allocation5]  }
 0x61e   :  { %8592 = dma.done.wait [#allocation5], 64  }
 0x61f   :  { %8593 = vsyncadd [#allocation5], 4294967232 }
 0x620   :  { %8359 = vsyncpa [#allocation4], 1 }
 0x621   :  { %8360 = vsyncpa [#allocation5], 1 }

</bundles_post_ra>
